<compile_context>
chip_gen: v5e
topology: v5e:2x2
jax: 0.10.0
libtpu: 0.0.40
codegen_flags: <defaults>
</compile_context>

<pallas_src>
import functools

import jax
import jax.numpy as jnp
import numpy as np
from jax.experimental import pallas as pl
from jax.experimental.pallas import tpu as pltpu

KH = KW = 4   # kernel size
STRIDE = 2
PAD = 1


def _pick_tile_h(H, W, C):
    """Input rows processed per grid step (output rows per step = 2*TILE_H)."""
    budget = 4 * 1024 * 1024                           # VMEM for out block (x2 buf) + f32 acc
    per_row = (2 * 2 * W * C * 4) * 2 + W * C * 4
    # Small-ish tiles keep several grid steps alive for pipelining / 2-TC sharding
    # even when N is tiny (N=1..2 at inference).
    cap = max(1, min(H, budget // max(per_row, 1), 8))
    for d in range(cap, 0, -1):
        if H % d == 0 and ((d * W) % 8 == 0 or d == H):
            return d
    return H


def _upsample_phase_kernel(x_ref, w_ref, b_ref, o_ref, acc_ref, *, TILE_H, W, C):
    # x_ref : (1, H+2, W+2, C)  bf16 padded input (full image; resident across row tiles)
    # w_ref : (4, 4, C, C)      bf16 per-tap (Cin, Cout) matrices (flipped/transposed); resident
    # b_ref : (1, C)            f32 bias
    # o_ref : (1, 2, 2, TILE_H*W, C)  output block, phase-major: [ph, pw, h*W + w, c]
    # acc_ref: (TILE_H*W, C)    f32 VMEM accumulator scratch
    r = pl.program_id(1)
    row0 = pl.multiple_of(r * TILE_H, TILE_H)
    bias = b_ref[...].astype(jnp.float32)                     # (1, C)

    for ph in range(2):                                       # output row parity
        for pw in range(2):                                   # output col parity
            # 4 accumulating matmuls per phase, straight into the f32 scratch.
            for j in range(2):
                for i in range(2):
                    win = x_ref[0,
                                pl.ds(row0 + ph + j, TILE_H),
                                pl.ds(pw + i, W),
                                :]                            # (TILE_H, W, C) bf16
                    contrib = jnp.dot(win.reshape(TILE_H * W, C),
                                      w_ref[2 * j + ph, 2 * i + pw],
                                      preferred_element_type=jnp.float32)
                    if j == 0 and i == 0:
                        acc_ref[...] = contrib
                    else:
                        acc_ref[...] += contrib
            o_ref[0, ph, pw] = (acc_ref[...] + bias).astype(o_ref.dtype)


def prepare_upsample_params(w_t, b):
    """One-time (load-time) weight prep: flip/transpose to per-tap matrices, cast to bf16."""
    # PyTorch ConvTranspose2d weight is (Cin, Cout, kh, kw).
    w_f = jnp.transpose(w_t[:, :, ::-1, ::-1], (2, 3, 0, 1)).astype(jnp.bfloat16)
    b2 = jnp.reshape(b, (1, -1)).astype(jnp.float32)
    return w_f, b2


@jax.jit
def upsample_forward(x_nchw, t, cond, params):
    """Forward of Upsample: (conv_transpose(x), cond). x is NCHW, like PyTorch."""
    del t  # unused, matches the PyTorch module
    w_f, b2 = params
    N, C, H, W = x_nchw.shape
    OH, OW = STRIDE * H, STRIDE * W
    TILE_H = _pick_tile_h(H, W, C)
    R = H // TILE_H

    # NCHW -> NHWC, bf16, 1-pixel zero halo.  No dilated intermediate is materialized.
    x = jnp.transpose(x_nchw.astype(jnp.bfloat16), (0, 2, 3, 1))
    xh = jnp.pad(x, ((0, 0), (1, 1), (1, 1), (0, 0)))         # (N, H+2, W+2, C)

    kernel = functools.partial(_upsample_phase_kernel, TILE_H=TILE_H, W=W, C=C)

    out_ph = pl.pallas_call(
        kernel,
        out_shape=jax.ShapeDtypeStruct((N, 2, 2, H * W, C), x_nchw.dtype),
        grid_spec=pltpu.PrefetchScalarGridSpec(
            num_scalar_prefetch=0,
            grid=(N, R),
            in_specs=[
                pl.BlockSpec((1, H + 2, W + 2, C), lambda n, r: (n, 0, 0, 0)),
                pl.BlockSpec((KH, KW, C, C), lambda n, r: (0, 0, 0, 0)),
                pl.BlockSpec((1, C), lambda n, r: (0, 0)),
            ],
            out_specs=pl.BlockSpec((1, 2, 2, TILE_H * W, C),
                                   lambda n, r: (n, 0, 0, r, 0)),
            scratch_shapes=[pltpu.VMEM((TILE_H * W, C), jnp.float32)],
        ),
        compiler_params=pltpu.CompilerParams(
            dimension_semantics=("parallel", "parallel"),
            vmem_limit_bytes=32 * 1024 * 1024),
    )(xh, w_f, b2)

    # (N, 2, 2, H, W, C) -> NCHW with the phases interleaved: out[n, c, 2h+ph, 2w+pw].
    out = out_ph.reshape(N, 2, 2, H, W, C)
    out = jnp.transpose(out, (0, 5, 3, 1, 4, 2)).reshape(N, C, OH, OW)
    return out, cond


def _convtranspose2d_ref_np(x, w, b):
    """Naive numpy reference for nn.ConvTranspose2d(k=4, s=2, p=1). x:(N,C,H,W), w:(Cin,Cout,4,4)."""
    N, Cin, H, W = x.shape
    Cout = w.shape[1]
    OH, OW = 2 * H, 2 * W
    out = np.zeros((N, Cout, OH + 2, OW + 2), np.float64)
    for kh in range(KH):
        for kw in range(KW):
            contrib = np.einsum('nihw,io->nohw', x, w[:, :, kh, kw])
            out[:, :, kh:kh + 2 * H:2, kw:kw + 2 * W:2] += contrib
    out = out[:, :, PAD:PAD + OH, PAD:PAD + OW] + b[None, :, None, None]
    return out.astype(np.float32)


if __name__ == "__main__":
    key = jax.random.PRNGKey(0)
    N, C, H, W = 2, 4, 16, 16

    k_x, k_w, k_b, k_t, k_c = jax.random.split(key, 5)
    x = jax.random.normal(k_x, (N, C, H, W), jnp.float32)
    t = jax.random.normal(k_t, (N,), jnp.float32)            # unused by forward
    cond = jax.random.normal(k_c, (N, 8), jnp.float32)       # passed through

    # deterministic parameters (ConvTranspose2d weight shape: (Cin, Cout, 4, 4))
    w_t = jax.random.normal(k_w, (C, C, KH, KW), jnp.float32) * 0.1
    b = jax.random.normal(k_b, (C,), jnp.float32) * 0.1

    params = prepare_upsample_params(w_t, b)                  # hoisted, once per model
    out, cond_out = upsample_forward(x, t, cond, params)
    out = jax.block_until_ready(out)

    # Reference on bf16-rounded inputs (the kernel feeds bf16 to the MXU and accumulates
    # in f32), so only accumulation-order noise remains.
    x_bf = np.asarray(x.astype(jnp.bfloat16).astype(jnp.float32))
    w_bf = np.asarray(w_t.astype(jnp.bfloat16).astype(jnp.float32))
    ref = _convtranspose2d_ref_np(x_bf, w_bf, np.asarray(b))

    assert out.shape == (N, C, 2 * H, 2 * W), out.shape
    assert np.allclose(np.asarray(out), ref, atol=1e-3, rtol=1e-3), \
        float(np.max(np.abs(np.asarray(out) - ref)))
    assert np.array_equal(np.asarray(cond_out), np.asarray(cond))

    print("KERNEL_OK")
</pallas_src>

<mosaic_0001>
module attributes {stable_mosaic.version = 11 : i64} {
  func.func @_upsample_phase_kernel(%arg0: i32, %arg1: i32, %arg2: memref<1x18x18x4xbf16, #tpu.memory_space<vmem>>, %arg3: memref<4x4x4x4xbf16, #tpu.memory_space<vmem>>, %arg4: memref<1x4xf32, #tpu.memory_space<vmem>>, %arg5: memref<1x2x2x128x4xf32, #tpu.memory_space<vmem>>, %arg6: memref<128x4xf32, #tpu.memory_space<vmem>>) attributes {dimension_semantics = [#tpu.dimension_semantics<parallel>, #tpu.dimension_semantics<parallel>], iteration_bounds = array<i64: 2, 2>, scalar_prefetch = 0 : i64, scratch_operands = 1 : i64, tpu.core_type = #tpu.core_type<tc>, window_params = [{transform_indices = @transform_0, window_bounds = array<i64: 1, 18, 18, 4>}, {pipeline_mode = #tpu.pipeline_mode<synchronous>, transform_indices = @transform_1, window_bounds = array<i64: 4, 4, 4, 4>}, {pipeline_mode = #tpu.pipeline_mode<synchronous>, transform_indices = @transform_2, window_bounds = array<i64: 1, 4>}, {transform_indices = @transform_3, window_bounds = array<i64: 1, 2, 2, 128, 4>}]} {
    %c8_i32 = arith.constant 8 : i32
    %0 = arith.muli %arg1, %c8_i32 : i32
    %1 = tpu.assume_multiple %0, 8 : i32
    %c0 = arith.constant 0 : index
    %c0_0 = arith.constant 0 : index
    %2 = vector.load %arg4[%c0, %c0_0] : memref<1x4xf32, #tpu.memory_space<vmem>>, vector<1x4xf32>
    %c0_i32 = arith.constant 0 : i32
    %3 = arith.addi %1, %c0_i32 : i32
    %c0_i32_1 = arith.constant 0 : i32
    %4 = arith.addi %3, %c0_i32_1 : i32
    %c0_2 = arith.constant 0 : index
    %5 = arith.index_cast %4 : i32 to index
    %c0_3 = arith.constant 0 : index
    %c0_4 = arith.constant 0 : index
    %6 = vector.load %arg2[%c0_2, %5, %c0_3, %c0_4] : memref<1x18x18x4xbf16, #tpu.memory_space<vmem>>, vector<1x8x16x4xbf16>
    %7 = vector.shape_cast %6 : vector<1x8x16x4xbf16> to vector<8x16x4xbf16>
    %8 = vector.shape_cast %7 : vector<8x16x4xbf16> to vector<128x4xbf16>
    %c0_5 = arith.constant 0 : index
    %c0_6 = arith.constant 0 : index
    %c0_7 = arith.constant 0 : index
    %c0_8 = arith.constant 0 : index
    %9 = vector.load %arg3[%c0_5, %c0_6, %c0_7, %c0_8] : memref<4x4x4x4xbf16, #tpu.memory_space<vmem>>, vector<1x1x4x4xbf16>
    %10 = vector.shape_cast %9 : vector<1x1x4x4xbf16> to vector<4x4xbf16>
    %cst = arith.constant dense<0.000000e+00> : vector<128x4xf32>
    %11 = tpu.matmul %8, %10, %cst {dimension_numbers = #tpu.dot_dimension_numbers<[1], [0], [0], [1], [0, 0, 1, 1], [], []>} : vector<128x4xbf16>, vector<4x4xbf16>, vector<128x4xf32> -> vector<128x4xf32>
    %c0_9 = arith.constant 0 : index
    %c0_10 = arith.constant 0 : index
    %12 = vector.load %arg6[%c0_9, %c0_10] : memref<128x4xf32, #tpu.memory_space<vmem>>, vector<128x4xf32>
    tpu.vector_store %arg6[%c0_9, %c0_10], %11 {strides = array<i32>} : memref<128x4xf32, #tpu.memory_space<vmem>>, vector<128x4xf32>,
    %c0_i32_11 = arith.constant 0 : i32
    %13 = arith.addi %1, %c0_i32_11 : i32
    %c0_i32_12 = arith.constant 0 : i32
    %14 = arith.addi %13, %c0_i32_12 : i32
    %c0_13 = arith.constant 0 : index
    %15 = arith.index_cast %14 : i32 to index
    %c1 = arith.constant 1 : index
    %c0_14 = arith.constant 0 : index
    %16 = vector.load %arg2[%c0_13, %15, %c1, %c0_14] : memref<1x18x18x4xbf16, #tpu.memory_space<vmem>>, vector<1x8x16x4xbf16>
    %17 = vector.shape_cast %16 : vector<1x8x16x4xbf16> to vector<8x16x4xbf16>
    %18 = vector.shape_cast %17 : vector<8x16x4xbf16> to vector<128x4xbf16>
    %c0_15 = arith.constant 0 : index
    %c2 = arith.constant 2 : index
    %c0_16 = arith.constant 0 : index
    %c0_17 = arith.constant 0 : index
    %19 = vector.load %arg3[%c0_15, %c2, %c0_16, %c0_17] : memref<4x4x4x4xbf16, #tpu.memory_space<vmem>>, vector<1x1x4x4xbf16>
    %20 = vector.shape_cast %19 : vector<1x1x4x4xbf16> to vector<4x4xbf16>
    %cst_18 = arith.constant dense<0.000000e+00> : vector<128x4xf32>
    %21 = tpu.matmul %18, %20, %cst_18 {dimension_numbers = #tpu.dot_dimension_numbers<[1], [0], [0], [1], [0, 0, 1, 1], [], []>} : vector<128x4xbf16>, vector<4x4xbf16>, vector<128x4xf32> -> vector<128x4xf32>
    %c0_19 = arith.constant 0 : index
    %c0_20 = arith.constant 0 : index
    %22 = vector.load %arg6[%c0_19, %c0_20] : memref<128x4xf32, #tpu.memory_space<vmem>>, vector<128x4xf32>
    %23 = arith.addf %22, %21 : vector<128x4xf32>
    %c0_21 = arith.constant 0 : index
    %c0_22 = arith.constant 0 : index
    %24 = vector.load %arg6[%c0_21, %c0_22] : memref<128x4xf32, #tpu.memory_space<vmem>>, vector<128x4xf32>
    tpu.vector_store %arg6[%c0_21, %c0_22], %23 {strides = array<i32>} : memref<128x4xf32, #tpu.memory_space<vmem>>, vector<128x4xf32>,
    %c0_i32_23 = arith.constant 0 : i32
    %25 = arith.addi %1, %c0_i32_23 : i32
    %c1_i32 = arith.constant 1 : i32
    %26 = arith.addi %25, %c1_i32 : i32
    %c0_24 = arith.constant 0 : index
    %27 = arith.index_cast %26 : i32 to index
    %c0_25 = arith.constant 0 : index
    %c0_26 = arith.constant 0 : index
    %28 = vector.load %arg2[%c0_24, %27, %c0_25, %c0_26] : memref<1x18x18x4xbf16, #tpu.memory_space<vmem>>, vector<1x8x16x4xbf16>
    %29 = vector.shape_cast %28 : vector<1x8x16x4xbf16> to vector<8x16x4xbf16>
    %30 = vector.shape_cast %29 : vector<8x16x4xbf16> to vector<128x4xbf16>
    %c2_27 = arith.constant 2 : index
    %c0_28 = arith.constant 0 : index
    %c0_29 = arith.constant 0 : index
    %c0_30 = arith.constant 0 : index
    %31 = vector.load %arg3[%c2_27, %c0_28, %c0_29, %c0_30] : memref<4x4x4x4xbf16, #tpu.memory_space<vmem>>, vector<1x1x4x4xbf16>
    %32 = vector.shape_cast %31 : vector<1x1x4x4xbf16> to vector<4x4xbf16>
    %cst_31 = arith.constant dense<0.000000e+00> : vector<128x4xf32>
    %33 = tpu.matmul %30, %32, %cst_31 {dimension_numbers = #tpu.dot_dimension_numbers<[1], [0], [0], [1], [0, 0, 1, 1], [], []>} : vector<128x4xbf16>, vector<4x4xbf16>, vector<128x4xf32> -> vector<128x4xf32>
    %c0_32 = arith.constant 0 : index
    %c0_33 = arith.constant 0 : index
    %34 = vector.load %arg6[%c0_32, %c0_33] : memref<128x4xf32, #tpu.memory_space<vmem>>, vector<128x4xf32>
    %35 = arith.addf %34, %33 : vector<128x4xf32>
    %c0_34 = arith.constant 0 : index
    %c0_35 = arith.constant 0 : index
    %36 = vector.load %arg6[%c0_34, %c0_35] : memref<128x4xf32, #tpu.memory_space<vmem>>, vector<128x4xf32>
    tpu.vector_store %arg6[%c0_34, %c0_35], %35 {strides = array<i32>} : memref<128x4xf32, #tpu.memory_space<vmem>>, vector<128x4xf32>,
    %c0_i32_36 = arith.constant 0 : i32
    %37 = arith.addi %1, %c0_i32_36 : i32
    %c1_i32_37 = arith.constant 1 : i32
    %38 = arith.addi %37, %c1_i32_37 : i32
    %c0_38 = arith.constant 0 : index
    %39 = arith.index_cast %38 : i32 to index
    %c1_39 = arith.constant 1 : index
    %c0_40 = arith.constant 0 : index
    %40 = vector.load %arg2[%c0_38, %39, %c1_39, %c0_40] : memref<1x18x18x4xbf16, #tpu.memory_space<vmem>>, vector<1x8x16x4xbf16>
    %41 = vector.shape_cast %40 : vector<1x8x16x4xbf16> to vector<8x16x4xbf16>
    %42 = vector.shape_cast %41 : vector<8x16x4xbf16> to vector<128x4xbf16>
    %c2_41 = arith.constant 2 : index
    %c2_42 = arith.constant 2 : index
    %c0_43 = arith.constant 0 : index
    %c0_44 = arith.constant 0 : index
    %43 = vector.load %arg3[%c2_41, %c2_42, %c0_43, %c0_44] : memref<4x4x4x4xbf16, #tpu.memory_space<vmem>>, vector<1x1x4x4xbf16>
    %44 = vector.shape_cast %43 : vector<1x1x4x4xbf16> to vector<4x4xbf16>
    %cst_45 = arith.constant dense<0.000000e+00> : vector<128x4xf32>
    %45 = tpu.matmul %42, %44, %cst_45 {dimension_numbers = #tpu.dot_dimension_numbers<[1], [0], [0], [1], [0, 0, 1, 1], [], []>} : vector<128x4xbf16>, vector<4x4xbf16>, vector<128x4xf32> -> vector<128x4xf32>
    %c0_46 = arith.constant 0 : index
    %c0_47 = arith.constant 0 : index
    %46 = vector.load %arg6[%c0_46, %c0_47] : memref<128x4xf32, #tpu.memory_space<vmem>>, vector<128x4xf32>
    %47 = arith.addf %46, %45 : vector<128x4xf32>
    %c0_48 = arith.constant 0 : index
    %c0_49 = arith.constant 0 : index
    %48 = vector.load %arg6[%c0_48, %c0_49] : memref<128x4xf32, #tpu.memory_space<vmem>>, vector<128x4xf32>
    tpu.vector_store %arg6[%c0_48, %c0_49], %47 {strides = array<i32>} : memref<128x4xf32, #tpu.memory_space<vmem>>, vector<128x4xf32>,
    %c0_50 = arith.constant 0 : index
    %c0_51 = arith.constant 0 : index
    %49 = vector.load %arg6[%c0_50, %c0_51] : memref<128x4xf32, #tpu.memory_space<vmem>>, vector<128x4xf32>
    %50 = vector.broadcast %2 : vector<1x4xf32> to vector<128x4xf32>
    %51 = arith.addf %49, %50 : vector<128x4xf32>
    %c0_52 = arith.constant 0 : index
    %c0_53 = arith.constant 0 : index
    %c0_54 = arith.constant 0 : index
    %c0_55 = arith.constant 0 : index
    %c0_56 = arith.constant 0 : index
    %52 = vector.load %arg5[%c0_52, %c0_53, %c0_54, %c0_55, %c0_56] : memref<1x2x2x128x4xf32, #tpu.memory_space<vmem>>, vector<1x1x1x128x4xf32>
    %53 = vector.shape_cast %52 : vector<1x1x1x128x4xf32> to vector<128x4xf32>
    %54 = vector.shape_cast %51 : vector<128x4xf32> to vector<1x1x1x128x4xf32>
    tpu.vector_store %arg5[%c0_52, %c0_53, %c0_54, %c0_55, %c0_56], %54 {strides = array<i32>} : memref<1x2x2x128x4xf32, #tpu.memory_space<vmem>>, vector<1x1x1x128x4xf32>,
    %c0_i32_57 = arith.constant 0 : i32
    %55 = arith.addi %1, %c0_i32_57 : i32
    %c0_i32_58 = arith.constant 0 : i32
    %56 = arith.addi %55, %c0_i32_58 : i32
    %c0_59 = arith.constant 0 : index
    %57 = arith.index_cast %56 : i32 to index
    %c1_60 = arith.constant 1 : index
    %c0_61 = arith.constant 0 : index
    %58 = vector.load %arg2[%c0_59, %57, %c1_60, %c0_61] : memref<1x18x18x4xbf16, #tpu.memory_space<vmem>>, vector<1x8x16x4xbf16>
    %59 = vector.shape_cast %58 : vector<1x8x16x4xbf16> to vector<8x16x4xbf16>
    %60 = vector.shape_cast %59 : vector<8x16x4xbf16> to vector<128x4xbf16>
    %c0_62 = arith.constant 0 : index
    %c1_63 = arith.constant 1 : index
    %c0_64 = arith.constant 0 : index
    %c0_65 = arith.constant 0 : index
    %61 = vector.load %arg3[%c0_62, %c1_63, %c0_64, %c0_65] : memref<4x4x4x4xbf16, #tpu.memory_space<vmem>>, vector<1x1x4x4xbf16>
    %62 = vector.shape_cast %61 : vector<1x1x4x4xbf16> to vector<4x4xbf16>
    %cst_66 = arith.constant dense<0.000000e+00> : vector<128x4xf32>
    %63 = tpu.matmul %60, %62, %cst_66 {dimension_numbers = #tpu.dot_dimension_numbers<[1], [0], [0], [1], [0, 0, 1, 1], [], []>} : vector<128x4xbf16>, vector<4x4xbf16>, vector<128x4xf32> -> vector<128x4xf32>
    %c0_67 = arith.constant 0 : index
    %c0_68 = arith.constant 0 : index
    %64 = vector.load %arg6[%c0_67, %c0_68] : memref<128x4xf32, #tpu.memory_space<vmem>>, vector<128x4xf32>
    tpu.vector_store %arg6[%c0_67, %c0_68], %63 {strides = array<i32>} : memref<128x4xf32, #tpu.memory_space<vmem>>, vector<128x4xf32>,
    %c0_i32_69 = arith.constant 0 : i32
    %65 = arith.addi %1, %c0_i32_69 : i32
    %c0_i32_70 = arith.constant 0 : i32
    %66 = arith.addi %65, %c0_i32_70 : i32
    %c0_71 = arith.constant 0 : index
    %67 = arith.index_cast %66 : i32 to index
    %c2_72 = arith.constant 2 : index
    %c0_73 = arith.constant 0 : index
    %68 = vector.load %arg2[%c0_71, %67, %c2_72, %c0_73] : memref<1x18x18x4xbf16, #tpu.memory_space<vmem>>, vector<1x8x16x4xbf16>
    %69 = vector.shape_cast %68 : vector<1x8x16x4xbf16> to vector<8x16x4xbf16>
    %70 = vector.shape_cast %69 : vector<8x16x4xbf16> to vector<128x4xbf16>
    %c0_74 = arith.constant 0 : index
    %c3 = arith.constant 3 : index
    %c0_75 = arith.constant 0 : index
    %c0_76 = arith.constant 0 : index
    %71 = vector.load %arg3[%c0_74, %c3, %c0_75, %c0_76] : memref<4x4x4x4xbf16, #tpu.memory_space<vmem>>, vector<1x1x4x4xbf16>
    %72 = vector.shape_cast %71 : vector<1x1x4x4xbf16> to vector<4x4xbf16>
    %cst_77 = arith.constant dense<0.000000e+00> : vector<128x4xf32>
    %73 = tpu.matmul %70, %72, %cst_77 {dimension_numbers = #tpu.dot_dimension_numbers<[1], [0], [0], [1], [0, 0, 1, 1], [], []>} : vector<128x4xbf16>, vector<4x4xbf16>, vector<128x4xf32> -> vector<128x4xf32>
    %c0_78 = arith.constant 0 : index
    %c0_79 = arith.constant 0 : index
    %74 = vector.load %arg6[%c0_78, %c0_79] : memref<128x4xf32, #tpu.memory_space<vmem>>, vector<128x4xf32>
    %75 = arith.addf %74, %73 : vector<128x4xf32>
    %c0_80 = arith.constant 0 : index
    %c0_81 = arith.constant 0 : index
    %76 = vector.load %arg6[%c0_80, %c0_81] : memref<128x4xf32, #tpu.memory_space<vmem>>, vector<128x4xf32>
    tpu.vector_store %arg6[%c0_80, %c0_81], %75 {strides = array<i32>} : memref<128x4xf32, #tpu.memory_space<vmem>>, vector<128x4xf32>,
    %c0_i32_82 = arith.constant 0 : i32
    %77 = arith.addi %1, %c0_i32_82 : i32
    %c1_i32_83 = arith.constant 1 : i32
    %78 = arith.addi %77, %c1_i32_83 : i32
    %c0_84 = arith.constant 0 : index
    %79 = arith.index_cast %78 : i32 to index
    %c1_85 = arith.constant 1 : index
    %c0_86 = arith.constant 0 : index
    %80 = vector.load %arg2[%c0_84, %79, %c1_85, %c0_86] : memref<1x18x18x4xbf16, #tpu.memory_space<vmem>>, vector<1x8x16x4xbf16>
    %81 = vector.shape_cast %80 : vector<1x8x16x4xbf16> to vector<8x16x4xbf16>
    %82 = vector.shape_cast %81 : vector<8x16x4xbf16> to vector<128x4xbf16>
    %c2_87 = arith.constant 2 : index
    %c1_88 = arith.constant 1 : index
    %c0_89 = arith.constant 0 : index
    %c0_90 = arith.constant 0 : index
    %83 = vector.load %arg3[%c2_87, %c1_88, %c0_89, %c0_90] : memref<4x4x4x4xbf16, #tpu.memory_space<vmem>>, vector<1x1x4x4xbf16>
    %84 = vector.shape_cast %83 : vector<1x1x4x4xbf16> to vector<4x4xbf16>
    %cst_91 = arith.constant dense<0.000000e+00> : vector<128x4xf32>
    %85 = tpu.matmul %82, %84, %cst_91 {dimension_numbers = #tpu.dot_dimension_numbers<[1], [0], [0], [1], [0, 0, 1, 1], [], []>} : vector<128x4xbf16>, vector<4x4xbf16>, vector<128x4xf32> -> vector<128x4xf32>
    %c0_92 = arith.constant 0 : index
    %c0_93 = arith.constant 0 : index
    %86 = vector.load %arg6[%c0_92, %c0_93] : memref<128x4xf32, #tpu.memory_space<vmem>>, vector<128x4xf32>
    %87 = arith.addf %86, %85 : vector<128x4xf32>
    %c0_94 = arith.constant 0 : index
    %c0_95 = arith.constant 0 : index
    %88 = vector.load %arg6[%c0_94, %c0_95] : memref<128x4xf32, #tpu.memory_space<vmem>>, vector<128x4xf32>
    tpu.vector_store %arg6[%c0_94, %c0_95], %87 {strides = array<i32>} : memref<128x4xf32, #tpu.memory_space<vmem>>, vector<128x4xf32>,
    %c0_i32_96 = arith.constant 0 : i32
    %89 = arith.addi %1, %c0_i32_96 : i32
    %c1_i32_97 = arith.constant 1 : i32
    %90 = arith.addi %89, %c1_i32_97 : i32
    %c0_98 = arith.constant 0 : index
    %91 = arith.index_cast %90 : i32 to index
    %c2_99 = arith.constant 2 : index
    %c0_100 = arith.constant 0 : index
    %92 = vector.load %arg2[%c0_98, %91, %c2_99, %c0_100] : memref<1x18x18x4xbf16, #tpu.memory_space<vmem>>, vector<1x8x16x4xbf16>
    %93 = vector.shape_cast %92 : vector<1x8x16x4xbf16> to vector<8x16x4xbf16>
    %94 = vector.shape_cast %93 : vector<8x16x4xbf16> to vector<128x4xbf16>
    %c2_101 = arith.constant 2 : index
    %c3_102 = arith.constant 3 : index
    %c0_103 = arith.constant 0 : index
    %c0_104 = arith.constant 0 : index
    %95 = vector.load %arg3[%c2_101, %c3_102, %c0_103, %c0_104] : memref<4x4x4x4xbf16, #tpu.memory_space<vmem>>, vector<1x1x4x4xbf16>
    %96 = vector.shape_cast %95 : vector<1x1x4x4xbf16> to vector<4x4xbf16>
    %cst_105 = arith.constant dense<0.000000e+00> : vector<128x4xf32>
    %97 = tpu.matmul %94, %96, %cst_105 {dimension_numbers = #tpu.dot_dimension_numbers<[1], [0], [0], [1], [0, 0, 1, 1], [], []>} : vector<128x4xbf16>, vector<4x4xbf16>, vector<128x4xf32> -> vector<128x4xf32>
    %c0_106 = arith.constant 0 : index
    %c0_107 = arith.constant 0 : index
    %98 = vector.load %arg6[%c0_106, %c0_107] : memref<128x4xf32, #tpu.memory_space<vmem>>, vector<128x4xf32>
    %99 = arith.addf %98, %97 : vector<128x4xf32>
    %c0_108 = arith.constant 0 : index
    %c0_109 = arith.constant 0 : index
    %100 = vector.load %arg6[%c0_108, %c0_109] : memref<128x4xf32, #tpu.memory_space<vmem>>, vector<128x4xf32>
    tpu.vector_store %arg6[%c0_108, %c0_109], %99 {strides = array<i32>} : memref<128x4xf32, #tpu.memory_space<vmem>>, vector<128x4xf32>,
    %c0_110 = arith.constant 0 : index
    %c0_111 = arith.constant 0 : index
    %101 = vector.load %arg6[%c0_110, %c0_111] : memref<128x4xf32, #tpu.memory_space<vmem>>, vector<128x4xf32>
    %102 = vector.broadcast %2 : vector<1x4xf32> to vector<128x4xf32>
    %103 = arith.addf %101, %102 : vector<128x4xf32>
    %c0_112 = arith.constant 0 : index
    %c0_113 = arith.constant 0 : index
    %c1_114 = arith.constant 1 : index
    %c0_115 = arith.constant 0 : index
    %c0_116 = arith.constant 0 : index
    %104 = vector.load %arg5[%c0_112, %c0_113, %c1_114, %c0_115, %c0_116] : memref<1x2x2x128x4xf32, #tpu.memory_space<vmem>>, vector<1x1x1x128x4xf32>
    %105 = vector.shape_cast %104 : vector<1x1x1x128x4xf32> to vector<128x4xf32>
    %106 = vector.shape_cast %103 : vector<128x4xf32> to vector<1x1x1x128x4xf32>
    tpu.vector_store %arg5[%c0_112, %c0_113, %c1_114, %c0_115, %c0_116], %106 {strides = array<i32>} : memref<1x2x2x128x4xf32, #tpu.memory_space<vmem>>, vector<1x1x1x128x4xf32>,
    %c1_i32_117 = arith.constant 1 : i32
    %107 = arith.addi %1, %c1_i32_117 : i32
    %c0_i32_118 = arith.constant 0 : i32
    %108 = arith.addi %107, %c0_i32_118 : i32
    %c0_119 = arith.constant 0 : index
    %109 = arith.index_cast %108 : i32 to index
    %c0_120 = arith.constant 0 : index
    %c0_121 = arith.constant 0 : index
    %110 = vector.load %arg2[%c0_119, %109, %c0_120, %c0_121] : memref<1x18x18x4xbf16, #tpu.memory_space<vmem>>, vector<1x8x16x4xbf16>
    %111 = vector.shape_cast %110 : vector<1x8x16x4xbf16> to vector<8x16x4xbf16>
    %112 = vector.shape_cast %111 : vector<8x16x4xbf16> to vector<128x4xbf16>
    %c1_122 = arith.constant 1 : index
    %c0_123 = arith.constant 0 : index
    %c0_124 = arith.constant 0 : index
    %c0_125 = arith.constant 0 : index
    %113 = vector.load %arg3[%c1_122, %c0_123, %c0_124, %c0_125] : memref<4x4x4x4xbf16, #tpu.memory_space<vmem>>, vector<1x1x4x4xbf16>
    %114 = vector.shape_cast %113 : vector<1x1x4x4xbf16> to vector<4x4xbf16>
    %cst_126 = arith.constant dense<0.000000e+00> : vector<128x4xf32>
    %115 = tpu.matmul %112, %114, %cst_126 {dimension_numbers = #tpu.dot_dimension_numbers<[1], [0], [0], [1], [0, 0, 1, 1], [], []>} : vector<128x4xbf16>, vector<4x4xbf16>, vector<128x4xf32> -> vector<128x4xf32>
    %c0_127 = arith.constant 0 : index
    %c0_128 = arith.constant 0 : index
    %116 = vector.load %arg6[%c0_127, %c0_128] : memref<128x4xf32, #tpu.memory_space<vmem>>, vector<128x4xf32>
    tpu.vector_store %arg6[%c0_127, %c0_128], %115 {strides = array<i32>} : memref<128x4xf32, #tpu.memory_space<vmem>>, vector<128x4xf32>,
    %c1_i32_129 = arith.constant 1 : i32
    %117 = arith.addi %1, %c1_i32_129 : i32
    %c0_i32_130 = arith.constant 0 : i32
    %118 = arith.addi %117, %c0_i32_130 : i32
    %c0_131 = arith.constant 0 : index
    %119 = arith.index_cast %118 : i32 to index
    %c1_132 = arith.constant 1 : index
    %c0_133 = arith.constant 0 : index
    %120 = vector.load %arg2[%c0_131, %119, %c1_132, %c0_133] : memref<1x18x18x4xbf16, #tpu.memory_space<vmem>>, vector<1x8x16x4xbf16>
    %121 = vector.shape_cast %120 : vector<1x8x16x4xbf16> to vector<8x16x4xbf16>
    %122 = vector.shape_cast %121 : vector<8x16x4xbf16> to vector<128x4xbf16>
    %c1_134 = arith.constant 1 : index
    %c2_135 = arith.constant 2 : index
    %c0_136 = arith.constant 0 : index
    %c0_137 = arith.constant 0 : index
    %123 = vector.load %arg3[%c1_134, %c2_135, %c0_136, %c0_137] : memref<4x4x4x4xbf16, #tpu.memory_space<vmem>>, vector<1x1x4x4xbf16>
    %124 = vector.shape_cast %123 : vector<1x1x4x4xbf16> to vector<4x4xbf16>
    %cst_138 = arith.constant dense<0.000000e+00> : vector<128x4xf32>
    %125 = tpu.matmul %122, %124, %cst_138 {dimension_numbers = #tpu.dot_dimension_numbers<[1], [0], [0], [1], [0, 0, 1, 1], [], []>} : vector<128x4xbf16>, vector<4x4xbf16>, vector<128x4xf32> -> vector<128x4xf32>
    %c0_139 = arith.constant 0 : index
    %c0_140 = arith.constant 0 : index
    %126 = vector.load %arg6[%c0_139, %c0_140] : memref<128x4xf32, #tpu.memory_space<vmem>>, vector<128x4xf32>
    %127 = arith.addf %126, %125 : vector<128x4xf32>
    %c0_141 = arith.constant 0 : index
    %c0_142 = arith.constant 0 : index
    %128 = vector.load %arg6[%c0_141, %c0_142] : memref<128x4xf32, #tpu.memory_space<vmem>>, vector<128x4xf32>
    tpu.vector_store %arg6[%c0_141, %c0_142], %127 {strides = array<i32>} : memref<128x4xf32, #tpu.memory_space<vmem>>, vector<128x4xf32>,
    %c1_i32_143 = arith.constant 1 : i32
    %129 = arith.addi %1, %c1_i32_143 : i32
    %c1_i32_144 = arith.constant 1 : i32
    %130 = arith.addi %129, %c1_i32_144 : i32
    %c0_145 = arith.constant 0 : index
    %131 = arith.index_cast %130 : i32 to index
    %c0_146 = arith.constant 0 : index
    %c0_147 = arith.constant 0 : index
    %132 = vector.load %arg2[%c0_145, %131, %c0_146, %c0_147] : memref<1x18x18x4xbf16, #tpu.memory_space<vmem>>, vector<1x8x16x4xbf16>
    %133 = vector.shape_cast %132 : vector<1x8x16x4xbf16> to vector<8x16x4xbf16>
    %134 = vector.shape_cast %133 : vector<8x16x4xbf16> to vector<128x4xbf16>
    %c3_148 = arith.constant 3 : index
    %c0_149 = arith.constant 0 : index
    %c0_150 = arith.constant 0 : index
    %c0_151 = arith.constant 0 : index
    %135 = vector.load %arg3[%c3_148, %c0_149, %c0_150, %c0_151] : memref<4x4x4x4xbf16, #tpu.memory_space<vmem>>, vector<1x1x4x4xbf16>
    %136 = vector.shape_cast %135 : vector<1x1x4x4xbf16> to vector<4x4xbf16>
    %cst_152 = arith.constant dense<0.000000e+00> : vector<128x4xf32>
    %137 = tpu.matmul %134, %136, %cst_152 {dimension_numbers = #tpu.dot_dimension_numbers<[1], [0], [0], [1], [0, 0, 1, 1], [], []>} : vector<128x4xbf16>, vector<4x4xbf16>, vector<128x4xf32> -> vector<128x4xf32>
    %c0_153 = arith.constant 0 : index
    %c0_154 = arith.constant 0 : index
    %138 = vector.load %arg6[%c0_153, %c0_154] : memref<128x4xf32, #tpu.memory_space<vmem>>, vector<128x4xf32>
    %139 = arith.addf %138, %137 : vector<128x4xf32>
    %c0_155 = arith.constant 0 : index
    %c0_156 = arith.constant 0 : index
    %140 = vector.load %arg6[%c0_155, %c0_156] : memref<128x4xf32, #tpu.memory_space<vmem>>, vector<128x4xf32>
    tpu.vector_store %arg6[%c0_155, %c0_156], %139 {strides = array<i32>} : memref<128x4xf32, #tpu.memory_space<vmem>>, vector<128x4xf32>,
    %c1_i32_157 = arith.constant 1 : i32
    %141 = arith.addi %1, %c1_i32_157 : i32
    %c1_i32_158 = arith.constant 1 : i32
    %142 = arith.addi %141, %c1_i32_158 : i32
    %c0_159 = arith.constant 0 : index
    %143 = arith.index_cast %142 : i32 to index
    %c1_160 = arith.constant 1 : index
    %c0_161 = arith.constant 0 : index
    %144 = vector.load %arg2[%c0_159, %143, %c1_160, %c0_161] : memref<1x18x18x4xbf16, #tpu.memory_space<vmem>>, vector<1x8x16x4xbf16>
    %145 = vector.shape_cast %144 : vector<1x8x16x4xbf16> to vector<8x16x4xbf16>
    %146 = vector.shape_cast %145 : vector<8x16x4xbf16> to vector<128x4xbf16>
    %c3_162 = arith.constant 3 : index
    %c2_163 = arith.constant 2 : index
    %c0_164 = arith.constant 0 : index
    %c0_165 = arith.constant 0 : index
    %147 = vector.load %arg3[%c3_162, %c2_163, %c0_164, %c0_165] : memref<4x4x4x4xbf16, #tpu.memory_space<vmem>>, vector<1x1x4x4xbf16>
    %148 = vector.shape_cast %147 : vector<1x1x4x4xbf16> to vector<4x4xbf16>
    %cst_166 = arith.constant dense<0.000000e+00> : vector<128x4xf32>
    %149 = tpu.matmul %146, %148, %cst_166 {dimension_numbers = #tpu.dot_dimension_numbers<[1], [0], [0], [1], [0, 0, 1, 1], [], []>} : vector<128x4xbf16>, vector<4x4xbf16>, vector<128x4xf32> -> vector<128x4xf32>
    %c0_167 = arith.constant 0 : index
    %c0_168 = arith.constant 0 : index
    %150 = vector.load %arg6[%c0_167, %c0_168] : memref<128x4xf32, #tpu.memory_space<vmem>>, vector<128x4xf32>
    %151 = arith.addf %150, %149 : vector<128x4xf32>
    %c0_169 = arith.constant 0 : index
    %c0_170 = arith.constant 0 : index
    %152 = vector.load %arg6[%c0_169, %c0_170] : memref<128x4xf32, #tpu.memory_space<vmem>>, vector<128x4xf32>
    tpu.vector_store %arg6[%c0_169, %c0_170], %151 {strides = array<i32>} : memref<128x4xf32, #tpu.memory_space<vmem>>, vector<128x4xf32>,
    %c0_171 = arith.constant 0 : index
    %c0_172 = arith.constant 0 : index
    %153 = vector.load %arg6[%c0_171, %c0_172] : memref<128x4xf32, #tpu.memory_space<vmem>>, vector<128x4xf32>
    %154 = vector.broadcast %2 : vector<1x4xf32> to vector<128x4xf32>
    %155 = arith.addf %153, %154 : vector<128x4xf32>
    %c0_173 = arith.constant 0 : index
    %c1_174 = arith.constant 1 : index
    %c0_175 = arith.constant 0 : index
    %c0_176 = arith.constant 0 : index
    %c0_177 = arith.constant 0 : index
    %156 = vector.load %arg5[%c0_173, %c1_174, %c0_175, %c0_176, %c0_177] : memref<1x2x2x128x4xf32, #tpu.memory_space<vmem>>, vector<1x1x1x128x4xf32>
    %157 = vector.shape_cast %156 : vector<1x1x1x128x4xf32> to vector<128x4xf32>
    %158 = vector.shape_cast %155 : vector<128x4xf32> to vector<1x1x1x128x4xf32>
    tpu.vector_store %arg5[%c0_173, %c1_174, %c0_175, %c0_176, %c0_177], %158 {strides = array<i32>} : memref<1x2x2x128x4xf32, #tpu.memory_space<vmem>>, vector<1x1x1x128x4xf32>,
    %c1_i32_178 = arith.constant 1 : i32
    %159 = arith.addi %1, %c1_i32_178 : i32
    %c0_i32_179 = arith.constant 0 : i32
    %160 = arith.addi %159, %c0_i32_179 : i32
    %c0_180 = arith.constant 0 : index
    %161 = arith.index_cast %160 : i32 to index
    %c1_181 = arith.constant 1 : index
    %c0_182 = arith.constant 0 : index
    %162 = vector.load %arg2[%c0_180, %161, %c1_181, %c0_182] : memref<1x18x18x4xbf16, #tpu.memory_space<vmem>>, vector<1x8x16x4xbf16>
    %163 = vector.shape_cast %162 : vector<1x8x16x4xbf16> to vector<8x16x4xbf16>
    %164 = vector.shape_cast %163 : vector<8x16x4xbf16> to vector<128x4xbf16>
    %c1_183 = arith.constant 1 : index
    %c1_184 = arith.constant 1 : index
    %c0_185 = arith.constant 0 : index
    %c0_186 = arith.constant 0 : index
    %165 = vector.load %arg3[%c1_183, %c1_184, %c0_185, %c0_186] : memref<4x4x4x4xbf16, #tpu.memory_space<vmem>>, vector<1x1x4x4xbf16>
    %166 = vector.shape_cast %165 : vector<1x1x4x4xbf16> to vector<4x4xbf16>
    %cst_187 = arith.constant dense<0.000000e+00> : vector<128x4xf32>
    %167 = tpu.matmul %164, %166, %cst_187 {dimension_numbers = #tpu.dot_dimension_numbers<[1], [0], [0], [1], [0, 0, 1, 1], [], []>} : vector<128x4xbf16>, vector<4x4xbf16>, vector<128x4xf32> -> vector<128x4xf32>
    %c0_188 = arith.constant 0 : index
    %c0_189 = arith.constant 0 : index
    %168 = vector.load %arg6[%c0_188, %c0_189] : memref<128x4xf32, #tpu.memory_space<vmem>>, vector<128x4xf32>
    tpu.vector_store %arg6[%c0_188, %c0_189], %167 {strides = array<i32>} : memref<128x4xf32, #tpu.memory_space<vmem>>, vector<128x4xf32>,
    %c1_i32_190 = arith.constant 1 : i32
    %169 = arith.addi %1, %c1_i32_190 : i32
    %c0_i32_191 = arith.constant 0 : i32
    %170 = arith.addi %169, %c0_i32_191 : i32
    %c0_192 = arith.constant 0 : index
    %171 = arith.index_cast %170 : i32 to index
    %c2_193 = arith.constant 2 : index
    %c0_194 = arith.constant 0 : index
    %172 = vector.load %arg2[%c0_192, %171, %c2_193, %c0_194] : memref<1x18x18x4xbf16, #tpu.memory_space<vmem>>, vector<1x8x16x4xbf16>
    %173 = vector.shape_cast %172 : vector<1x8x16x4xbf16> to vector<8x16x4xbf16>
    %174 = vector.shape_cast %173 : vector<8x16x4xbf16> to vector<128x4xbf16>
    %c1_195 = arith.constant 1 : index
    %c3_196 = arith.constant 3 : index
    %c0_197 = arith.constant 0 : index
    %c0_198 = arith.constant 0 : index
    %175 = vector.load %arg3[%c1_195, %c3_196, %c0_197, %c0_198] : memref<4x4x4x4xbf16, #tpu.memory_space<vmem>>, vector<1x1x4x4xbf16>
    %176 = vector.shape_cast %175 : vector<1x1x4x4xbf16> to vector<4x4xbf16>
    %cst_199 = arith.constant dense<0.000000e+00> : vector<128x4xf32>
    %177 = tpu.matmul %174, %176, %cst_199 {dimension_numbers = #tpu.dot_dimension_numbers<[1], [0], [0], [1], [0, 0, 1, 1], [], []>} : vector<128x4xbf16>, vector<4x4xbf16>, vector<128x4xf32> -> vector<128x4xf32>
    %c0_200 = arith.constant 0 : index
    %c0_201 = arith.constant 0 : index
    %178 = vector.load %arg6[%c0_200, %c0_201] : memref<128x4xf32, #tpu.memory_space<vmem>>, vector<128x4xf32>
    %179 = arith.addf %178, %177 : vector<128x4xf32>
    %c0_202 = arith.constant 0 : index
    %c0_203 = arith.constant 0 : index
    %180 = vector.load %arg6[%c0_202, %c0_203] : memref<128x4xf32, #tpu.memory_space<vmem>>, vector<128x4xf32>
    tpu.vector_store %arg6[%c0_202, %c0_203], %179 {strides = array<i32>} : memref<128x4xf32, #tpu.memory_space<vmem>>, vector<128x4xf32>,
    %c1_i32_204 = arith.constant 1 : i32
    %181 = arith.addi %1, %c1_i32_204 : i32
    %c1_i32_205 = arith.constant 1 : i32
    %182 = arith.addi %181, %c1_i32_205 : i32
    %c0_206 = arith.constant 0 : index
    %183 = arith.index_cast %182 : i32 to index
    %c1_207 = arith.constant 1 : index
    %c0_208 = arith.constant 0 : index
    %184 = vector.load %arg2[%c0_206, %183, %c1_207, %c0_208] : memref<1x18x18x4xbf16, #tpu.memory_space<vmem>>, vector<1x8x16x4xbf16>
    %185 = vector.shape_cast %184 : vector<1x8x16x4xbf16> to vector<8x16x4xbf16>
    %186 = vector.shape_cast %185 : vector<8x16x4xbf16> to vector<128x4xbf16>
    %c3_209 = arith.constant 3 : index
    %c1_210 = arith.constant 1 : index
    %c0_211 = arith.constant 0 : index
    %c0_212 = arith.constant 0 : index
    %187 = vector.load %arg3[%c3_209, %c1_210, %c0_211, %c0_212] : memref<4x4x4x4xbf16, #tpu.memory_space<vmem>>, vector<1x1x4x4xbf16>
    %188 = vector.shape_cast %187 : vector<1x1x4x4xbf16> to vector<4x4xbf16>
    %cst_213 = arith.constant dense<0.000000e+00> : vector<128x4xf32>
    %189 = tpu.matmul %186, %188, %cst_213 {dimension_numbers = #tpu.dot_dimension_numbers<[1], [0], [0], [1], [0, 0, 1, 1], [], []>} : vector<128x4xbf16>, vector<4x4xbf16>, vector<128x4xf32> -> vector<128x4xf32>
    %c0_214 = arith.constant 0 : index
    %c0_215 = arith.constant 0 : index
    %190 = vector.load %arg6[%c0_214, %c0_215] : memref<128x4xf32, #tpu.memory_space<vmem>>, vector<128x4xf32>
    %191 = arith.addf %190, %189 : vector<128x4xf32>
    %c0_216 = arith.constant 0 : index
    %c0_217 = arith.constant 0 : index
    %192 = vector.load %arg6[%c0_216, %c0_217] : memref<128x4xf32, #tpu.memory_space<vmem>>, vector<128x4xf32>
    tpu.vector_store %arg6[%c0_216, %c0_217], %191 {strides = array<i32>} : memref<128x4xf32, #tpu.memory_space<vmem>>, vector<128x4xf32>,
    %c1_i32_218 = arith.constant 1 : i32
    %193 = arith.addi %1, %c1_i32_218 : i32
    %c1_i32_219 = arith.constant 1 : i32
    %194 = arith.addi %193, %c1_i32_219 : i32
    %c0_220 = arith.constant 0 : index
    %195 = arith.index_cast %194 : i32 to index
    %c2_221 = arith.constant 2 : index
    %c0_222 = arith.constant 0 : index
    %196 = vector.load %arg2[%c0_220, %195, %c2_221, %c0_222] : memref<1x18x18x4xbf16, #tpu.memory_space<vmem>>, vector<1x8x16x4xbf16>
    %197 = vector.shape_cast %196 : vector<1x8x16x4xbf16> to vector<8x16x4xbf16>
    %198 = vector.shape_cast %197 : vector<8x16x4xbf16> to vector<128x4xbf16>
    %c3_223 = arith.constant 3 : index
    %c3_224 = arith.constant 3 : index
    %c0_225 = arith.constant 0 : index
    %c0_226 = arith.constant 0 : index
    %199 = vector.load %arg3[%c3_223, %c3_224, %c0_225, %c0_226] : memref<4x4x4x4xbf16, #tpu.memory_space<vmem>>, vector<1x1x4x4xbf16>
    %200 = vector.shape_cast %199 : vector<1x1x4x4xbf16> to vector<4x4xbf16>
    %cst_227 = arith.constant dense<0.000000e+00> : vector<128x4xf32>
    %201 = tpu.matmul %198, %200, %cst_227 {dimension_numbers = #tpu.dot_dimension_numbers<[1], [0], [0], [1], [0, 0, 1, 1], [], []>} : vector<128x4xbf16>, vector<4x4xbf16>, vector<128x4xf32> -> vector<128x4xf32>
    %c0_228 = arith.constant 0 : index
    %c0_229 = arith.constant 0 : index
    %202 = vector.load %arg6[%c0_228, %c0_229] : memref<128x4xf32, #tpu.memory_space<vmem>>, vector<128x4xf32>
    %203 = arith.addf %202, %201 : vector<128x4xf32>
    %c0_230 = arith.constant 0 : index
    %c0_231 = arith.constant 0 : index
    %204 = vector.load %arg6[%c0_230, %c0_231] : memref<128x4xf32, #tpu.memory_space<vmem>>, vector<128x4xf32>
    tpu.vector_store %arg6[%c0_230, %c0_231], %203 {strides = array<i32>} : memref<128x4xf32, #tpu.memory_space<vmem>>, vector<128x4xf32>,
    %c0_232 = arith.constant 0 : index
    %c0_233 = arith.constant 0 : index
    %205 = vector.load %arg6[%c0_232, %c0_233] : memref<128x4xf32, #tpu.memory_space<vmem>>, vector<128x4xf32>
    %206 = vector.broadcast %2 : vector<1x4xf32> to vector<128x4xf32>
    %207 = arith.addf %205, %206 : vector<128x4xf32>
    %c0_234 = arith.constant 0 : index
    %c1_235 = arith.constant 1 : index
    %c1_236 = arith.constant 1 : index
    %c0_237 = arith.constant 0 : index
    %c0_238 = arith.constant 0 : index
    %208 = vector.load %arg5[%c0_234, %c1_235, %c1_236, %c0_237, %c0_238] : memref<1x2x2x128x4xf32, #tpu.memory_space<vmem>>, vector<1x1x1x128x4xf32>
    %209 = vector.shape_cast %208 : vector<1x1x1x128x4xf32> to vector<128x4xf32>
    %210 = vector.shape_cast %207 : vector<128x4xf32> to vector<1x1x1x128x4xf32>
    tpu.vector_store %arg5[%c0_234, %c1_235, %c1_236, %c0_237, %c0_238], %210 {strides = array<i32>} : memref<1x2x2x128x4xf32, #tpu.memory_space<vmem>>, vector<1x1x1x128x4xf32>,
    return
  }
  func.func @transform_0(%arg0: i32, %arg1: i32) -> (i32, i32, i32, i32) {
    %c0_i32 = arith.constant 0 : i32
    %c0_i32_0 = arith.constant 0 : i32
    %c0_i32_1 = arith.constant 0 : i32
    %c0_i32_2 = arith.constant 0 : i32
    return %arg0, %c0_i32, %c0_i32_0, %c0_i32_1 : i32, i32, i32, i32
  }
  func.func @transform_1(%arg0: i32, %arg1: i32) -> (i32, i32, i32, i32) {
    %c0_i32 = arith.constant 0 : i32
    %c0_i32_0 = arith.constant 0 : i32
    %c0_i32_1 = arith.constant 0 : i32
    %c0_i32_2 = arith.constant 0 : i32
    %c0_i32_3 = arith.constant 0 : i32
    return %c0_i32, %c0_i32_0, %c0_i32_1, %c0_i32_2 : i32, i32, i32, i32
  }
  func.func @transform_2(%arg0: i32, %arg1: i32) -> (i32, i32) {
    %c0_i32 = arith.constant 0 : i32
    %c0_i32_0 = arith.constant 0 : i32
    %c0_i32_1 = arith.constant 0 : i32
    return %c0_i32, %c0_i32_0 : i32, i32
  }
  func.func @transform_3(%arg0: i32, %arg1: i32) -> (i32, i32, i32, i32, i32) {
    %c0_i32 = arith.constant 0 : i32
    %c0_i32_0 = arith.constant 0 : i32
    %c0_i32_1 = arith.constant 0 : i32
    %c0_i32_2 = arith.constant 0 : i32
    return %arg0, %c0_i32, %c0_i32_0, %arg1, %c0_i32_1 : i32, i32, i32, i32, i32
  }
}

</mosaic_0001>

<bundles_post_ra>
// kernel: upsample_forward.1
= control target key start
LH: loop header
LB: loop body
LE: loop exit
PB: predicated region body
PF: predicated region fallthrough
CT: control target
= control target key end

     0   :  { %s6121_s12 = smov 0   ;;  %s6123_s13 = smov 0   ;;  %s8352_s0 = inlined_call_operand.vmem [shape: bf16[2,18,18,4], index: 0, kind: input, shape index: {}]   ;;  %s8353_s1 = inlined_call_operand.vmem [shape: bf16[4,4,4,4], index: 1, kind: input, shape index: {}]   ;;  %s8354_s2 = inlined_call_operand.vmem [shape: f32[1,4], index: 2, kind: input, shape index: {}]   ;;  %s8355_s3 = inlined_call_operand.vmem [shape: f32[2,2,2,256,4], index: 3, kind: output, shape index: {}]  }
   0x1   :  { %s6125_s14 = smov 0   ;;  %s6127_s15 = smov 0  }
   0x2   :  { %s6129_s16 = smov 0   ;;  %s6131_s17 = smov 0  }
   0x3   :  { %s6133_s18 = smov 0  }
   0x4 LB: > { %s22_s19 = sadd.s32 1, %s6091_s16  ;;  %s25_s20 = sadd.s32 1, %s6095_s17  ;;  %s6099_s18 = sphi %s6133_s18, %s13_s18   ;;  %s6095_s17 = sphi %s6131_s17, %s8366_s17   ;;  %s6091_s16 = sphi %s6129_s16, %s8365_s16   ;;  %s6087_s15 = sphi %s6127_s15, %s8364_s15   ;;  %s6083_s14 = sphi %s6125_s14, %s8363_s14   ;;  %s6079_s13 = sphi %s6123_s13, %s8362_s13   ;;  %s6075_s12 = sphi %s6121_s12, %s8361_s12  }
   0x5   : > { %p23_p0 = scmp.ge.s32.totalorder %s22_s19, 2  ;;  %s5315_s21 = sadd.s32 4294967295, %s6099_s18  }
   0x6   : > { %p112_p1 = scmp.ne.s32.totalorder %s6079_s13, %s6075_s12  ;;  %p113_p2 = scmp.eq.s32.totalorder %s5315_s21, 3 }
   0x7   : > { %s8368_s19 = smov (%p23_p0, %s22_s19), 0  ;;  %s8370_s20 = smov (!%p23_p0, %s25_s20), %s6095_s17 }
   0x8   : > { %s98_s22 = ssub.s32 %s6091_s16, %s8368_s19  ;;  %p27_p3 = scmp.ge.s32.totalorder %s8370_s20, 2 }
   0x9   : > { %p5319_p4 = scmp.ge.s32.totalorder %s6099_s18, 1  ;;  %p6167_p5 = por %p113_p2, %p112_p1 }
   0xa   : > { %p151_p6 = scmp.lt.s32.totalorder %s6099_s18, 5  ;;  %s8372_s20 = smov (%p27_p3, %s8370_s20), 0 }
   0xb   : > { %s97_s24 = ssub.s32 %s6095_s17, %s8372_s20  ;;  %s102_s26 = sadd.s32 1, %s6079_s13 }
   0xc   : > { %p152_p7 = pnand %p5319_p4, %p151_p6  ;;  %s99_s25 = sor.u32 %s98_s22, %s97_s24 }
   0xd   : > { %p100_p8 = scmp.eq.s32.totalorder %s99_s25, 0  ;;  %p174_p9 = scmp.lt.s32.totalorder (!%p152_p7), %s6087_s15, 1 }
   0xe   : > { %155 = sbr.rel (%p152_p7) target bundleno = 733 (0x2dd), region = 32 }
   0xf   : > { %s6178_s27 = scalar_select %p100_p8, %s6079_s13, %s102_s26  }
  0x10   : > { %s5950_s10 = smul.u32 (!%p152_p7), 96, %s6083_s14  ;;  %s171_s26 = sand.u32 (!%p152_p7), 1, %s6075_s12  }
  0x11   : > { %s6717_s12 = sshll.u32 (!%p152_p7), %s171_s26, 9 }
  0x12   : > { %s6751_s30 = scalar_lea.vmem (!%p152_p7), [#allocation3], %s6717_s12 }
  0x13   : > { %v202_v0 = vld [vmem:[%s8353_s1] sm:$0x3]  ;;  %vm268_vm0 = vcmask 1041408   ;;  %v5466_v2 = vld [vmem:[%s8353_s1 + $0x2] sm:$0x3]  ;;  %s175_s7 = scalar_select %p174_p9, %s6087_s15, 1 }
  0x14   : > { %v270_v1 = vsel %vm268_vm0, %v202_v0, 0  ;;  %v5392_v3 = vld [vmem:[%s8353_s1 + $0x10] sm:$0x3]  ;;  %v1576_v4 = vsel %vm268_vm0, %v5466_v2, 0  ;;  %v5365_v6 = vld [vmem:[%s8353_s1 + $0x4] sm:$0x3] }
  0x15   : > { %279 = vmatpush.bf16.msra.mxu0 %v270_v1  ;;  %v793_v5 = vsel %vm268_vm0, %v5392_v3, 0  ;;  %v607_v7 = vsel %vm268_vm0, %v5365_v6, 0  ;;  %s5983_s11 = smul.u32 216, %s175_s7  ;;  %v5483_v8 = vld [vmem:[%s8353_s1 + $0x6] sm:$0x3]  ;;  %vm243_vm1 = vcmask 31744  }
  0x16   : > { %802 = vmatpush.bf16.msra.mxu2 %v793_v5  ;;  %616 = vmatpush.bf16.msra.mxu1 %v607_v7  ;;  %v5457_v9 = vld [vmem:[%s8353_s1 + $0x14] sm:$0x3]  ;;  %v1801_v10 = vsel %vm268_vm0, %v5483_v8, 0  ;;  %v5516_v12 = vld [vmem:[%s8353_s1 + $0x12] sm:$0x3]  ;;  %vm1691_vm5 = vcmask 1042432  }
  0x17   : > { %v1159_v11 = vsel %vm268_vm0, %v5457_v9, 0  ;;  %v5557_v13 = vld [vmem:[%s8353_s1 + $0x16] sm:$0x3]  ;;  %s178_s6 = scalar_lea.vmem %s8352_s0, %s5983_s11  ;;  %v2167_v14 = vsel %vm268_vm0, %v5516_v12, 0  ;;  %vm361_vm2 = vsmask.f32 3328 }
  0x18   : > { %1168 = vmatpush.bf16.msra.mxu3 %v1159_v11  ;;  %v2421_v15 = vsel %vm268_vm0, %v5557_v13, 0  ;;  %s6218_s7 = scalar_lea.vmem %s178_s6, %s5950_s10  ;;  %vm362_vm3 = vsmask.f32 7440  ;;  %vm1692_vm6 = vcmask 1046532   ;;  %s5945_s4 = sshll.u32 (%p6167_p5), %s6083_s14, 4 }
  0x19   : > { %1585 = vmatpush.bf16.msrb.mxu0 %v1576_v4  ;;  %v5951_v16 = vld [vmem:[%s6218_s7] sm:$0xff]  ;;  %v5959_v17 = vld [vmem:[%s6218_s7 + $0xc] sm:$0xff]  ;;  %v339_v20 = vld [vmem:[%s6218_s7 + $0x8] sm:$0x1]  ;;  %s5946_s5 = sshll.u32 (%p6167_p5), %s6087_s15, 7 }
  0x1a   : > { %1810 = vmatpush.bf16.msrb.mxu1 %v1801_v10  ;;  %2176 = vmatpush.bf16.msrb.mxu2 %v2167_v14  ;;  %v337_v18 = vld [vmem:[%s6218_s7] sm:$0xf]  ;;  %v338_v19 = vld [vmem:[%s6218_s7 + $0x4] sm:$0xf]  ;;  %v384_v25 = vshll.u32 %v339_v20, 16  ;;  %vm6233_vm4 = vmor %vm361_vm2, %vm362_vm3  ;;  %s4952_s6 = sadd.s32 (%p6167_p5), %s5946_s5, %s5945_s4 }
  0x1b   : > { %v365_v21 = vshrl.u32 %v337_v18, 16  ;;  %v368_v22 = vshll.u32 %v337_v18, 16  ;;  %5357 = vmatmul.msk.bf16.vlgmr.msra.gmra.mxu0 %vm243_vm1, %v5951_v16  ;;  %5425 = vmatmul.msk.bf16.vlgmr.msra.gmra.mxu2 %vm243_vm1, %v5959_v17  ;;  %v374_v23 = vshll.u32 %v338_v19, 16  ;;  %v378_v24 = vshrl.u32 %v338_v19, 16  ;;  %v5433_v26 = vld [vmem:[%s6218_s7 + $0xc] sm:$0xf]  ;;  %vm6446_vm7 = vmor %vm1691_vm5, %vm1692_vm6 }
  0x1c   : > { %2430 = vmatpush.bf16.msrb.mxu3 %v2421_v15  ;;  %v5434_v29 = vld [vmem:[%s6218_s7 + $0x10] sm:$0xf]  ;;  %v5435_v30 = vld [vmem:[%s6218_s7 + $0x14] sm:$0x1]  ;;  %v917_v33 = vshrl.u32 %v5433_v26, 16  ;;  %v920_v35 = vshll.u32 %v5433_v26, 16 }
  0x1d   : > { %v367_v27 = vrot.slane %v365_v21, 4  ;;  %v370_v28 = vrot.slane %v368_v22, 5  ;;  %v376_v31 = vrot.slane %v374_v23, 5  ;;  %v380_v32 = vrot.slane %v378_v24, 4  ;;  %v340_v38 = vld [vmem:[%s6218_s7 + $0xc] sm:$0xf] }
  0x1e   : > { %v926_v36 = vshll.u32 %v5434_v29, 16  ;;  %v930_v37 = vshrl.u32 %v5434_v29, 16  ;;  %v386_v41 = vrot.slane %v384_v25, 5  ;;  %v919_v42 = vrot.slane %v917_v33, 4  ;;  %v341_v44 = vld [vmem:[%s6218_s7 + $0x10] sm:$0xf] }
  0x1f   : > { %v371_v34 = vor.u32 %v370_v28, %v367_v27  ;;  %v381_v40 = vor.u32 %v380_v32, %v376_v31  ;;  %v936_v43 = vshll.u32 %v5435_v30, 16  ;;  %v922_v46 = vrot.slane %v920_v35, 5  ;;  %v342_v56 = vld [vmem:[%s6218_s7 + $0x14] sm:$0x1]  ;;  %v5436_v58 = vld [vmem:[%s6218_s7 + $0x18] sm:$0xf] }
  0x20   : > { %v928_v47 = vrot.slane %v926_v36, 5  ;;  %v932_v48 = vrot.slane %v930_v37, 4  ;;  %v389_v51 = vshrl.u32 %v340_v38, 16  ;;  %v392_v52 = vshll.u32 %v340_v38, 16  ;;  %v5437_v6 = vld [vmem:[%s6218_s7 + $0x1c] sm:$0xf] }
  0x21   : > { %v372_v45 = vrot.slane %v371_v34, 4  ;;  %v382_v49 = vrot.slane %v381_v40, 4  ;;  %v938_v50 = vrot.slane %v936_v43, 5  ;;  %v923_v54 = vor.u32 %v922_v46, %v919_v42  ;;  %v5952_v12 = vld [vmem:[%s6218_s7 + $0xc] sm:$0xff]  ;;  %v5960_v15 = vld [vmem:[%s6218_s7 + $0x18] sm:$0xff]  ;;  %s5947_s8 = sshll.u32 (%p6167_p5), %s4952_s6, 3 }
  0x22   : > { %v933_v55 = vor.u32 %v932_v48, %v928_v47  ;;  %v398_v57 = vshll.u32 %v341_v44, 16  ;;  %v391_v61 = vrot.slane %v389_v51, 4  ;;  %v394_v62 = vrot.slane %v392_v52, 5  ;;  %v5438_v17 = vld [vmem:[%s6218_s7 + $0x20] sm:$0x1]  ;;  %s8203_s10 = scalar_lea.vmem (%p6167_p5), %s8355_s3, %s5947_s8 }
  0x23   : > { %v377_v53 = vsel %vm6233_vm4, %v372_v45, %v376_v31  ;;  %v387_v59 = vsel %vm6233_vm4, %v382_v49, %v386_v41  ;;  %v924_v0 = vrot.slane %v923_v54, 4  ;;  %v402_v4 = vshrl.u32 %v341_v44, 16  ;;  %v343_v22 = vld [vmem:[%s6218_s7 + $0x18] sm:$0xf]  ;;  %v344_v30 = vld [vmem:[%s6218_s7 + $0x1c] sm:$0xf] }
  0x24   : > { %v558_v60 = vunpack.c.l.b16 %v377_v53  ;;  %v559_v63 = vunpack.c.l.b16 %v387_v59  ;;  %v934_v1 = vrot.slane %v933_v55, 4  ;;  %v400_v2 = vrot.slane %v398_v57, 5  ;;  %v5439_v43 = vld [vmem:[%s6218_s7 + $0x24] sm:$0xf]  ;;  %v5440_v44 = vld [vmem:[%s6218_s7 + $0x28] sm:$0xf] }
  0x25   : > { %v395_v3 = vor.u32 %v394_v62, %v391_v61  ;;  %v408_v5 = vshll.u32 %v342_v56, 16  ;;  %v941_v7 = vshrl.u32 %v5436_v58, 16  ;;  %v929_v9 = vsel %vm6233_vm4, %v924_v0, %v928_v47  ;;  %v345_v57 = vld [vmem:[%s6218_s7 + $0x20] sm:$0x1] }
  0x26   : > { %v574_v8 = vpack.c.b16 %v559_v63, %v558_v60  ;;  %v939_v10 = vsel %vm6233_vm4, %v934_v1, %v938_v50  ;;  %v944_v11 = vshll.u32 %v5436_v58, 16  ;;  %v1110_v13 = vunpack.c.l.b16 %v929_v9  ;;  %v347_v9 = vld [vmem:[%s6218_s7 + $0x28] sm:$0xf] }
  0x27   : > { %v1111_v14 = vunpack.c.l.b16 %v939_v10  ;;  %v404_v16 = vrot.slane %v402_v4, 4  ;;  %v396_v18 = vrot.slane %v395_v3, 4  ;;  %v943_v19 = vrot.slane %v941_v7, 4  ;;  %v5441_v4 = vld [vmem:[%s6218_s7 + $0x2c] sm:$0x1]  ;;  %v5953_v7 = vld [vmem:[%s6218_s7 + $0x18] sm:$0xff] }
  0x28   : > { %5366 = vmatmul.msk.bf16.vlgmr.msra.gmra.mxu1 %vm243_vm1, %v574_v8  ;;  %v946_v20 = vrot.slane %v944_v11, 5  ;;  %v950_v21 = vshll.u32 %v5437_v6, 16  ;;  %v410_v25 = vrot.slane %v408_v5, 5  ;;  %v954_v26 = vshrl.u32 %v5437_v6, 16  ;;  %v346_v6 = vld [vmem:[%s6218_s7 + $0x24] sm:$0xf] }
  0x29   : > { %v1126_v23 = vpack.c.b16 %v1111_v14, %v1110_v13  ;;  %v405_v24 = vor.u32 %v404_v16, %v400_v2  ;;  %v960_v29 = vshll.u32 %v5438_v17, 16  ;;  %v413_v33 = vshrl.u32 %v343_v22, 16  ;;  %v5961_v10 = vld [vmem:[%s6218_s7 + $0x24] sm:$0xff] }
  0x2a   : > { %v947_v27 = vor.u32 %v946_v20, %v943_v19  ;;  %v952_v28 = vrot.slane %v950_v21, 5  ;;  %v956_v32 = vrot.slane %v954_v26, 4  ;;  %v416_v34 = vshll.u32 %v343_v22, 16  ;;  %v5442_v21 = vld [vmem:[%s6218_s7 + $0x30] sm:$0xf] }
  0x2b   : > { %5358 = vmatmul.msk.bf16.gmra.mxu0 %vm243_vm1, %v5952_v12  ;;  %5458 = vmatmul.msk.bf16.vlgmr.msra.gmra.mxu3 %vm243_vm1, %v1126_v23  ;;  %v406_v31 = vrot.slane %v405_v24, 4  ;;  %v401_v35 = vsel %vm6233_vm4, %v396_v18, %v400_v2  ;;  %v962_v37 = vrot.slane %v960_v29, 5  ;;  %v422_v41 = vshll.u32 %v344_v30, 16 }
  0x2c   : > { %5426 = vmatmul.msk.bf16.gmra.mxu2 %vm243_vm1, %v5960_v15  ;;  %v948_v36 = vrot.slane %v947_v27, 4  ;;  %v957_v40 = vor.u32 %v956_v32, %v952_v28  ;;  %v426_v42 = vshrl.u32 %v344_v30, 16  ;;  %v560_v45 = vunpack.c.l.b16 %v401_v35  ;;  %v348_v30 = vld [vmem:[%s6218_s7 + $0x2c] sm:$0x1] }
  0x2d   : > { %v411_v38 = vsel %vm6233_vm4, %v406_v31, %v410_v25  ;;  %v415_v47 = vrot.slane %v413_v33, 4  ;;  %v418_v48 = vrot.slane %v416_v34, 5  ;;  %v965_v51 = vshrl.u32 %v5439_v43, 16  ;;  %v5443_v25 = vld [vmem:[%s6218_s7 + $0x34] sm:$0xf] }
  0x2e   : > { %v958_v46 = vrot.slane %v957_v40, 4  ;;  %v561_v49 = vunpack.c.l.b16 %v411_v38  ;;  %v953_v50 = vsel %vm6233_vm4, %v948_v36, %v952_v28  ;;  %v968_v52 = vshll.u32 %v5439_v43, 16 }
  0x2f   : > { %v424_v54 = vrot.slane %v422_v41, 5  ;;  %v428_v55 = vrot.slane %v426_v42, 4  ;;  %v974_v56 = vshll.u32 %v5440_v44, 16  ;;  %v1112_v58 = vunpack.c.l.b16 %v953_v50 }
  0x30   : > { %v963_v53 = vsel %vm6233_vm4, %v958_v46, %v962_v37  ;;  %v419_v60 = vor.u32 %v418_v48, %v415_v47  ;;  %v978_v61 = vshrl.u32 %v5440_v44, 16  ;;  %v575_v62 = vpack.c.b16 %v561_v49, %v560_v45  ;;  %v5444_v45 = vld [vmem:[%s6218_s7 + $0x38] sm:$0x1] }
  0x31   : > { %v1113_v59 = vunpack.c.l.b16 %v963_v53  ;;  %v967_v63 = vrot.slane %v965_v51, 4  ;;  %v970_v0 = vrot.slane %v968_v52, 5  ;;  %v976_v1 = vrot.slane %v974_v56, 5 }
  0x32   : > { %v429_v2 = vor.u32 %v428_v55, %v424_v54  ;;  %v432_v3 = vshll.u32 %v345_v57, 16  ;;  %v980_v5 = vrot.slane %v978_v61, 4  ;;  %v420_v11 = vrot.slane %v419_v60, 4  ;;  %v349_v61 = vld [vmem:[%s6218_s7 + $0x30] sm:$0xf] }
  0x33   : > { %v1127_v8 = vpack.c.b16 %v1113_v59, %v1112_v58  ;;  %v971_v12 = vor.u32 %v970_v0, %v967_v63  ;;  %v984_v14 = vshll.u32 %v5441_v4, 16  ;;  %v437_v17 = vshrl.u32 %v346_v6, 16  ;;  %v5954_v58 = vld [vmem:[%s6218_s7 + $0x24] sm:$0xff]  ;;  %v350_v63 = vld [vmem:[%s6218_s7 + $0x34] sm:$0xf] }
  0x34   : > { %v981_v13 = vor.u32 %v980_v5, %v976_v1  ;;  %v430_v15 = vrot.slane %v429_v2, 4  ;;  %v434_v16 = vrot.slane %v432_v3, 5  ;;  %v440_v18 = vshll.u32 %v346_v6, 16  ;;  %v5446_v2 = vld [vmem:[%s6218_s7 + $0x40] sm:$0xf] }
  0x35   : > { %v446_v19 = vshll.u32 %v347_v9, 16  ;;  %v450_v20 = vshrl.u32 %v347_v9, 16  ;;  %v972_v22 = vrot.slane %v971_v12, 4  ;;  %v986_v24 = vrot.slane %v984_v14, 5 }
  0x36   : > { %v982_v23 = vrot.slane %v981_v13, 4  ;;  %v425_v26 = vsel %vm6233_vm4, %v420_v11, %v424_v54  ;;  %v435_v27 = vsel %vm6233_vm4, %v430_v15, %v434_v16  ;;  %v439_v28 = vrot.slane %v437_v17, 4 }
  0x37   : > { %v442_v29 = vrot.slane %v440_v18, 5  ;;  %v448_v31 = vrot.slane %v446_v19, 5  ;;  %v452_v32 = vrot.slane %v450_v20, 4  ;;  %v989_v33 = vshrl.u32 %v5442_v21, 16 }
  0x38   : > { %5367 = vmatmul.msk.bf16.gmra.mxu1 %vm243_vm1, %v575_v62  ;;  %v992_v34 = vshll.u32 %v5442_v21, 16  ;;  %v998_v35 = vshll.u32 %v5443_v25, 16  ;;  %v1002_v36 = vshrl.u32 %v5443_v25, 16  ;;  %v562_v37 = vunpack.c.l.b16 %v425_v26  ;;  %v5962_v62 = vld [vmem:[%s6218_s7 + $0x30] sm:$0xff] }
  0x39   : > { %v563_v38 = vunpack.c.l.b16 %v435_v27  ;;  %v977_v40 = vsel %vm6233_vm4, %v972_v22, %v976_v1  ;;  %v987_v41 = vsel %vm6233_vm4, %v982_v23, %v986_v24  ;;  %v456_v42 = vshll.u32 %v348_v30, 16  ;;  %v5445_v1 = vld [vmem:[%s6218_s7 + $0x3c] sm:$0xf]  ;;  %v351_v23 = vld [vmem:[%s6218_s7 + $0x38] sm:$0x1] }
  0x3a   : > { %v443_v43 = vor.u32 %v442_v29, %v439_v28  ;;  %v453_v44 = vor.u32 %v452_v32, %v448_v31  ;;  %v991_v46 = vrot.slane %v989_v33, 4  ;;  %v994_v47 = vrot.slane %v992_v34, 5  ;;  %v5447_v28 = vld [vmem:[%s6218_s7 + $0x44] sm:$0x1] }
  0x3b   : > { %5359 = vmatmul.msk.bf16.gmra.mxu0 %vm243_vm1, %v5953_v7  ;;  %5459 = vmatmul.msk.bf16.gmra.mxu3 %vm243_vm1, %v1127_v8  ;;  %v1114_v48 = vunpack.c.l.b16 %v977_v40  ;;  %v1115_v49 = vunpack.c.l.b16 %v987_v41  ;;  %v1000_v50 = vrot.slane %v998_v35, 5  ;;  %v1004_v51 = vrot.slane %v1002_v36, 4  ;;  %v353_v40 = vld [vmem:[%s6218_s7 + $0x40] sm:$0xf]  ;;  %v5955_v41 = vld [vmem:[%s6218_s7 + $0x30] sm:$0xff] }
  0x3c   : > { %5427 = vmatmul.msk.bf16.gmra.mxu2 %vm243_vm1, %v5961_v10  ;;  %v576_v52 = vpack.c.b16 %v563_v38, %v562_v37  ;;  %v1008_v53 = vshll.u32 %v5444_v45, 16  ;;  %v444_v54 = vrot.slane %v443_v43, 4  ;;  %v454_v55 = vrot.slane %v453_v44, 4  ;;  %v352_v38 = vld [vmem:[%s6218_s7 + $0x3c] sm:$0xf] }
  0x3d   : > { %v458_v56 = vrot.slane %v456_v42, 5  ;;  %v995_v57 = vor.u32 %v994_v47, %v991_v46  ;;  %v1128_v59 = vpack.c.b16 %v1115_v49, %v1114_v48  ;;  %v1005_v60 = vor.u32 %v1004_v51, %v1000_v50  ;;  %v5963_v45 = vld [vmem:[%s6218_s7 + $0x3c] sm:$0xff] }
  0x3e   : > { %v1010_v0 = vrot.slane %v1008_v53, 5  ;;  %v449_v3 = vsel %vm6233_vm4, %v444_v54, %v448_v31  ;;  %v461_v6 = vshrl.u32 %v349_v61, 16  ;;  %v464_v8 = vshll.u32 %v349_v61, 16  ;;  %v5448_v54 = vld [vmem:[%s6218_s7 + $0x48] sm:$0xf] }
  0x3f   : > { %v459_v4 = vsel %vm6233_vm4, %v454_v55, %v458_v56  ;;  %v996_v5 = vrot.slane %v995_v57, 4  ;;  %v1006_v7 = vrot.slane %v1005_v60, 4  ;;  %v470_v9 = vshll.u32 %v350_v63, 16  ;;  %v5449_v55 = vld [vmem:[%s6218_s7 + $0x4c] sm:$0xf] }
  0x40   : > { %v474_v10 = vshrl.u32 %v350_v63, 16  ;;  %v1013_v11 = vshrl.u32 %v5445_v1, 16  ;;  %v1016_v12 = vshll.u32 %v5445_v1, 16  ;;  %v1022_v13 = vshll.u32 %v5446_v2, 16 }
  0x41   : > { %v1026_v14 = vshrl.u32 %v5446_v2, 16  ;;  %v564_v15 = vunpack.c.l.b16 %v449_v3  ;;  %v565_v16 = vunpack.c.l.b16 %v459_v4  ;;  %v1001_v17 = vsel %vm6233_vm4, %v996_v5, %v1000_v50 }
  0x42   : > { %v463_v18 = vrot.slane %v461_v6, 4  ;;  %v1011_v19 = vsel %vm6233_vm4, %v1006_v7, %v1010_v0  ;;  %v466_v20 = vrot.slane %v464_v8, 5  ;;  %v472_v21 = vrot.slane %v470_v9, 5  ;;  %v354_v0 = vld [vmem:[%s6218_s7 + $0x44] sm:$0x1] }
  0x43   : > { %v476_v22 = vrot.slane %v474_v10, 4  ;;  %v1015_v24 = vrot.slane %v1013_v11, 4  ;;  %v1018_v25 = vrot.slane %v1016_v12, 5  ;;  %v1024_v26 = vrot.slane %v1022_v13, 5 }
  0x44   : > { %v1028_v27 = vrot.slane %v1026_v14, 4  ;;  %v577_v29 = vpack.c.b16 %v565_v16, %v564_v15  ;;  %v1116_v30 = vunpack.c.l.b16 %v1001_v17  ;;  %v1117_v31 = vunpack.c.l.b16 %v1011_v19  ;;  %v5450_v16 = vld [vmem:[%s6218_s7 + $0x50] sm:$0x1]  ;;  %v356_v19 = vld [vmem:[%s6218_s7 + $0x4c] sm:$0xf] }
  0x45   : > { %v467_v32 = vor.u32 %v466_v20, %v463_v18  ;;  %v480_v33 = vshll.u32 %v351_v23, 16  ;;  %v477_v34 = vor.u32 %v476_v22, %v472_v21  ;;  %v1019_v35 = vor.u32 %v1018_v25, %v1015_v24  ;;  %v355_v18 = vld [vmem:[%s6218_s7 + $0x48] sm:$0xf] }
  0x46   : > { %v1029_v36 = vor.u32 %v1028_v27, %v1024_v26  ;;  %v1032_v37 = vshll.u32 %v5447_v28, 16  ;;  %v1129_v42 = vpack.c.b16 %v1117_v31, %v1116_v30  ;;  %v485_v50 = vshrl.u32 %v352_v38, 16  ;;  %v5956_v27 = vld [vmem:[%s6218_s7 + $0x3c] sm:$0xff] }
  0x47   : > { %v468_v43 = vrot.slane %v467_v32, 4  ;;  %v482_v44 = vrot.slane %v480_v33, 5  ;;  %v478_v46 = vrot.slane %v477_v34, 4  ;;  %v1020_v47 = vrot.slane %v1019_v35, 4  ;;  %v5964_v32 = vld [vmem:[%s6218_s7 + $0x48] sm:$0xff] }
  0x48   : > { %5368 = vmatmul.msk.bf16.gmra.mxu1 %vm243_vm1, %v576_v52  ;;  %v1030_v48 = vrot.slane %v1029_v36, 4  ;;  %v1034_v49 = vrot.slane %v1032_v37, 5  ;;  %v488_v51 = vshll.u32 %v352_v38, 16  ;;  %v494_v52 = vshll.u32 %v353_v40, 16  ;;  %v5451_v34 = vld [vmem:[%s6218_s7 + $0x54] sm:$0xf] }
  0x49   : > { %v498_v53 = vshrl.u32 %v353_v40, 16  ;;  %v473_v56 = vsel %vm6233_vm4, %v468_v43, %v472_v21  ;;  %v483_v57 = vsel %vm6233_vm4, %v478_v46, %v482_v44  ;;  %v487_v60 = vrot.slane %v485_v50, 4  ;;  %v5452_v35 = vld [vmem:[%s6218_s7 + $0x58] sm:$0xf] }
  0x4a   : > { %v490_v61 = vrot.slane %v488_v51, 5  ;;  %v1037_v1 = vshrl.u32 %v5448_v54, 16  ;;  %v1040_v2 = vshll.u32 %v5448_v54, 16  ;;  %v1046_v3 = vshll.u32 %v5449_v55, 16 }
  0x4b   : > { %5360 = vmatmul.msk.bf16.gmra.mxu0 %vm243_vm1, %v5954_v58  ;;  %5460 = vmatmul.msk.bf16.gmra.mxu3 %vm243_vm1, %v1128_v59  ;;  %v1025_v58 = vsel %vm6233_vm4, %v1020_v47, %v1024_v26  ;;  %v1035_v59 = vsel %vm6233_vm4, %v1030_v48, %v1034_v49  ;;  %v500_v63 = vrot.slane %v498_v53, 4  ;;  %v1050_v4 = vshrl.u32 %v5449_v55, 16  ;;  %v358_v53 = vld [vmem:[%s6218_s7 + $0x54] sm:$0xf] }
  0x4c   : > { %5428 = vmatmul.msk.bf16.gmra.mxu2 %vm243_vm1, %v5962_v62  ;;  %v496_v62 = vrot.slane %v494_v52, 5  ;;  %v566_v5 = vunpack.c.l.b16 %v473_v56  ;;  %v567_v6 = vunpack.c.l.b16 %v483_v57  ;;  %v1118_v7 = vunpack.c.l.b16 %v1025_v58 }
  0x4d   : > { %v1119_v8 = vunpack.c.l.b16 %v1035_v59  ;;  %v491_v9 = vor.u32 %v490_v61, %v487_v60  ;;  %v504_v11 = vshll.u32 %v354_v0, 16  ;;  %v1039_v12 = vrot.slane %v1037_v1, 4 }
  0x4e   : > { %v501_v10 = vor.u32 %v500_v63, %v496_v62  ;;  %v1042_v13 = vrot.slane %v1040_v2, 5  ;;  %v1048_v14 = vrot.slane %v1046_v3, 5  ;;  %v1052_v15 = vrot.slane %v1050_v4, 4  ;;  %v359_v2 = vld [vmem:[%s6218_s7 + $0x58] sm:$0xf] }
  0x4f   : > { %v578_v17 = vpack.c.b16 %v567_v6, %v566_v5  ;;  %v1130_v20 = vpack.c.b16 %v1119_v8, %v1118_v7  ;;  %v492_v21 = vrot.slane %v491_v9, 4  ;;  %v506_v22 = vrot.slane %v504_v11, 5 }
  0x50   : > { %v502_v23 = vrot.slane %v501_v10, 4  ;;  %v1043_v24 = vor.u32 %v1042_v13, %v1039_v12  ;;  %v1053_v25 = vor.u32 %v1052_v15, %v1048_v14  ;;  %v1056_v26 = vshll.u32 %v5450_v16, 16  ;;  %v5957_v15 = vld [vmem:[%s6218_s7 + $0x48] sm:$0xff] }
  0x51   : > { %v509_v28 = vshrl.u32 %v355_v18, 16  ;;  %v518_v30 = vshll.u32 %v356_v19, 16  ;;  %v522_v31 = vshrl.u32 %v356_v19, 16  ;;  %v497_v33 = vsel %vm6233_vm4, %v492_v21, %v496_v62  ;;  %v5453_v62 = vld [vmem:[%s6218_s7 + $0x5c] sm:$0x1]  ;;  %v5965_v19 = vld [vmem:[%s6218_s7 + $0x54] sm:$0xff] }
  0x52   : > { %v507_v36 = vsel %vm6233_vm4, %v502_v23, %v506_v22  ;;  %v1044_v37 = vrot.slane %v1043_v24, 4  ;;  %v1054_v38 = vrot.slane %v1053_v25, 4  ;;  %v1058_v40 = vrot.slane %v1056_v26, 5 }
  0x53   : > { %v520_v43 = vrot.slane %v518_v30, 5  ;;  %v524_v44 = vrot.slane %v522_v31, 4  ;;  %v1061_v46 = vshrl.u32 %v5451_v34, 16  ;;  %v1064_v47 = vshll.u32 %v5451_v34, 16 }
  0x54   : > { %v1070_v48 = vshll.u32 %v5452_v35, 16  ;;  %v1074_v49 = vshrl.u32 %v5452_v35, 16  ;;  %v568_v50 = vunpack.c.l.b16 %v497_v33  ;;  %v569_v51 = vunpack.c.l.b16 %v507_v36  ;;  %v5455_v36 = vld [vmem:[%s6218_s7 + $0x64] sm:$0xf] }
  0x55   : > { %v1049_v52 = vsel %vm6233_vm4, %v1044_v37, %v1048_v14  ;;  %v1059_v54 = vsel %vm6233_vm4, %v1054_v38, %v1058_v40  ;;  %v525_v56 = vor.u32 %v524_v44, %v520_v43  ;;  %v1063_v58 = vrot.slane %v1061_v46, 4  ;;  %v5598_v37 = vld [vmem:[%s8353_s1 + $0x8] sm:$0x3] }
  0x56   : > { %v1066_v59 = vrot.slane %v1064_v47, 5  ;;  %v6350_v60 = vrot.slane %v1070_v48, 5  ;;  %v1076_v61 = vrot.slane %v1074_v49, 4  ;;  %v533_v63 = vshrl.u32 %v358_v53, 16  ;;  %v5493_v48 = vld [vmem:[%s6218_s7 + $0x10] sm:$0xf] }
  0x57   : > { %v536_v0 = vshll.u32 %v358_v53, 16  ;;  %v579_v1 = vpack.c.b16 %v569_v51, %v568_v50  ;;  %v1120_v3 = vunpack.c.l.b16 %v1049_v52  ;;  %v1121_v4 = vunpack.c.l.b16 %v1059_v54  ;;  %v1311_v53 = vld [vmem:[%s6218_s7 + $0x8] sm:$0x1] }
  0x58   : > { %5369 = vmatmul.msk.bf16.gmra.mxu1 %vm243_vm1, %v577_v29  ;;  %v512_v29 = vshll.u32 %v355_v18, 16  ;;  %v526_v7 = vrot.slane %v525_v56, 4  ;;  %v1067_v8 = vor.u32 %v1066_v59, %v1063_v58  ;;  %v1077_v9 = vor.u32 %v1076_v61, %v6350_v60  ;;  %v1310_v18 = vld [vmem:[%s6218_s7 + $0x4] sm:$0xf] }
  0x59   : > { %v1080_v10 = vshll.u32 %v5453_v62, 16  ;;  %v535_v11 = vrot.slane %v533_v63, 4  ;;  %v538_v12 = vrot.slane %v536_v0, 5  ;;  %v542_v13 = vshll.u32 %v359_v2, 16 }
  0x5a   : > { %v546_v14 = vshrl.u32 %v359_v2, 16  ;;  %v1131_v16 = vpack.c.b16 %v1121_v4, %v1120_v3  ;;  %v1068_v22 = vrot.slane %v1067_v8, 4  ;;  %v1078_v24 = vrot.slane %v1077_v9, 4 }
  0x5b   : > { %5361 = vmatmul.msk.bf16.gmra.mxu0 %vm243_vm1, %v5955_v41  ;;  %5461 = vmatmul.msk.bf16.gmra.mxu3 %vm243_vm1, %v1129_v42  ;;  %v511_v41 = vrot.slane %v509_v28, 4  ;;  %v514_v42 = vrot.slane %v512_v29, 5  ;;  %v1082_v23 = vrot.slane %v1080_v10, 5  ;;  %v539_v25 = vor.u32 %v538_v12, %v535_v11  ;;  %v5454_v28 = vld [vmem:[%s6218_s7 + $0x60] sm:$0xf] }
  0x5c   : > { %5429 = vmatmul.msk.bf16.gmra.mxu2 %vm243_vm1, %v5963_v45  ;;  %v357_v45 = vld [vmem:[%s6218_s7 + $0x50] sm:$0x1]  ;;  %v544_v26 = vrot.slane %v542_v13, 5  ;;  %v360_v29 = vld [vmem:[%s6218_s7 + $0x5c] sm:$0x1]  ;;  %v1347_v33 = vshrl.u32 %v1310_v18, 16  ;;  %v1073_v38 = vsel %vm6233_vm4, %v1068_v22, %v6350_v60 }
  0x5d   : > { %v515_v55 = vor.u32 %v514_v42, %v511_v41  ;;  %v528_v57 = vshll.u32 %v357_v45, 16  ;;  %v1085_v40 = vshrl.u32 %v5454_v28, 16  ;;  %v1088_v41 = vshll.u32 %v5454_v28, 16  ;;  %v5456_v11 = vld [vmem:[%s6218_s7 + $0x68] sm:$0x1]  ;;  %v5958_v22 = vld [vmem:[%s6218_s7 + $0x54] sm:$0xff] }
  0x5e   : > { %v2652_v42 = vsel %vm268_vm0, %v5598_v37, 0  ;;  %v1083_v44 = vsel %vm6233_vm4, %v1078_v24, %v1082_v23  ;;  %v540_v45 = vrot.slane %v539_v25, 4  ;;  %v552_v47 = vshll.u32 %v360_v29, 16 }
  0x5f   : > { %v516_v5 = vrot.slane %v515_v55, 4  ;;  %v530_v6 = vrot.slane %v528_v57, 5  ;;  %2661 = vmatpush.bf16.msra.mxu0 %v2652_v42  ;;  %v1349_v52 = vrot.slane %v1347_v33, 4  ;;  %v1094_v54 = vshll.u32 %v5455_v36, 16 }
  0x60   : > { %v1098_v55 = vshrl.u32 %v5455_v36, 16  ;;  %v1087_v58 = vrot.slane %v1085_v40, 4  ;;  %v1090_v59 = vrot.slane %v1088_v41, 5  ;;  %v1934_v60 = vshll.u32 %v5493_v48, 16  ;;  %v5495_v41 = vld [vmem:[%s6218_s7 + $0x18] sm:$0xf] }
  0x61   : > { %v531_v21 = vsel %vm6233_vm4, %v526_v7, %v530_v6  ;;  %v1938_v61 = vshrl.u32 %v5493_v48, 16  ;;  %v1122_v62 = vunpack.c.l.b16 %v1073_v38  ;;  %v1123_v63 = vunpack.c.l.b16 %v1083_v44 }
  0x62   : > { %v571_v35 = vunpack.c.l.b16 %v531_v21  ;;  %v545_v2 = vsel %vm6233_vm4, %v540_v45, %v544_v26  ;;  %v1096_v6 = vrot.slane %v1094_v54, 5  ;;  %v1100_v7 = vrot.slane %v1098_v55, 4  ;;  %v1312_v21 = vld [vmem:[%s6218_s7 + $0xc] sm:$0xf] }
  0x63   : > { %v1091_v12 = vor.u32 %v1090_v59, %v1087_v58  ;;  %v6388_v13 = vrot.slane %v1934_v60, 5  ;;  %v1104_v25 = vshll.u32 %v5456_v11, 16  ;;  %v1361_v33 = vshll.u32 %v1312_v21, 16  ;;  %v1643_v59 = vld [vmem:[%s6218_s7] sm:$0xe] }
  0x64   : > { %v1101_v24 = vor.u32 %v1100_v7, %v1096_v6  ;;  %v1949_v54 = vshrl.u32 %v5495_v41, 16  ;;  %v1952_v55 = vshll.u32 %v5495_v41, 16 }
  0x65   : > { %v1092_v29 = vrot.slane %v1091_v12, 4  ;;  %v1106_v38 = vrot.slane %v1104_v25, 5  ;;  %v1363_v48 = vrot.slane %v1361_v33, 5  ;;  %v5475_v12 = vrot.slane %v1643_v59, 9 }
  0x66   : > { %v1102_v37 = vrot.slane %v1101_v24, 4  ;;  %v1954_v11 = vrot.slane %v1952_v55, 5 }
  0x68   : > { %5370 = vmatmul.msk.bf16.gmra.mxu1 %vm243_vm1, %v578_v17  ;;  %v1309_v17 = vld [vmem:[%s6218_s7] sm:$0xf] }
  0x69   : > { %v1334_v30 = vshrl.u32 %v1309_v17, 16  ;;  %v1337_v31 = vshll.u32 %v1309_v17, 16  ;;  %v1132_v17 = vpack.c.b16 %v1123_v63, %v1122_v62 }
  0x6b   : > { %5362 = vmatmul.msk.bf16.gmra.mxu0 %vm243_vm1, %v5956_v27  ;;  %5462 = vmatmul.msk.bf16.gmra.mxu3 %vm243_vm1, %v1130_v20  ;;  %v521_v20 = vsel %vm6233_vm4, %v516_v5, %v520_v43  ;;  %v548_v27 = vrot.slane %v546_v14, 4  ;;  %v5492_v43 = vld [vmem:[%s6218_s7 + $0xc] sm:$0xf]  ;;  %v1336_v49 = vrot.slane %v1334_v30, 4  ;;  %v1339_v50 = vrot.slane %v1337_v31, 5 }
  0x6c   : > { %5430 = vmatmul.msk.bf16.gmra.mxu2 %vm243_vm1, %v5964_v32  ;;  %v1343_v32 = vshll.u32 %v1310_v18, 16  ;;  %v570_v34 = vunpack.c.l.b16 %v521_v20  ;;  %v1925_v56 = vshrl.u32 %v5492_v43, 16  ;;  %v1928_v57 = vshll.u32 %v5492_v43, 16 }
  0x6d   : > { %v549_v46 = vor.u32 %v548_v27, %v544_v26  ;;  %v1340_v3 = vor.u32 %v1339_v50, %v1336_v49  ;;  %v1353_v5 = vshll.u32 %v1311_v53, 16  ;;  %v1940_v14 = vrot.slane %v1938_v61, 4  ;;  %v5966_v27 = vld [vmem:[%s6218_s7 + $0x60] sm:$0xff]  ;;  %v1645_v61 = vld [vmem:[%s6218_s7 + $0x8] sm:$0x1] }
  0x6e   : > { %v6381_v51 = vrot.slane %v1343_v32, 5  ;;  %v1927_v8 = vrot.slane %v1925_v56, 4  ;;  %v1930_v9 = vrot.slane %v1928_v57, 5  ;;  %v580_v10 = vpack.c.b16 %v571_v35, %v570_v34  ;;  %v1313_v35 = vld [vmem:[%s6218_s7 + $0x10] sm:$0xf] }
  0x6f   : > { %v550_v0 = vrot.slane %v549_v46, 4  ;;  %v6393_v18 = vunpack.c.l.b16 %v545_v2  ;;  %v1355_v20 = vrot.slane %v1353_v5, 5  ;;  %v1941_v30 = vor.u32 %v1940_v14, %v6388_v13  ;;  %v1644_v46 = vld [vmem:[%s6218_s7 + $0x4] sm:$0xf]  ;;  %v5526_v5 = vld [vmem:[%s6218_s7 + $0x10] sm:$0xf] }
  0x70   : > { %v1350_v4 = vor.u32 %v1349_v52, %v6381_v51  ;;  %v1931_v26 = vor.u32 %v1930_v9, %v1927_v8  ;;  %v1358_v32 = vshrl.u32 %v1312_v21, 16  ;;  %v1097_v43 = vsel %vm6233_vm4, %v1092_v29, %v1096_v6  ;;  %v5663_v8 = vld [vmem:[%s8353_s1 + $0xc] sm:$0x3]  ;;  %v5690_v9 = vld [vmem:[%s8353_s1 + $0x18] sm:$0x3] }
  0x71   : > { %v1942_v44 = vrot.slane %v1941_v30, 4  ;;  %v1367_v49 = vshll.u32 %v1313_v35, 16  ;;  %v1371_v50 = vshrl.u32 %v1313_v35, 16  ;;  %v1107_v56 = vsel %vm6233_vm4, %v1102_v37, %v1106_v38  ;;  %v1315_v38 = vld [vmem:[%s6218_s7 + $0x18] sm:$0xf] }
  0x72   : > { %v1351_v23 = vrot.slane %v1350_v4, 4  ;;  %v1932_v40 = vrot.slane %v1931_v26, 4  ;;  %v6424_v57 = vunpack.c.l.b16 %v1097_v43  ;;  %v1696_v60 = vrot.slane %v1644_v46, 5  ;;  %v5525_v4 = vld [vmem:[%s6218_s7 + $0xc] sm:$0xe] }
  0x73   : > { %v1369_v2 = vrot.slane %v1367_v49, 5  ;;  %v1125_v6 = vunpack.c.l.b16 %v1107_v56  ;;  %v2986_v14 = vsel %vm268_vm0, %v5663_v8, 0  ;;  %v5549_v24 = vrot.slane %v5525_v4, 9  ;;  %v1316_v49 = vld [vmem:[%s6218_s7 + $0x1c] sm:$0xf] }
  0x74   : > { %v1356_v36 = vsel %vm6233_vm4, %v1351_v23, %v1355_v20  ;;  %v1937_v58 = vsel %vm6233_vm4, %v1932_v40, %v6388_v13  ;;  %v1698_v13 = vrot.slane %v1696_v60, 4  ;;  %2995 = vmatpush.bf16.msra.mxu1 %v2986_v14  ;;  %v5497_v20 = vld [vmem:[%s6218_s7 + $0x20] sm:$0x1]  ;;  %v2316_v25 = vrot.slane %v5526_v5, 5  ;;  %v1648_v5 = vld [vmem:[%s6218_s7 + $0x14] sm:$0x1] }
  0x75   : > { %v6420_v53 = vunpack.c.l.b16 %v1356_v36  ;;  %v2118_v7 = vunpack.c.l.b16 %v1937_v58  ;;  %v1968_v33 = vshll.u32 %v5497_v20, 16  ;;  %v5755_v58 = vld [vmem:[%s8353_s1 + $0x1c] sm:$0x3] }
  0x76   : > { %v2317_v41 = vsel %vm6446_vm7, %v5549_v24, %v2316_v25  ;;  %v1317_v24 = vld [vmem:[%s6218_s7 + $0x20] sm:$0x1] }
  0x77   : > { %v2372_v56 = vunpack.c.l.b16 %v2317_v41  ;;  %v1401_v41 = vshll.u32 %v1317_v24, 16 }
  0x78   : > { %5371 = vmatmul.msk.bf16.gmra.mxu1 %vm243_vm1, %v579_v1  ;;  %v554_v1 = vrot.slane %v552_v47, 5  ;;  %v1360_v47 = vrot.slane %v1358_v32, 4  ;;  %v6459_v32 = vsel %vm6446_vm7, %v5475_v12, %v1696_v60  ;;  %v5499_v60 = vld [vmem:[%s6218_s7 + $0x28] sm:$0xf] }
  0x7b   : > { %5363 = vmatmul.msk.bf16.gmra.mxu0 %vm243_vm1, %v5957_v15  ;;  %5463 = vmatmul.msk.bf16.gmra.mxu3 %vm243_vm1, %v1131_v16  ;;  %v555_v15 = vsel %vm6233_vm4, %v550_v0, %v554_v1  ;;  %v5494_v16 = vld [vmem:[%s6218_s7 + $0x14] sm:$0x1]  ;;  %v1364_v1 = vor.u32 %v1363_v48, %v1360_v47 }
  0x7c   : > { %5431 = vmatmul.msk.bf16.gmra.mxu2 %vm243_vm1, %v5965_v19  ;;  %v1341_v19 = vrot.slane %v1340_v3, 4  ;;  %v6399_v28 = vunpack.c.l.b16 %v555_v15  ;;  %v1944_v31 = vshll.u32 %v5494_v16, 16  ;;  %v1373_v3 = vrot.slane %v1371_v50, 4  ;;  %v1314_v16 = vld [vmem:[%s6218_s7 + $0x14] sm:$0x1] }
  0x7d   : > { %v3172_v15 = vsel %vm268_vm0, %v5690_v9, 0  ;;  %v1365_v23 = vrot.slane %v1364_v1, 4  ;;  %v1395_v1 = vshrl.u32 %v1316_v49, 16 }
  0x7e   : > { %v1346_v34 = vsel %vm6233_vm4, %v1341_v19, %v6381_v51  ;;  %v581_v42 = vpack.c.b16 %v6399_v28, %v6393_v18  ;;  %v1946_v45 = vrot.slane %v1944_v31, 5  ;;  %v5496_v51 = vld [vmem:[%s6218_s7 + $0x1c] sm:$0xf]  ;;  %v1699_v19 = vrot.slane %v1645_v61, 5  ;;  %3181 = vmatpush.bf16.msra.mxu2 %v3172_v15  ;;  %v5527_v28 = vld [vmem:[%s6218_s7 + $0x14] sm:$0x1] }
  0x7f   : > { %v6418_v52 = vunpack.c.l.b16 %v1346_v34  ;;  %v1958_v62 = vshll.u32 %v5496_v51, 16  ;;  %v1962_v63 = vshrl.u32 %v5496_v51, 16  ;;  %v1374_v26 = vor.u32 %v1373_v3, %v1369_v2 }
  0x80   : > { %v1947_v0 = vsel %vm6233_vm4, %v1942_v44, %v1946_v45  ;;  %v1133_v31 = vpack.c.b16 %v1125_v6, %v6424_v57  ;;  %v6464_v36 = vsel %vm6446_vm7, %v1698_v13, %v1699_v19  ;;  %v1370_v40 = vsel %vm6233_vm4, %v1365_v23, %v1369_v2  ;;  %v6474_v44 = vld [vmem:[%s6218_s7 + $0x10] sm:$0xf] }
  0x81   : > { %v6451_v21 = vrot.slane %v1958_v62, 5  ;;  %v1543_v30 = vpack.c.b16 %v6420_v53, %v6418_v52  ;;  %v2319_v43 = vrot.slane %v5527_v28, 5  ;;  %v1752_v45 = vunpack.c.l.b16 %v6459_v32 }
  0x82   : > { %v1375_v46 = vrot.slane %v1374_v26, 4  ;;  %v1753_v50 = vunpack.c.l.b16 %v6464_v36  ;;  %v1970_v51 = vrot.slane %v1968_v33, 5  ;;  %v1382_v52 = vshrl.u32 %v1315_v38, 16  ;;  %v5500_v36 = vld [vmem:[%s6218_s7 + $0x2c] sm:$0x1] }
  0x83   : > { %v1385_v53 = vshll.u32 %v1315_v38, 16  ;;  %v6483_v55 = vunpack.c.l.b16 %v1370_v40  ;;  %v1703_v59 = vrot.slane %v6474_v44, 5  ;;  %v3538_v62 = vsel %vm268_vm0, %v5755_v58, 0  ;;  %v1318_v44 = vld [vmem:[%s6218_s7 + $0x24] sm:$0xf] }
  0x84   : > { %3547 = vmatpush.bf16.msra.mxu3 %v3538_v62  ;;  %v1384_v8 = vrot.slane %v1382_v52, 4  ;;  %v1706_v19 = vrot.slane %v1648_v5, 5  ;;  %v1768_v33 = vpack.c.b16 %v1753_v50, %v1752_v45  ;;  %v6528_v50 = vld [vmem:[%s6218_s7 + $0x1c] sm:$0xf]  ;;  %v1406_v58 = vshrl.u32 %v1318_v44, 16 }
  0x85   : > { %v1387_v9 = vrot.slane %v1385_v53, 5 }
  0x88   : > { %5372 = vmatmul.msk.bf16.gmra.mxu1 %vm243_vm1, %v580_v10  ;;  %v1951_v10 = vrot.slane %v1949_v54, 4  ;;  %v5498_v54 = vld [vmem:[%s6218_s7 + $0x24] sm:$0xf] }
  0x89   : > { %v1973_v6 = vshrl.u32 %v5498_v54, 16 }
  0x8a   : > { %v1955_v29 = vor.u32 %v1954_v11, %v1951_v10  ;;  %v1982_v10 = vshll.u32 %v5499_v60, 16  ;;  %v1986_v11 = vshrl.u32 %v5499_v60, 16 }
  0x8b   : > { %5364 = vmatmul.msk.bf16.gmra.mxu0 %vm243_vm1, %v5958_v22  ;;  %5464 = vmatmul.msk.bf16.gmra.mxu3 %vm243_vm1, %v1132_v17  ;;  %v2119_v17 = vunpack.c.l.b16 %v1947_v0  ;;  %v1964_v22 = vrot.slane %v1962_v63, 4  ;;  %v1646_v63 = vld [vmem:[%s6218_s7 + $0xc] sm:$0xe]  ;;  %v1391_v0 = vshll.u32 %v1316_v49, 16  ;;  %v1975_v26 = vrot.slane %v1973_v6, 4 }
  0x8c   : > { %5432 = vmatmul.msk.bf16.gmra.mxu2 %vm243_vm1, %v5966_v27  ;;  %v1377_v27 = vshll.u32 %v1314_v16, 16  ;;  %v1956_v48 = vrot.slane %v1955_v29, 4  ;;  %v5476_v15 = vrot.slane %v1646_v63, 9  ;;  %v1705_v16 = vrot.slane %v1703_v59, 4 }
  0x8d   : > { %v2134_v35 = vpack.c.b16 %v2119_v17, %v2118_v7  ;;  %v1965_v37 = vor.u32 %v1964_v22, %v6451_v21  ;;  %v1976_v7 = vshll.u32 %v5498_v54, 16  ;;  %v6505_v20 = vrot.slane %v1391_v0, 5  ;;  %v5529_v22 = vld [vmem:[%s6218_s7 + $0x1c] sm:$0xf] }
  0x8e   : > { %v1379_v47 = vrot.slane %v1377_v27, 5  ;;  %v1961_v4 = vsel %vm6233_vm4, %v1956_v48, %v6451_v21  ;;  %v1397_v21 = vrot.slane %v1395_v1, 4  ;;  %v1988_v32 = vrot.slane %v1986_v11, 4 }
  0x8f   : > { %v1966_v57 = vrot.slane %v1965_v37, 4  ;;  %v2120_v23 = vunpack.c.l.b16 %v1961_v4  ;;  %v1978_v27 = vrot.slane %v1976_v7, 5  ;;  %v6521_v48 = vsel %vm6446_vm7, %v5476_v15, %v1703_v59  ;;  %v1319_v4 = vld [vmem:[%s6218_s7 + $0x28] sm:$0xf] }
  0x90   : > { %v1380_v3 = vsel %vm6233_vm4, %v1375_v46, %v1379_v47  ;;  %v1398_v40 = vor.u32 %v1397_v21, %v6505_v20  ;;  %v6525_v45 = vsel %vm6446_vm7, %v1705_v16, %v1706_v19  ;;  %v1992_v54 = vshll.u32 %v5500_v36, 16 }
  0x91   : > { %v1971_v14 = vsel %vm6233_vm4, %v1966_v57, %v1970_v51  ;;  %v1530_v17 = vunpack.c.l.b16 %v1380_v3  ;;  %v1979_v49 = vor.u32 %v1978_v27, %v1975_v26  ;;  %v1409_v59 = vshll.u32 %v1318_v44, 16  ;;  %v1649_v3 = vld [vmem:[%s6218_s7 + $0x18] sm:$0xe] }
  0x92   : > { %v2121_v29 = vunpack.c.l.b16 %v1971_v14  ;;  %v1399_v60 = vrot.slane %v1398_v40, 4  ;;  %v1710_v63 = vrot.slane %v6528_v50, 5  ;;  %v1754_v0 = vunpack.c.l.b16 %v6521_v48  ;;  %v5501_v14 = vld [vmem:[%s6218_s7 + $0x30] sm:$0xf]  ;;  %v5531_v50 = vld [vmem:[%s6218_s7 + $0x24] sm:$0xe] }
  0x93   : > { %v1544_v38 = vpack.c.b16 %v1530_v17, %v6483_v55  ;;  %v1980_v1 = vrot.slane %v1979_v49, 4  ;;  %v1755_v5 = vunpack.c.l.b16 %v6525_v45  ;;  %v5477_v19 = vrot.slane %v1649_v3, 9 }
  0x94   : > { %v2135_v51 = vpack.c.b16 %v2121_v29, %v2120_v23  ;;  %v1415_v21 = vshll.u32 %v1319_v4, 16  ;;  %v1419_v27 = vshrl.u32 %v1319_v4, 16  ;;  %v5551_v3 = vrot.slane %v5531_v50, 9 }
  0x96   : > { %v1417_v45 = vrot.slane %v1415_v21, 5  ;;  %v1421_v49 = vrot.slane %v1419_v27, 4  ;;  %v6596_v21 = vld [vmem:[%s6218_s7 + $0x28] sm:$0xf] }
  0x98   : > { %5373 = vmatmul.msk.bf16.gmra.mxu1 %vm243_vm1, %v581_v42  ;;  %v281_v34 = vpop.f32.mrf.mxu0  ;;  %v2318_v42 = vrot.slane %v2316_v25, 4  ;;  %v5528_v25 = vld [vmem:[%s6218_s7 + $0x18] sm:$0xe] }
  0x99   : > { %321 = vst.msk [vmem:[#allocation2] sm:$0xff] %vm243_vm1, %v281_v34 }
  0x9a   : > { %v2320_v61 = vsel %vm6446_vm7, %v2318_v42, %v2319_v43  ;;  %v5530_v42 = vld [vmem:[%s6218_s7 + $0x20] sm:$0x1]  ;;  %v5550_v43 = vrot.slane %v5528_v25, 9 }
  0x9b   : > { %5467 = vmatmul.msk.bf16.vlgmr.msrb.gmra.mxu0 %vm243_vm1, %v1543_v30  ;;  %5465 = vmatmul.msk.bf16.gmra.mxu3 %vm243_vm1, %v1133_v31  ;;  %v2373_v13 = vunpack.c.l.b16 %v2320_v61  ;;  %v1388_v30 = vor.u32 %v1387_v9, %v1384_v8  ;;  %v6510_v31 = vrot.slane %v1982_v10, 5  ;;  %v2326_v57 = vrot.slane %v5530_v42, 5  ;;  %v1651_v9 = vld [vmem:[%s6218_s7 + $0x20] sm:$0x1] }
  0x9c   : > { %5517 = vmatmul.msk.bf16.vlgmr.msrb.gmra.mxu2 %vm243_vm1, %v2134_v35  ;;  %v2323_v35 = vrot.slane %v5529_v22, 5  ;;  %v1403_v61 = vrot.slane %v1401_v41, 5  ;;  %v1994_v8 = vrot.slane %v1992_v54, 5  ;;  %v5502_v22 = vld [vmem:[%s6218_s7 + $0x34] sm:$0xf]  ;;  %v1713_v26 = vrot.slane %v1651_v9, 5 }
  0x9d   : > { %v2388_v34 = vpack.c.b16 %v2373_v13, %v2372_v56  ;;  %v1389_v52 = vrot.slane %v1388_v30, 4  ;;  %v1989_v53 = vor.u32 %v1988_v32, %v6510_v31  ;;  %v1411_v13 = vrot.slane %v1409_v59, 5  ;;  %v5503_v54 = vld [vmem:[%s6218_s7 + $0x38] sm:$0x1]  ;;  %v5533_v59 = vld [vmem:[%s6218_s7 + $0x2c] sm:$0x1] }
  0x9e   : > { %v6494_v2 = vpop.f32.mrf.mxu2  ;;  %v2325_v56 = vrot.slane %v2323_v35, 4  ;;  %v6536_v62 = vsel %vm6446_vm7, %v5550_v43, %v2323_v35  ;;  %v1404_v17 = vsel %vm6233_vm4, %v1399_v60, %v1403_v61  ;;  %v1985_v25 = vsel %vm6233_vm4, %v1980_v1, %v6510_v31  ;;  %v5532_v31 = vld [vmem:[%s6218_s7 + $0x28] sm:$0xf]  ;;  %v1321_v9 = vld [vmem:[%s6218_s7 + $0x30] sm:$0xf] }
  0x9f   : > { %v1394_v6 = vsel %vm6233_vm4, %v1389_v52, %v6505_v20  ;;  %v1990_v7 = vrot.slane %v1989_v53, 4  ;;  %v2374_v11 = vunpack.c.l.b16 %v6536_v62  ;;  %v1712_v20 = vrot.slane %v1710_v63, 4 }
  0xa0   : > { %v283_v12 = vpop.f32.mrf.mxu0  ;;  %v658_v28 = vld [vmem:[#allocation2] sm:$0xff]  ;;  %v2327_v10 = vsel %vm6446_vm7, %v2325_v56, %v2326_v57  ;;  %v2010_v40 = vshrl.u32 %v5502_v22, 16  ;;  %v1769_v41 = vpack.c.b16 %v1755_v5, %v1754_v0  ;;  %v1531_v42 = vunpack.c.l.b16 %v1394_v6 }
  0xa1   : > { %322 = vst.msk [vmem:[#allocation2 + $0x8] sm:$0xff] %vm243_vm1, %v283_v12  ;;  %v1408_v12 = vrot.slane %v1406_v58, 4  ;;  %v2375_v30 = vunpack.c.l.b16 %v2327_v10  ;;  %v1995_v32 = vsel %vm6233_vm4, %v1990_v7, %v1994_v8  ;;  %v1532_v43 = vunpack.c.l.b16 %v1404_v17 }
  0xa2   : > { %v6570_v44 = vunpack.c.l.b16 %v1985_v25  ;;  %v1714_v48 = vsel %vm6446_vm7, %v1712_v20, %v1713_v26  ;;  %v2123_v52 = vunpack.c.l.b16 %v1995_v32  ;;  %v2330_v53 = vrot.slane %v5532_v31, 5  ;;  %v1322_v25 = vld [vmem:[%s6218_s7 + $0x34] sm:$0xf]  ;;  %v1652_v31 = vld [vmem:[%s6218_s7 + $0x24] sm:$0xe] }
  0xa3   : > { %v2389_v57 = vpack.c.b16 %v2375_v30, %v2374_v11  ;;  %v2012_v61 = vrot.slane %v2010_v40, 4  ;;  %v1757_v1 = vunpack.c.l.b16 %v1714_v48  ;;  %v1422_v6 = vor.u32 %v1421_v49, %v1417_v45 }
  0xa4   : > { %v2016_v8 = vshll.u32 %v5503_v54, 16  ;;  %v1430_v26 = vshrl.u32 %v1321_v9, 16  ;;  %v1433_v27 = vshll.u32 %v1321_v9, 16  ;;  %v6629_v54 = vld [vmem:[%s6218_s7 + $0x34] sm:$0xf] }
  0xa5   : > { %v618_v37 = vpop.f32.mrf.mxu1  ;;  %v1423_v30 = vrot.slane %v1422_v6, 4 }
  0xa6   : > { %v674_v46 = vadd.f32 %v658_v28, %v618_v37  ;;  %v6517_v47 = vpop.f32.mrf.mxu2  ;;  %v1412_v37 = vor.u32 %v1411_v13, %v1408_v12  ;;  %v2136_v12 = vpack.c.b16 %v2123_v52, %v6570_v44  ;;  %v2332_v13 = vrot.slane %v2330_v53, 4 }
  0xa7   : > { %v1443_v44 = vshrl.u32 %v1322_v25, 16  ;;  %v1432_v48 = vrot.slane %v1430_v26, 4 }
  0xa8   : > { %690 = vst.msk [vmem:[#allocation2] sm:$0xff] %vm243_vm1, %v674_v46  ;;  %5484 = vmatmul.msk.bf16.vlgmr.msrb.gmra.mxu1 %vm243_vm1, %v1768_v33  ;;  %v286_v55 = vpop.f32.mrf.mxu0  ;;  %v659_v16 = vld [vmem:[#allocation2 + $0x8] sm:$0xff]  ;;  %v1997_v33 = vshrl.u32 %v5501_v14, 16  ;;  %v1413_v58 = vrot.slane %v1412_v37, 4 }
  0xa9   : > { %323 = vst.msk [vmem:[#allocation2 + $0x10] sm:$0xff] %vm243_vm1, %v286_v55  ;;  %v1320_v46 = vld [vmem:[%s6218_s7 + $0x2c] sm:$0x1] }
  0xaa   : > { %v1999_v55 = vrot.slane %v1997_v33, 4  ;;  %v1425_v7 = vshll.u32 %v1320_v46, 16  ;;  %v2018_v33 = vrot.slane %v2016_v8, 5  ;;  %v5534_v8 = vld [vmem:[%s6218_s7 + $0x30] sm:$0xe] }
  0xab   : > { %5468 = vmatmul.msk.bf16.gmra.mxu0 %vm243_vm1, %v1544_v38  ;;  %5558 = vmatmul.msk.bf16.vlgmr.msrb.gmra.mxu3 %vm243_vm1, %v2388_v34  ;;  %v2000_v34 = vshll.u32 %v5501_v14, 16  ;;  %v2006_v38 = vshll.u32 %v5502_v22, 16  ;;  %v2333_v14 = vrot.slane %v5533_v59, 5 }
  0xac   : > { %5518 = vmatmul.msk.bf16.gmra.mxu2 %vm243_vm1, %v2135_v51  ;;  %v1427_v32 = vrot.slane %v1425_v7, 5  ;;  %v1445_v7 = vrot.slane %v1443_v44, 4 }
  0xad   : > { %v620_v15 = vpop.f32.mrf.mxu1  ;;  %v2002_v56 = vrot.slane %v2000_v34, 5  ;;  %v6581_v60 = vrot.slane %v2006_v38, 5  ;;  %v5504_v34 = vld [vmem:[%s6218_s7 + $0x3c] sm:$0xf]  ;;  %v1717_v38 = vrot.slane %v6596_v21, 5 }
  0xae   : > { %v675_v23 = vadd.f32 %v659_v16, %v620_v15  ;;  %v6557_v24 = vpop.f32.mrf.mxu3  ;;  %v2021_v49 = vshrl.u32 %v5504_v34, 16  ;;  %v2024_v50 = vshll.u32 %v5504_v34, 16 }
  0xaf   : > { %v844_v28 = vld [vmem:[#allocation2] sm:$0xff]  ;;  %v6562_v29 = vpop.f32.mrf.mxu2  ;;  %v2003_v15 = vor.u32 %v2002_v56, %v1999_v55  ;;  %v2013_v20 = vor.u32 %v2012_v61, %v6581_v60  ;;  %v5478_v61 = vrot.slane %v1652_v31, 9 }
  0xb0   : > { %v860_v35 = vadd.f32 %v844_v28, %v6494_v2  ;;  %691 = vst.msk [vmem:[#allocation2 + $0x8] sm:$0xff] %vm243_vm1, %v675_v23  ;;  %v288_v36 = vpop.f32.mrf.mxu0  ;;  %v1711_v2 = vsel %vm6446_vm7, %v5477_v19, %v1710_v63  ;;  %v660_v51 = vld [vmem:[#allocation2 + $0x10] sm:$0xff]  ;;  %v1545_v63 = vpack.c.b16 %v1532_v43, %v1531_v42  ;;  %v1418_v19 = vsel %vm6233_vm4, %v1413_v58, %v1417_v45  ;;  %v1654_v42 = vld [vmem:[%s6218_s7 + $0x2c] sm:$0x1] }
  0xb1   : > { %324 = vst.msk [vmem:[#allocation2 + $0x18] sm:$0xff] %vm243_vm1, %v288_v36  ;;  %v1756_v0 = vunpack.c.l.b16 %v1711_v2  ;;  %v6615_v36 = vsel %vm6446_vm7, %v2332_v13, %v2333_v14  ;;  %v2004_v37 = vrot.slane %v2003_v15, 4  ;;  %v1439_v43 = vshll.u32 %v1322_v25, 16  ;;  %v5536_v15 = vld [vmem:[%s6218_s7 + $0x38] sm:$0x1] }
  0xb2   : > { %876 = vst.msk [vmem:[#allocation2] sm:$0xff] %vm243_vm1, %v860_v35  ;;  %v6611_v35 = vunpack.c.l.b16 %v1418_v19  ;;  %v1435_v45 = vrot.slane %v1433_v27, 5  ;;  %v2377_v14 = vunpack.c.l.b16 %v6615_v36  ;;  %v5506_v25 = vld [vmem:[%s6218_s7 + $0x44] sm:$0x1]  ;;  %v2340_v34 = vrot.slane %v5536_v15, 5 }
  0xb3   : > { %v6599_v23 = vpack.c.b16 %v1757_v1, %v1756_v0  ;;  %v2009_v59 = vsel %vm6233_vm4, %v2004_v37, %v6581_v60  ;;  %v1323_v0 = vld [vmem:[%s6218_s7 + $0x38] sm:$0x1]  ;;  %v6641_v6 = vrot.slane %v1439_v43, 5 }
  0xb4   : > { %v1436_v60 = vor.u32 %v1435_v45, %v1432_v48  ;;  %v2124_v21 = vunpack.c.l.b16 %v2009_v59  ;;  %v1449_v27 = vshll.u32 %v1323_v0, 16 }
  0xb5   : > { %v623_v62 = vpop.f32.mrf.mxu1  ;;  %v1446_v26 = vor.u32 %v1445_v7, %v6641_v6 }
  0xb6   : > { %v676_v4 = vadd.f32 %v660_v51, %v623_v62  ;;  %v6583_v5 = vpop.f32.mrf.mxu3  ;;  %v1719_v62 = vrot.slane %v1717_v38, 4 }
  0xb7   : > { %v845_v10 = vld [vmem:[#allocation2 + $0x8] sm:$0xff]  ;;  %v6586_v11 = vpop.f32.mrf.mxu2 }
  0xb8   : > { %v861_v16 = vadd.f32 %v845_v10, %v6517_v47  ;;  %692 = vst.msk [vmem:[#allocation2 + $0x10] sm:$0xff] %vm243_vm1, %v676_v4  ;;  %5485 = vmatmul.msk.bf16.gmra.mxu1 %vm243_vm1, %v1769_v41  ;;  %v291_v17 = vpop.f32.mrf.mxu0  ;;  %v6603_v47 = vsel %vm6446_vm7, %v5551_v3, %v2330_v53  ;;  %v2014_v41 = vrot.slane %v2013_v20, 4  ;;  %v661_v2 = vld [vmem:[#allocation2 + $0x18] sm:$0xff]  ;;  %v1428_v53 = vsel %vm6233_vm4, %v1423_v30, %v1427_v32 }
  0xb9   : > { %v1210_v22 = vld [vmem:[#allocation2] sm:$0xff]  ;;  %325 = vst.msk [vmem:[#allocation2 + $0x20] sm:$0xff] %vm243_vm1, %v291_v17  ;;  %v2376_v40 = vunpack.c.l.b16 %v6603_v47  ;;  %v2337_v10 = vrot.slane %v6629_v54, 5  ;;  %v1534_v20 = vunpack.c.l.b16 %v1428_v53  ;;  %v6654_v47 = vsel %vm6446_vm7, %v5478_v61, %v1717_v38 }
  0xba   : > { %877 = vst.msk [vmem:[#allocation2 + $0x8] sm:$0xff] %vm243_vm1, %v861_v16  ;;  %v1226_v28 = vadd.f32 %v1210_v22, %v6557_v24  ;;  %v5505_v24 = vld [vmem:[%s6218_s7 + $0x40] sm:$0xf]  ;;  %v2019_v4 = vsel %vm6233_vm4, %v2014_v41, %v2018_v33  ;;  %v1437_v32 = vrot.slane %v1436_v60, 4  ;;  %v2040_v41 = vshll.u32 %v5506_v25, 16 }
  0xbb   : > { %5469 = vmatmul.msk.bf16.gmra.mxu0 %vm243_vm1, %v1545_v63  ;;  %5559 = vmatmul.msk.bf16.gmra.mxu3 %vm243_vm1, %v2389_v57  ;;  %v2030_v55 = vshll.u32 %v5505_v24, 16  ;;  %v2034_v56 = vshrl.u32 %v5505_v24, 16  ;;  %v1720_v63 = vrot.slane %v1654_v42, 5  ;;  %v2125_v22 = vunpack.c.l.b16 %v2019_v4  ;;  %v6667_v42 = vld [vmem:[%s6218_s7 + $0x34] sm:$0xf] }
  0xbc   : > { %1242 = vst.msk [vmem:[#allocation2] sm:$0xff] %vm243_vm1, %v1226_v28  ;;  %5519 = vmatmul.msk.bf16.gmra.mxu2 %vm243_vm1, %v2136_v12  ;;  %v2023_v12 = vrot.slane %v2021_v49, 4  ;;  %v5552_v28 = vrot.slane %v5534_v8, 9  ;;  %v2339_v33 = vrot.slane %v2337_v10, 4  ;;  %v2390_v38 = vpack.c.b16 %v2377_v14, %v2376_v40  ;;  %v1324_v49 = vld [vmem:[%s6218_s7 + $0x3c] sm:$0xf] }
  0xbd   : > { %v625_v46 = vpop.f32.mrf.mxu1  ;;  %v6650_v16 = vrot.slane %v2030_v55, 5  ;;  %v2036_v17 = vrot.slane %v2034_v56, 4  ;;  %v1546_v44 = vpack.c.b16 %v1534_v20, %v6611_v35  ;;  %v1758_v48 = vunpack.c.l.b16 %v6654_v47  ;;  %v1325_v54 = vld [vmem:[%s6218_s7 + $0x40] sm:$0xf] }
  0xbe   : > { %v677_v51 = vadd.f32 %v661_v2, %v625_v46  ;;  %v6624_v52 = vpop.f32.mrf.mxu3  ;;  %v2137_v2 = vpack.c.b16 %v2125_v22, %v2124_v21  ;;  %v1451_v53 = vrot.slane %v1449_v27, 5  ;;  %v6681_v35 = vsel %vm6446_vm7, %v5552_v28, %v2337_v10  ;;  %v6700_v61 = vld [vmem:[%s8354_s2] ss:$0 sm:$0xff] }
  0xbf   : > { %v846_v57 = vld [vmem:[#allocation2 + $0x10] sm:$0xff]  ;;  %v6631_v58 = vpop.f32.mrf.mxu2  ;;  %v2037_v24 = vor.u32 %v2036_v17, %v6650_v16  ;;  %v1724_v59 = vrot.slane %v6667_v42, 5  ;;  %v2042_v0 = vrot.slane %v2040_v41, 5  ;;  %v2378_v4 = vunpack.c.l.b16 %v6681_v35 }
  0xc0   : > { %v862_v1 = vadd.f32 %v846_v57, %v6562_v29  ;;  %693 = vst.msk [vmem:[#allocation2 + $0x18] sm:$0xff] %vm243_vm1, %v677_v51  ;;  %v293_v3 = vpop.f32.mrf.mxu0  ;;  %v2026_v29 = vrot.slane %v2024_v50, 5  ;;  %v662_v19 = vld [vmem:[#allocation2 + $0x20] sm:$0xff]  ;;  %v1447_v51 = vrot.slane %v1446_v26, 4  ;;  %v6694_v57 = vld [vmem:[%s6218_s7 + $0x30] sm:$0xe] }
  0xc1   : > { %v1211_v9 = vld [vmem:[#allocation2 + $0x8] sm:$0xff]  ;;  %326 = vst.msk [vmem:[#allocation2 + $0x28] sm:$0xff] %vm243_vm1, %v293_v3  ;;  %v1457_v7 = vshll.u32 %v1324_v49, 16  ;;  %v1463_v8 = vshll.u32 %v1325_v54, 16  ;;  %v1726_v17 = vrot.slane %v1724_v59, 4 }
  0xc2   : > { %878 = vst.msk [vmem:[#allocation2 + $0x10] sm:$0xff] %vm243_vm1, %v862_v1  ;;  %v1227_v13 = vadd.f32 %v1211_v9, %v6583_v5  ;;  %v6660_v5 = vsel %vm6446_vm7, %v1719_v62, %v1720_v63  ;;  %v2027_v36 = vor.u32 %v2026_v29, %v2023_v12  ;;  %v2038_v63 = vrot.slane %v2037_v24, 4  ;;  %v5507_v3 = vld [vmem:[%s6218_s7 + $0x48] sm:$0xf] }
  0xc3   : > { %v1759_v45 = vunpack.c.l.b16 %v6660_v5  ;;  %v1454_v1 = vshrl.u32 %v1324_v49, 16  ;;  %v1467_v9 = vshrl.u32 %v1325_v54, 16  ;;  %v5479_v12 = vrot.slane %v6694_v57, 9  ;;  %v1258_v29 = vld [vmem:[#allocation2] sm:$0xff] }
  0xc4   : > { %1243 = vst.msk [vmem:[#allocation2 + $0x8] sm:$0xff] %vm243_vm1, %v1227_v13  ;;  %v2028_v56 = vrot.slane %v2027_v36, 4  ;;  %v2045_v20 = vshrl.u32 %v5507_v3, 16  ;;  %v2048_v21 = vshll.u32 %v5507_v3, 16  ;;  %v2043_v26 = vsel %vm6233_vm4, %v2038_v63, %v2042_v0 }
  0xc5   : > { %v628_v30 = vpop.f32.mrf.mxu1  ;;  %v1456_v28 = vrot.slane %v1454_v1, 4  ;;  %v6730_v36 = vrot.slane %v1463_v8, 5 }
  0xc6   : > { %v678_v37 = vadd.f32 %v662_v19, %v628_v30  ;;  %v6663_v31 = vpop.f32.mrf.mxu3  ;;  %v2033_v15 = vsel %vm6233_vm4, %v2028_v56, %v6650_v16  ;;  %v5508_v19 = vld [vmem:[%s6218_s7 + $0x4c] sm:$0xf]  ;;  %v1459_v16 = vrot.slane %v1457_v7, 5 }
  0xc7   : > { %v847_v43 = vld [vmem:[#allocation2 + $0x18] sm:$0xff]  ;;  %v6670_v46 = vpop.f32.mrf.mxu2 }
  0xc8   : > { %v863_v40 = vadd.f32 %v847_v43, %v6586_v11  ;;  %694 = vst.msk [vmem:[#allocation2 + $0x20] sm:$0xff] %vm243_vm1, %v678_v37  ;;  %5486 = vmatmul.msk.bf16.gmra.mxu1 %vm243_vm1, %v6599_v23  ;;  %v296_v50 = vpop.f32.mrf.mxu0  ;;  %v1442_v11 = vsel %vm6233_vm4, %v1437_v32, %v6641_v6  ;;  %v6691_v23 = vsel %vm6446_vm7, %v2339_v33, %v2340_v34  ;;  %v1657_v6 = vld [vmem:[%s6218_s7 + $0x38] sm:$0x1]  ;;  %v663_v14 = vld [vmem:[#allocation2 + $0x28] sm:$0xff]  ;;  %v1326_v34 = vld [vmem:[%s6218_s7 + $0x44] sm:$0x1] }
  0xc9   : > { %v1212_v55 = vld [vmem:[#allocation2 + $0x10] sm:$0xff]  ;;  %327 = vst.msk [vmem:[#allocation2 + $0x30] sm:$0xff] %vm243_vm1, %v296_v50  ;;  %v6713_v60 = vunpack.c.l.b16 %v1442_v11  ;;  %v2379_v10 = vunpack.c.l.b16 %v6691_v23  ;;  %v1727_v27 = vrot.slane %v1657_v6, 5  ;;  %v1469_v37 = vrot.slane %v1467_v9, 4  ;;  %v5538_v43 = vld [vmem:[%s6218_s7 + $0x40] sm:$0xf] }
  0xca   : > { %879 = vst.msk [vmem:[#allocation2 + $0x18] sm:$0xff] %vm243_vm1, %v863_v40  ;;  %v1228_v62 = vadd.f32 %v1212_v55, %v6624_v52  ;;  %v1452_v52 = vsel %vm6233_vm4, %v1447_v51, %v1451_v53  ;;  %v6739_v40 = vunpack.c.l.b16 %v2033_v15  ;;  %v5537_v50 = vld [vmem:[%s6218_s7 + $0x3c] sm:$0xe]  ;;  %v2047_v51 = vrot.slane %v2045_v20, 4 }
  0xcb   : > { %5470 = vmatmul.msk.bf16.gmra.mxu0 %vm243_vm1, %v1546_v44  ;;  %5560 = vmatmul.msk.bf16.gmra.mxu3 %vm243_vm1, %v2390_v38  ;;  %v1259_v30 = vld [vmem:[#allocation2 + $0x8] sm:$0xff]  ;;  %v1277_v38 = vadd.f32 %v6700_v61, %v1258_v29  ;;  %v6735_v42 = vunpack.c.l.b16 %v1452_v52  ;;  %v2054_v44 = vshll.u32 %v5508_v19, 16  ;;  %v2050_v53 = vrot.slane %v2048_v21, 5 }
  0xcc   : > { %1244 = vst.msk [vmem:[#allocation2 + $0x10] sm:$0xff] %vm243_vm1, %v1228_v62  ;;  %5520 = vmatmul.msk.bf16.gmra.mxu2 %vm243_vm1, %v2137_v2  ;;  %v2058_v2 = vshrl.u32 %v5508_v19, 16  ;;  %v2127_v55 = vunpack.c.l.b16 %v2043_v26  ;;  %v1725_v11 = vsel %vm6446_vm7, %v5479_v12, %v1724_v59  ;;  %v1473_v23 = vshll.u32 %v1326_v34, 16  ;;  %v5539_v59 = vld [vmem:[%s6218_s7 + $0x44] sm:$0x1] }
  0xcd   : > { %v630_v13 = vpop.f32.mrf.mxu1  ;;  %v1728_v57 = vsel %vm6446_vm7, %v1726_v17, %v1727_v27  ;;  %v1460_v62 = vor.u32 %v1459_v16, %v1456_v28  ;;  %v1470_v63 = vor.u32 %v1469_v37, %v6730_v36  ;;  %v2344_v0 = vrot.slane %v5538_v43, 5  ;;  %1293 = vst.msk [vmem:[%s6751_s30] sm:$0xff] %vm243_vm1, %v1277_v38  ;;  %v5509_v12 = vld [vmem:[%s6218_s7 + $0x50] sm:$0x1]  ;;  %v6790_v26 = vld [vmem:[%s6218_s7 + $0x40] sm:$0xf] }
  0xce   : > { %v679_v22 = vadd.f32 %v663_v14, %v630_v13  ;;  %v6723_v25 = vpop.f32.mrf.mxu3  ;;  %v5553_v1 = vrot.slane %v5537_v50, 9  ;;  %v6761_v3 = vrot.slane %v2054_v44, 5  ;;  %v2060_v6 = vrot.slane %v2058_v2, 4  ;;  %v1327_v27 = vld [vmem:[%s6218_s7 + $0x48] sm:$0xf] }
  0xcf   : > { %v848_v32 = vld [vmem:[#allocation2 + $0x20] sm:$0xff]  ;;  %v6727_v33 = vpop.f32.mrf.mxu2  ;;  %v1547_v8 = vpack.c.b16 %v6735_v42, %v6713_v60  ;;  %v2391_v9 = vpack.c.b16 %v2379_v10, %v2378_v4  ;;  %v1760_v52 = vunpack.c.l.b16 %v1725_v11  ;;  %v2051_v29 = vor.u32 %v2050_v53, %v2047_v51  ;;  %v1328_v34 = vld [vmem:[%s6218_s7 + $0x4c] sm:$0xf]  ;;  %v1658_v38 = vld [vmem:[%s6218_s7 + $0x3c] sm:$0xe] }
  0xd0   : > { %v864_v24 = vadd.f32 %v848_v32, %v6631_v58  ;;  %695 = vst.msk [vmem:[#allocation2 + $0x28] sm:$0xff] %vm243_vm1, %v679_v22  ;;  %v298_v41 = vpop.f32.mrf.mxu0  ;;  %v1278_v58 = vadd.f32 %v6700_v61, %v1259_v30  ;;  %v664_v56 = vld [vmem:[#allocation2 + $0x30] sm:$0xff]  ;;  %v6773_v13 = vrot.slane %v1473_v23, 5  ;;  %v6777_v35 = vrot.slane %v1460_v62, 4  ;;  %v1660_v2 = vld [vmem:[%s6218_s7 + $0x44] sm:$0x1] }
  0xd1   : > { %v1213_v49 = vld [vmem:[#allocation2 + $0x18] sm:$0xff]  ;;  %328 = vst.msk [vmem:[#allocation2 + $0x38] sm:$0xff] %vm243_vm1, %v298_v41  ;;  %v6779_v4 = vrot.slane %v1470_v63, 4  ;;  %v2346_v10 = vrot.slane %v2344_v0, 4  ;;  %v2347_v15 = vrot.slane %v5539_v59, 5  ;;  %v6786_v20 = vsel %vm6446_vm7, %v5553_v1, %v2344_v0 }
  0xd2   : > { %880 = vst.msk [vmem:[#allocation2 + $0x20] sm:$0xff] %vm243_vm1, %v864_v24  ;;  %v1229_v54 = vadd.f32 %v1213_v49, %v6663_v31  ;;  %v1771_v31 = vpack.c.b16 %v1759_v45, %v1758_v48  ;;  %v2138_v48 = vpack.c.b16 %v2127_v55, %v6739_v40  ;;  %v1761_v45 = vunpack.c.l.b16 %v1728_v57  ;;  %v5511_v55 = vld [vmem:[%s6218_s7 + $0x58] sm:$0xf] }
  0xd3   : > { %1294 = vst.msk [vmem:[%s6751_s30 + $0x8] sm:$0xff] %vm243_vm1, %v1278_v58  ;;  %v2061_v21 = vor.u32 %v2060_v6, %v6761_v3  ;;  %v2064_v22 = vshll.u32 %v5509_v12, 16  ;;  %v1466_v16 = vsel %vm6233_vm4, %v6777_v35, %v6730_v36  ;;  %v2380_v37 = vunpack.c.l.b16 %v6786_v20  ;;  %v1260_v49 = vld [vmem:[#allocation2 + $0x10] sm:$0xff] }
  0xd4   : > { %1245 = vst.msk [vmem:[#allocation2 + $0x18] sm:$0xff] %vm243_vm1, %v1229_v54  ;;  %v6796_v32 = vpack.c.b16 %v1761_v45, %v1760_v52  ;;  %v1731_v24 = vrot.slane %v6790_v26, 5  ;;  %v1478_v41 = vshrl.u32 %v1327_v27, 16  ;;  %v1476_v42 = vsel %vm6233_vm4, %v6779_v4, %v6773_v13  ;;  %v1329_v35 = vld [vmem:[%s6218_s7 + $0x50] sm:$0x1] }
  0xd5   : > { %v633_v7 = vpop.f32.mrf.mxu1  ;;  %v6817_v36 = vsel %vm6446_vm7, %v2346_v10, %v2347_v15  ;;  %v2062_v43 = vrot.slane %v2061_v21, 4  ;;  %v2066_v44 = vrot.slane %v2064_v22, 5  ;;  %v1481_v53 = vshll.u32 %v1327_v27, 16  ;;  %v5540_v26 = vld [vmem:[%s6218_s7 + $0x48] sm:$0xe] }
  0xd6   : > { %v680_v47 = vadd.f32 %v664_v56, %v633_v7  ;;  %v6770_v5 = vpop.f32.mrf.mxu3  ;;  %v1487_v58 = vshll.u32 %v1328_v34, 16  ;;  %v1491_v54 = vshrl.u32 %v1328_v34, 16  ;;  %v5480_v56 = vrot.slane %v1658_v38, 9  ;;  %v5541_v27 = vld [vmem:[%s6218_s7 + $0x4c] sm:$0xf] }
  0xd7   : > { %v849_v14 = vld [vmem:[#allocation2 + $0x28] sm:$0xff]  ;;  %v6775_v60 = vpop.f32.mrf.mxu2  ;;  %v1733_v59 = vrot.slane %v1731_v24, 4  ;;  %v1734_v1 = vrot.slane %v1660_v2, 5  ;;  %v1480_v6 = vrot.slane %v1478_v41, 4  ;;  %v1279_v7 = vadd.f32 %v6700_v61, %v1260_v49 }
  0xd8   : > { %v865_v17 = vadd.f32 %v849_v14, %v6670_v46  ;;  %696 = vst.msk [vmem:[#allocation2 + $0x30] sm:$0xff] %vm243_vm1, %v680_v47  ;;  %5487 = vmatmul.msk.bf16.gmra.mxu1 %vm243_vm1, %v1771_v31  ;;  %v301_v19 = vpop.f32.mrf.mxu0  ;;  %v2052_v46 = vrot.slane %v2051_v29, 4  ;;  %v665_v50 = vld [vmem:[#allocation2 + $0x38] sm:$0xff]  ;;  %v2078_v52 = vshll.u32 %v5511_v55, 16  ;;  %v2082_v12 = vshrl.u32 %v5511_v55, 16 }
  0xd9   : > { %v1214_v28 = vld [vmem:[#allocation2 + $0x20] sm:$0xff]  ;;  %329 = vst.msk [vmem:[#allocation2 + $0x40] sm:$0xff] %vm243_vm1, %v301_v19  ;;  %v1483_v47 = vrot.slane %v1481_v53, 5  ;;  %v1493_v45 = vrot.slane %v1491_v54, 4  ;;  %v1537_v14 = vunpack.c.l.b16 %v1466_v16  ;;  %v2381_v19 = vunpack.c.l.b16 %v6817_v36  ;;  %v5542_v36 = vld [vmem:[%s6218_s7 + $0x50] sm:$0x1] }
  0xda   : > { %881 = vst.msk [vmem:[#allocation2 + $0x28] sm:$0xff] %vm243_vm1, %v865_v17  ;;  %v1230_v30 = vadd.f32 %v1214_v28, %v6723_v25  ;;  %v5510_v25 = vld [vmem:[%s6218_s7 + $0x54] sm:$0xf]  ;;  %v2057_v51 = vsel %vm6233_vm4, %v2052_v46, %v6761_v3  ;;  %v1538_v17 = vunpack.c.l.b16 %v1476_v42  ;;  %v1732_v22 = vsel %vm6446_vm7, %v5480_v56, %v1731_v24  ;;  %v5512_v24 = vld [vmem:[%s6218_s7 + $0x5c] sm:$0x1] }
  0xdb   : > { %5471 = vmatmul.msk.bf16.gmra.mxu0 %vm243_vm1, %v1547_v8  ;;  %5561 = vmatmul.msk.bf16.gmra.mxu3 %vm243_vm1, %v2391_v9  ;;  %v2069_v57 = vshrl.u32 %v5510_v25, 16  ;;  %v2072_v62 = vshll.u32 %v5510_v25, 16  ;;  %v1261_v63 = vld [vmem:[#allocation2 + $0x18] sm:$0xff]  ;;  %v2067_v9 = vsel %vm6233_vm4, %v2062_v43, %v2066_v44  ;;  %v2128_v21 = vunpack.c.l.b16 %v2057_v51  ;;  %1295 = vst.msk [vmem:[%s6751_s30 + $0x10] sm:$0xff] %vm243_vm1, %v1279_v7 }
  0xdc   : > { %1246 = vst.msk [vmem:[#allocation2 + $0x20] sm:$0xff] %vm243_vm1, %v1230_v30  ;;  %5521 = vmatmul.msk.bf16.gmra.mxu2 %vm243_vm1, %v2138_v48  ;;  %v6834_v48 = vrot.slane %v1487_v58, 5  ;;  %v1735_v28 = vsel %vm6446_vm7, %v1733_v59, %v1734_v1  ;;  %v6850_v46 = vrot.slane %v2078_v52, 5  ;;  %v2084_v30 = vrot.slane %v2082_v12, 4 }
  0xdd   : > { %v635_v40 = vpop.f32.mrf.mxu1  ;;  %v2071_v4 = vrot.slane %v2069_v57, 4  ;;  %v2074_v10 = vrot.slane %v2072_v62, 5  ;;  %v1484_v16 = vor.u32 %v1483_v47, %v1480_v6  ;;  %v1497_v41 = vshll.u32 %v1329_v35, 16  ;;  %v1330_v6 = vld [vmem:[%s6218_s7 + $0x54] sm:$0xf] }
  0xde   : > { %v681_v11 = vadd.f32 %v665_v50, %v635_v40  ;;  %v6824_v23 = vpop.f32.mrf.mxu3  ;;  %v1494_v38 = vor.u32 %v1493_v45, %v6834_v48  ;;  %v5554_v43 = vrot.slane %v5540_v26, 9  ;;  %v2351_v44 = vrot.slane %v5541_v27, 5  ;;  %v5513_v45 = vld [vmem:[%s6218_s7 + $0x60] sm:$0xf] }
  0xdf   : > { %v850_v0 = vld [vmem:[#allocation2 + $0x30] sm:$0xff]  ;;  %v6826_v31 = vpop.f32.mrf.mxu2  ;;  %v2075_v2 = vor.u32 %v2074_v10, %v2071_v4  ;;  %v1548_v40 = vpack.c.b16 %v1538_v17, %v1537_v14  ;;  %v2392_v50 = vpack.c.b16 %v2381_v19, %v2380_v37  ;;  %v1762_v53 = vunpack.c.l.b16 %v1732_v22  ;;  %v5514_v10 = vld [vmem:[%s6218_s7 + $0x64] sm:$0xf] }
  0xe0   : > { %v866_v3 = vadd.f32 %v850_v0, %v6727_v33  ;;  %697 = vst.msk [vmem:[#allocation2 + $0x38] sm:$0xff] %vm243_vm1, %v681_v11  ;;  %v303_v8 = vpop.f32.mrf.mxu0  ;;  %v1280_v33 = vadd.f32 %v6700_v61, %v1261_v63  ;;  %v666_v15 = vld [vmem:[#allocation2 + $0x40] sm:$0xff]  ;;  %v1763_v58 = vunpack.c.l.b16 %v1735_v28  ;;  %v2085_v56 = vor.u32 %v2084_v30, %v6850_v46 }
  0xe1   : > { %v1215_v29 = vld [vmem:[#allocation2 + $0x28] sm:$0xff]  ;;  %330 = vst.msk [vmem:[#allocation2 + $0x48] sm:$0xff] %vm243_vm1, %v303_v8  ;;  %v2088_v57 = vshll.u32 %v5512_v24, 16  ;;  %v1485_v20 = vrot.slane %v1484_v16, 4  ;;  %v1495_v37 = vrot.slane %v1494_v38, 4  ;;  %v1499_v63 = vrot.slane %v1497_v41, 5 }
  0xe2   : > { %882 = vst.msk [vmem:[#allocation2 + $0x30] sm:$0xff] %vm243_vm1, %v866_v3  ;;  %v1231_v13 = vadd.f32 %v1215_v29, %v6770_v5  ;;  %v2129_v5 = vunpack.c.l.b16 %v2067_v9  ;;  %v2354_v0 = vrot.slane %v5542_v36, 5  ;;  %v2353_v59 = vrot.slane %v2351_v44, 4  ;;  %v1661_v38 = vld [vmem:[%s6218_s7 + $0x48] sm:$0xe] }
  0xe3   : > { %1296 = vst.msk [vmem:[%s6751_s30 + $0x18] sm:$0xff] %vm243_vm1, %v1280_v33  ;;  %v2076_v1 = vrot.slane %v2075_v2, 4  ;;  %v2086_v7 = vrot.slane %v2085_v56, 4  ;;  %v2090_v3 = vrot.slane %v2088_v57, 5  ;;  %v1262_v8 = vld [vmem:[#allocation2 + $0x20] sm:$0xff]  ;;  %v6881_v12 = vpack.c.b16 %v1763_v58, %v1762_v53 }
  0xe4   : > { %1247 = vst.msk [vmem:[#allocation2 + $0x28] sm:$0xff] %vm243_vm1, %v1231_v13  ;;  %v2139_v11 = vpack.c.b16 %v2129_v5, %v2128_v21  ;;  %v1490_v29 = vsel %vm6233_vm4, %v1485_v20, %v6834_v48  ;;  %v1500_v14 = vsel %vm6233_vm4, %v1495_v37, %v1499_v63  ;;  %v2355_v35 = vsel %vm6446_vm7, %v2353_v59, %v2354_v0 }
  0xe5   : > { %v638_v34 = vpop.f32.mrf.mxu1  ;;  %v2081_v4 = vsel %vm6233_vm4, %v2076_v1, %v6850_v46  ;;  %v1502_v19 = vshrl.u32 %v1330_v6, 16  ;;  %v1505_v21 = vshll.u32 %v1330_v6, 16  ;;  %v1281_v26 = vadd.f32 %v6700_v61, %v1262_v8  ;;  %v6906_v46 = vld [vmem:[%s6218_s7 + $0x4c] sm:$0xf] }
  0xe6   : > { %v682_v25 = vadd.f32 %v666_v15, %v638_v34  ;;  %v6856_v42 = vpop.f32.mrf.mxu3  ;;  %v2091_v28 = vsel %vm6233_vm4, %v2086_v7, %v2090_v3  ;;  %v2093_v34 = vshrl.u32 %v5513_v45, 16  ;;  %v2096_v41 = vshll.u32 %v5513_v45, 16 }
  0xe7   : > { %v851_v49 = vld [vmem:[#allocation2 + $0x38] sm:$0xff]  ;;  %v6861_v51 = vpop.f32.mrf.mxu2  ;;  %v2102_v24 = vshll.u32 %v5514_v10, 16  ;;  %v2383_v2 = vunpack.c.l.b16 %v2355_v35  ;;  %v2130_v53 = vunpack.c.l.b16 %v2081_v4  ;;  %v1738_v58 = vrot.slane %v6906_v46, 5  ;;  %1297 = vst.msk [vmem:[%s6751_s30 + $0x20] sm:$0xff] %vm243_vm1, %v1281_v26 }
  0xe8   : > { %v867_v54 = vadd.f32 %v851_v49, %v6775_v60  ;;  %698 = vst.msk [vmem:[#allocation2 + $0x40] sm:$0xff] %vm243_vm1, %v682_v25  ;;  %5488 = vmatmul.msk.bf16.gmra.mxu1 %vm243_vm1, %v6796_v32  ;;  %v306_v55 = vpop.f32.mrf.mxu0  ;;  %v6873_v32 = vsel %vm6446_vm7, %v5554_v43, %v2351_v44  ;;  %v667_v52 = vld [vmem:[#allocation2 + $0x48] sm:$0xff]  ;;  %v1539_v43 = vunpack.c.l.b16 %v1490_v29  ;;  %v1540_v44 = vunpack.c.l.b16 %v1500_v14  ;;  %v1663_v49 = vld [vmem:[%s6218_s7 + $0x50] sm:$0x1] }
  0xe9   : > { %v1216_v62 = vld [vmem:[#allocation2 + $0x30] sm:$0xff]  ;;  %331 = vst.msk [vmem:[#allocation2 + $0x50] sm:$0xff] %vm243_vm1, %v306_v55  ;;  %v2382_v47 = vunpack.c.l.b16 %v6873_v32  ;;  %v1507_v55 = vrot.slane %v1505_v21, 5  ;;  %v2131_v56 = vunpack.c.l.b16 %v2091_v28  ;;  %v2095_v63 = vrot.slane %v2093_v34, 4 }
  0xea   : > { %883 = vst.msk [vmem:[#allocation2 + $0x38] sm:$0xff] %vm243_vm1, %v867_v54  ;;  %v1232_v60 = vadd.f32 %v1216_v62, %v6824_v23  ;;  %v1331_v23 = vld [vmem:[%s6218_s7 + $0x58] sm:$0xf]  ;;  %v1504_v54 = vrot.slane %v1502_v19, 4  ;;  %v2098_v0 = vrot.slane %v2096_v41, 5  ;;  %v1549_v6 = vpack.c.b16 %v1540_v44, %v1539_v43 }
  0xeb   : > { %5472 = vmatmul.msk.bf16.gmra.mxu0 %vm243_vm1, %v1548_v40  ;;  %5562 = vmatmul.msk.bf16.gmra.mxu3 %vm243_vm1, %v2392_v50  ;;  %v1263_v15 = vld [vmem:[#allocation2 + $0x28] sm:$0xff]  ;;  %v1511_v22 = vshll.u32 %v1331_v23, 16  ;;  %v1515_v30 = vshrl.u32 %v1331_v23, 16  ;;  %v1332_v40 = vld [vmem:[%s6218_s7 + $0x5c] sm:$0x1]  ;;  %v2393_v7 = vpack.c.b16 %v2383_v2, %v2382_v47  ;;  %v5481_v3 = vrot.slane %v1661_v38, 9 }
  0xec   : > { %1248 = vst.msk [vmem:[#allocation2 + $0x30] sm:$0xff] %vm243_vm1, %v1232_v60  ;;  %5522 = vmatmul.msk.bf16.gmra.mxu2 %vm243_vm1, %v2139_v11  ;;  %v1282_v25 = vadd.f32 %v6700_v61, %v1263_v15  ;;  %v6922_v62 = vld [vmem:[%s6218_s7 + $0x58] sm:$0xf]  ;;  %v6925_v60 = vrot.slane %v2102_v24, 5  ;;  %v5515_v23 = vld [vmem:[%s6218_s7 + $0x68] sm:$0x1]  ;;  %v1508_v45 = vor.u32 %v1507_v55, %v1504_v54  ;;  %v2140_v35 = vpack.c.b16 %v2131_v56, %v2130_v53 }
  0xed   : > { %v640_v9 = vpop.f32.mrf.mxu1  ;;  %v1517_v57 = vrot.slane %v1515_v30, 4  ;;  %v1741_v29 = vrot.slane %v1663_v49, 5  ;;  %v2358_v15 = vrot.slane %v6922_v62, 5  ;;  %v5545_v19 = vld [vmem:[%s6218_s7 + $0x5c] sm:$0x1]  ;;  %v2099_v21 = vor.u32 %v2098_v0, %v2095_v63 }
  0xee   : > { %v683_v33 = vadd.f32 %v667_v52, %v640_v9  ;;  %v6888_v13 = vpop.f32.mrf.mxu3  ;;  %1298 = vst.msk [vmem:[%s6751_s30 + $0x28] sm:$0xff] %vm243_vm1, %v1282_v25  ;;  %v1740_v52 = vrot.slane %v1738_v58, 4  ;;  %v1665_v2 = vld [vmem:[%s6218_s7 + $0x58] sm:$0xf]  ;;  %v1664_v63 = vld [vmem:[%s6218_s7 + $0x54] sm:$0xe] }
  0xef   : > { %v852_v48 = vld [vmem:[#allocation2 + $0x40] sm:$0xff]  ;;  %v6898_v17 = vpop.f32.mrf.mxu2  ;;  %v2360_v34 = vrot.slane %v2358_v15, 4  ;;  %v1666_v0 = vld [vmem:[%s6218_s7 + $0x5c] sm:$0x1] }
  0xf0   : > { %v868_v27 = vadd.f32 %v852_v48, %v6826_v31  ;;  %699 = vst.msk [vmem:[#allocation2 + $0x48] sm:$0xff] %vm243_vm1, %v683_v33  ;;  %v308_v5 = vpop.f32.mrf.mxu0  ;;  %v2106_v31 = vshrl.u32 %v5514_v10, 16  ;;  %v668_v50 = vld [vmem:[#allocation2 + $0x50] sm:$0xff]  ;;  %v1521_v33 = vshll.u32 %v1332_v40, 16 }
  0xf1   : > { %v1217_v16 = vld [vmem:[#allocation2 + $0x38] sm:$0xff]  ;;  %332 = vst.msk [vmem:[#allocation2 + $0x58] sm:$0xff] %vm243_vm1, %v308_v5  ;;  %v5543_v10 = vld [vmem:[%s6218_s7 + $0x54] sm:$0xe]  ;;  %v1509_v5 = vrot.slane %v1508_v45, 4 }
  0xf2   : > { %884 = vst.msk [vmem:[#allocation2 + $0x40] sm:$0xff] %vm243_vm1, %v868_v27  ;;  %v1233_v36 = vadd.f32 %v1217_v16, %v6856_v42  ;;  %v6919_v42 = vrot.slane %v1511_v22, 5  ;;  %v2108_v32 = vrot.slane %v2106_v31, 4  ;;  %v1742_v27 = vsel %vm6446_vm7, %v1740_v52, %v1741_v29 }
  0xf3   : > { %v1264_v11 = vld [vmem:[#allocation2 + $0x30] sm:$0xff]  ;;  %v1523_v28 = vrot.slane %v1521_v33, 5  ;;  %v5555_v46 = vrot.slane %v5543_v10, 9  ;;  %v2361_v16 = vrot.slane %v5545_v19, 5  ;;  %v2100_v31 = vrot.slane %v2099_v21, 4 }
  0xf4   : > { %1249 = vst.msk [vmem:[#allocation2 + $0x38] sm:$0xff] %vm243_vm1, %v1233_v36  ;;  %v1283_v20 = vadd.f32 %v6700_v61, %v1264_v11  ;;  %v1518_v4 = vor.u32 %v1517_v57, %v6919_v42  ;;  %v2109_v22 = vor.u32 %v2108_v32, %v6925_v60  ;;  %v1765_v53 = vunpack.c.l.b16 %v1742_v27 }
  0xf5   : > { %v643_v37 = vpop.f32.mrf.mxu1  ;;  %v1514_v11 = vsel %vm6233_vm4, %v1509_v5, %v6919_v42  ;;  %v2362_v57 = vsel %vm6446_vm7, %v2360_v34, %v2361_v16  ;;  %v5482_v33 = vrot.slane %v1664_v63, 9  ;;  %v5639_v5 = vld [vmem:[%s6218_s7 + $0xc] sm:$0xf] }
  0xf6   : > { %v684_v59 = vadd.f32 %v668_v50, %v643_v37  ;;  %v6929_v1 = vpop.f32.mrf.mxu3  ;;  %1299 = vst.msk [vmem:[%s6751_s30 + $0x30] sm:$0xff] %vm243_vm1, %v1283_v20  ;;  %v2110_v25 = vrot.slane %v2109_v22, 4  ;;  %v1745_v37 = vrot.slane %v1665_v2, 5  ;;  %v5546_v22 = vld [vmem:[%s6218_s7 + $0x60] sm:$0xe] }
  0xf7   : > { %v853_v8 = vld [vmem:[#allocation2 + $0x48] sm:$0xff]  ;;  %v6934_v9 = vpop.f32.mrf.mxu2  ;;  %v5556_v34 = vrot.slane %v5546_v22, 9 }
  0xf8   : > { %v869_v14 = vadd.f32 %v853_v8, %v6861_v51  ;;  %700 = vst.msk [vmem:[#allocation2 + $0x50] sm:$0xff] %vm243_vm1, %v684_v59  ;;  %5489 = vmatmul.msk.bf16.gmra.mxu1 %vm243_vm1, %v6881_v12  ;;  %v311_v47 = vpop.f32.mrf.mxu0  ;;  %v2112_v51 = vshll.u32 %v5515_v23, 16  ;;  %v1739_v12 = vsel %vm6446_vm7, %v5481_v3, %v1738_v58  ;;  %v669_v24 = vld [vmem:[#allocation2 + $0x58] sm:$0xff]  ;;  %v2359_v58 = vsel %vm6446_vm7, %v5555_v46, %v2358_v15  ;;  %v5547_v23 = vld [vmem:[%s6218_s7 + $0x64] sm:$0xf] }
  0xf9   : > { %v1218_v48 = vld [vmem:[#allocation2 + $0x40] sm:$0xff]  ;;  %333 = vst.msk [vmem:[#allocation2 + $0x60] sm:$0xff] %vm243_vm1, %v311_v47  ;;  %v1764_v50 = vunpack.c.l.b16 %v1739_v12  ;;  %v1541_v59 = vunpack.c.l.b16 %v1514_v11  ;;  %v2385_v3 = vunpack.c.l.b16 %v2362_v57  ;;  %v1748_v47 = vrot.slane %v1666_v0, 5 }
  0xfa   : > { %885 = vst.msk [vmem:[#allocation2 + $0x48] sm:$0xff] %vm243_vm1, %v869_v14  ;;  %v1234_v26 = vadd.f32 %v1218_v48, %v6888_v13  ;;  %v1519_v13 = vrot.slane %v1518_v4, 4  ;;  %v2114_v36 = vrot.slane %v2112_v51, 5  ;;  %v1747_v14 = vrot.slane %v1745_v37, 4  ;;  %v5548_v51 = vld [vmem:[%s6218_s7 + $0x68] sm:$0x1] }
  0xfb   : > { %5473 = vmatmul.msk.bf16.gmra.mxu0 %vm243_vm1, %v1549_v6  ;;  %5563 = vmatmul.msk.bf16.gmra.mxu3 %vm243_vm1, %v2393_v7  ;;  %v1265_v30 = vld [vmem:[#allocation2 + $0x38] sm:$0xff]  ;;  %v2384_v7 = vunpack.c.l.b16 %v2359_v58  ;;  %v2365_v10 = vrot.slane %v5547_v23, 5  ;;  %v1746_v46 = vsel %vm6446_vm7, %v5482_v33, %v1745_v37 }
  0xfc   : > { %1250 = vst.msk [vmem:[#allocation2 + $0x40] sm:$0xff] %vm243_vm1, %v1234_v26  ;;  %5523 = vmatmul.msk.bf16.gmra.mxu2 %vm243_vm1, %v2140_v35  ;;  %v1284_v38 = vadd.f32 %v6700_v61, %v1265_v30  ;;  %v1524_v56 = vsel %vm6233_vm4, %v1519_v13, %v1523_v28  ;;  %v2115_v20 = vsel %vm6233_vm4, %v2110_v25, %v2114_v36  ;;  %v5640_v13 = vld [vmem:[%s6218_s7 + $0x10] sm:$0xf]  ;;  %v2747_v36 = vshll.u32 %v5639_v5, 16 }
  0xfd   : > { %v645_v41 = vpop.f32.mrf.mxu1  ;;  %v1542_v6 = vunpack.c.l.b16 %v1524_v56  ;;  %v2133_v29 = vunpack.c.l.b16 %v2115_v20  ;;  %v2394_v19 = vpack.c.b16 %v2385_v3, %v2384_v7  ;;  %v1749_v30 = vsel %vm6446_vm7, %v1747_v14, %v1748_v47  ;;  %v5641_v7 = vld [vmem:[%s6218_s7 + $0x14] sm:$0x1] }
  0xfe   : > { %v685_v43 = vadd.f32 %v669_v24, %v645_v41  ;;  %v1195_v44 = vpop.f32.mrf.mxu3  ;;  %1300 = vst.msk [vmem:[%s6751_s30 + $0x38] sm:$0xff] %vm243_vm1, %v1284_v38  ;;  %v2367_v16 = vrot.slane %v2365_v10, 4  ;;  %v2368_v38 = vrot.slane %v5548_v51, 5  ;;  %v5804_v41 = vld [vmem:[%s8353_s1 + $0xa] sm:$0x3]  ;;  %v1767_v58 = vunpack.c.l.b16 %v1749_v30 }
  0xff   : > { %v854_v49 = vld [vmem:[#allocation2 + $0x50] sm:$0xff]  ;;  %v6960_v40 = vpop.f32.mrf.mxu2  ;;  %v1550_v48 = vpack.c.b16 %v1542_v6, %v1541_v59  ;;  %v3953_v24 = vsel %vm268_vm0, %v5804_v41, 0  ;;  %v2366_v57 = vsel %vm6446_vm7, %v5556_v34, %v2365_v10  ;;  %v2749_v3 = vrot.slane %v2747_v36, 5  ;;  %v5975_v36 = vld [vmem:[%s6218_s7 + $0x18] sm:$0xff] }
 0x100   : > { %v870_v54 = vadd.f32 %v854_v49, %v6898_v17  ;;  %701 = vst.msk [vmem:[#allocation2 + $0x58] sm:$0xff] %vm243_vm1, %v685_v43  ;;  %v313_v55 = vpop.f32.mrf.mxu0  ;;  %v2105_v17 = vsel %vm6233_vm4, %v2100_v31, %v6925_v60  ;;  %v670_v32 = vld [vmem:[#allocation2 + $0x60] sm:$0xff]  ;;  %v1774_v60 = vpack.c.b16 %v1765_v53, %v1764_v50  ;;  %v2744_v31 = vshrl.u32 %v5639_v5, 16  ;;  %3962 = vmatpush.bf16.msrb.mxu0 %v3953_v24  ;;  %v5642_v24 = vld [vmem:[%s6218_s7 + $0x18] sm:$0xf] }
 0x101   : > { %v1219_v62 = vld [vmem:[#allocation2 + $0x48] sm:$0xff]  ;;  %334 = vst.msk [vmem:[#allocation2 + $0x68] sm:$0xff] %vm243_vm1, %v313_v55  ;;  %v2132_v52 = vunpack.c.l.b16 %v2105_v17  ;;  %v2753_v43 = vshll.u32 %v5640_v13, 16  ;;  %v1766_v53 = vunpack.c.l.b16 %v1746_v46  ;;  %v5732_v55 = vld [vmem:[%s6218_s7 + $0x1c] sm:$0xf]  ;;  %v2386_v10 = vunpack.c.l.b16 %v2366_v57 }
 0x102   : > { %886 = vst.msk [vmem:[#allocation2 + $0x50] sm:$0xff] %vm243_vm1, %v870_v54  ;;  %v1235_v42 = vadd.f32 %v1219_v62, %v6929_v1  ;;  %v5731_v54 = vld [vmem:[%s6218_s7 + $0x18] sm:$0xf]  ;;  %v2369_v62 = vsel %vm6446_vm7, %v2367_v16, %v2368_v38  ;;  %v3305_v0 = vshll.u32 %v5732_v55, 16  ;;  %v2763_v51 = vshll.u32 %v5641_v7, 16  ;;  %v5967_v16 = vld [vmem:[%s6218_s7 + $0xc] sm:$0xff] }
 0x103   : > { %v1266_v8 = vld [vmem:[#allocation2 + $0x40] sm:$0xff]  ;;  %v2141_v27 = vpack.c.b16 %v2133_v29, %v2132_v52  ;;  %v3296_v17 = vshrl.u32 %v5731_v54, 16  ;;  %v3299_v63 = vshll.u32 %v5731_v54, 16  ;;  %v7029_v23 = vrot.slane %v2753_v43, 5 }
 0x104   : > { %1251 = vst.msk [vmem:[#allocation2 + $0x48] sm:$0xff] %vm243_vm1, %v1235_v42  ;;  %v1285_v45 = vadd.f32 %v6700_v61, %v1266_v8  ;;  %v2746_v42 = vrot.slane %v2744_v31, 4  ;;  %v5733_v52 = vld [vmem:[%s6218_s7 + $0x20] sm:$0x1]  ;;  %v7038_v33 = vrot.slane %v3305_v0, 5 }
 0x105   : > { %v648_v1 = vpop.f32.mrf.mxu1  ;;  %v3298_v29 = vrot.slane %v3296_v17, 4  ;;  %v3315_v46 = vshll.u32 %v5733_v52, 16  ;;  %v5734_v7 = vld [vmem:[%s6218_s7 + $0x24] sm:$0xf] }
 0x106   : > { %v686_v35 = vadd.f32 %v670_v32, %v648_v1  ;;  %v6986_v4 = vpop.f32.mrf.mxu3  ;;  %1301 = vst.msk [vmem:[%s6751_s30 + $0x40] sm:$0xff] %vm243_vm1, %v1285_v45  ;;  %v3309_v32 = vshrl.u32 %v5732_v55, 16  ;;  %v3301_v45 = vrot.slane %v3299_v63, 5  ;;  %v2750_v22 = vor.u32 %v2749_v3, %v2746_v42  ;;  %v5735_v3 = vld [vmem:[%s6218_s7 + $0x28] sm:$0xf] }
 0x107   : > { %v855_v15 = vld [vmem:[#allocation2 + $0x58] sm:$0xff]  ;;  %v6990_v21 = vpop.f32.mrf.mxu2  ;;  %v2768_v55 = vshrl.u32 %v5642_v24, 16 }
 0x108   : > { %v871_v26 = vadd.f32 %v855_v15, %v6934_v9  ;;  %702 = vst.msk [vmem:[#allocation2 + $0x60] sm:$0xff] %vm243_vm1, %v686_v35  ;;  %5490 = vmatmul.msk.bf16.gmra.mxu1 %vm243_vm1, %v1774_v60  ;;  %v316_v12 = vpop.f32.mrf.mxu0  ;;  %v671_v50 = vld [vmem:[#allocation2 + $0x68] sm:$0xff]  ;;  %v3311_v14 = vrot.slane %v3309_v32, 4  ;;  %v1775_v35 = vpack.c.b16 %v1767_v58, %v1766_v53  ;;  %v2387_v15 = vunpack.c.l.b16 %v2369_v62  ;;  %v5643_v58 = vld [vmem:[%s6218_s7 + $0x1c] sm:$0xf] }
 0x109   : > { %v1220_v28 = vld [vmem:[#allocation2 + $0x50] sm:$0xff]  ;;  %335 = vst.msk [vmem:[#allocation2 + $0x70] sm:$0xff] %vm243_vm1, %v316_v12  ;;  %v2751_v43 = vrot.slane %v2750_v22, 4  ;;  %v3317_v53 = vrot.slane %v3315_v46, 5 }
 0x10a   : > { %887 = vst.msk [vmem:[#allocation2 + $0x58] sm:$0xff] %vm243_vm1, %v871_v26  ;;  %v1236_v9 = vadd.f32 %v1220_v28, %v1195_v44  ;;  %v2757_v44 = vshrl.u32 %v5640_v13, 16  ;;  %v5878_v26 = vld [vmem:[%s8353_s1 + $0x1a] sm:$0x3]  ;;  %v3302_v28 = vor.u32 %v3301_v45, %v3298_v29  ;;  %v2395_v38 = vpack.c.b16 %v2387_v15, %v2386_v10 }
 0x10b   : > { %5474 = vmatmul.msk.bf16.gmra.mxu0 %vm243_vm1, %v1550_v48  ;;  %5564 = vmatmul.msk.bf16.gmra.mxu3 %vm243_vm1, %v2394_v19  ;;  %v1267_v25 = vld [vmem:[#allocation2 + $0x48] sm:$0xff]  ;;  %v4541_v5 = vsel %vm268_vm0, %v5878_v26, 0  ;;  %v2756_v17 = vsel %vm6233_vm4, %v2751_v43, %v7029_v23 }
 0x10c   : > { %1252 = vst.msk [vmem:[#allocation2 + $0x50] sm:$0xff] %vm243_vm1, %v1236_v9  ;;  %5524 = vmatmul.msk.bf16.gmra.mxu2 %vm243_vm1, %v2141_v27  ;;  %v1286_v2 = vadd.f32 %v6700_v61, %v1267_v25  ;;  %v2759_v8 = vrot.slane %v2757_v44, 4  ;;  %v3312_v9 = vor.u32 %v3311_v14, %v7038_v33  ;;  %v3333_v14 = vshrl.u32 %v5735_v3, 16 }
 0x10d   : > { %v650_v49 = vpop.f32.mrf.mxu1  ;;  %4550 = vmatpush.bf16.msrb.mxu2 %v4541_v5  ;;  %v2937_v10 = vunpack.c.l.b16 %v2756_v17 }
 0x10e   : > { %v687_v11 = vadd.f32 %v671_v50, %v650_v49  ;;  %v7016_v56 = vpop.f32.mrf.mxu3  ;;  %1302 = vst.msk [vmem:[%s6751_s30 + $0x48] sm:$0xff] %vm243_vm1, %v1286_v2  ;;  %v2765_v2 = vrot.slane %v2763_v51, 5  ;;  %v3303_v50 = vrot.slane %v3302_v28, 4 }
 0x10f   : > { %v856_v20 = vld [vmem:[#allocation2 + $0x60] sm:$0xff]  ;;  %v7024_v37 = vpop.f32.mrf.mxu2 }
 0x110   : > { %v872_v59 = vadd.f32 %v856_v20, %v6960_v40  ;;  %703 = vst.msk [vmem:[#allocation2 + $0x68] sm:$0xff] %vm243_vm1, %v687_v11  ;;  %v318_v6 = vpop.f32.mrf.mxu0  ;;  %v5845_v40 = vld [vmem:[%s8353_s1 + $0xe] sm:$0x3]  ;;  %v672_v47 = vld [vmem:[#allocation2 + $0x70] sm:$0xff]  ;;  %v2771_v11 = vshll.u32 %v5642_v24, 16  ;;  %v2777_v20 = vshll.u32 %v5643_v58, 16  ;;  %v3308_v32 = vsel %vm6233_vm4, %v3303_v50, %v7038_v33 }
 0x111   : > { %v1221_v60 = vld [vmem:[#allocation2 + $0x58] sm:$0xff]  ;;  %336 = vst.msk [vmem:[#allocation2 + $0x78] sm:$0xff] %vm243_vm1, %v318_v6  ;;  %v4175_v48 = vsel %vm268_vm0, %v5845_v40, 0  ;;  %v2781_v6 = vshrl.u32 %v5643_v58, 16  ;;  %v3323_v40 = vshll.u32 %v5734_v7, 16  ;;  %v3329_v33 = vshll.u32 %v5735_v3, 16 }
 0x112   : > { %888 = vst.msk [vmem:[#allocation2 + $0x60] sm:$0xff] %vm243_vm1, %v872_v59  ;;  %v1237_v1 = vadd.f32 %v1221_v60, %v6986_v4  ;;  %v2760_v4 = vor.u32 %v2759_v8, %v7029_v23  ;;  %4184 = vmatpush.bf16.msrb.mxu1 %v4175_v48  ;;  %v2773_v52 = vrot.slane %v2771_v11, 5  ;;  %v3489_v51 = vunpack.c.l.b16 %v3308_v32 }
 0x113   : > { %v1268_v19 = vld [vmem:[#allocation2 + $0x50] sm:$0xff]  ;;  %v2783_v22 = vrot.slane %v2781_v6, 4  ;;  %v3325_v28 = vrot.slane %v3323_v40, 5  ;;  %v7100_v46 = vrot.slane %v3329_v33, 5 }
 0x114   : > { %1253 = vst.msk [vmem:[#allocation2 + $0x58] sm:$0xff] %vm243_vm1, %v1237_v1  ;;  %v1287_v12 = vadd.f32 %v6700_v61, %v1268_v19  ;;  %v2761_v44 = vrot.slane %v2760_v4, 4  ;;  %v3320_v1 = vshrl.u32 %v5734_v7, 16  ;;  %v7095_v19 = vrot.slane %v2777_v20, 5 }
 0x115   : > { %v653_v27 = vpop.f32.mrf.mxu1 }
 0x116   : > { %v688_v30 = vadd.f32 %v672_v47, %v653_v27  ;;  %v7048_v13 = vpop.f32.mrf.mxu3  ;;  %1303 = vst.msk [vmem:[%s6751_s30 + $0x50] sm:$0xff] %vm243_vm1, %v1287_v12  ;;  %v2766_v0 = vsel %vm6233_vm4, %v2761_v44, %v2765_v2  ;;  %v5644_v12 = vld [vmem:[%s6218_s7 + $0x20] sm:$0x1]  ;;  %v3322_v5 = vrot.slane %v3320_v1, 4  ;;  %v2784_v24 = vor.u32 %v2783_v22, %v7095_v19  ;;  %v5968_v44 = vld [vmem:[%s6218_s7 + $0x18] sm:$0xff] }
 0x117   : > { %v857_v34 = vld [vmem:[#allocation2 + $0x68] sm:$0xff]  ;;  %v7054_v41 = vpop.f32.mrf.mxu2  ;;  %v2938_v15 = vunpack.c.l.b16 %v2766_v0 }
 0x118   : > { %v873_v31 = vadd.f32 %v857_v34, %v6990_v21  ;;  %704 = vst.msk [vmem:[#allocation2 + $0x70] sm:$0xff] %vm243_vm1, %v688_v30  ;;  %5491 = vmatmul.msk.bf16.gmra.mxu1 %vm243_vm1, %v1775_v35  ;;  %v1587_v25 = vpop.f32.mrf.mxu0  ;;  %v3313_v21 = vrot.slane %v3312_v9, 4  ;;  %v673_v62 = vld [vmem:[#allocation2 + $0x78] sm:$0xff]  ;;  %v3335_v30 = vrot.slane %v3333_v14, 4  ;;  %v3326_v58 = vor.u32 %v3325_v28, %v3322_v5 }
 0x119   : > { %v1222_v49 = vld [vmem:[#allocation2 + $0x60] sm:$0xff]  ;;  %1627 = vst.msk [vmem:[#allocation2] sm:$0xff] %vm243_vm1, %v1587_v25  ;;  %v2953_v34 = vpack.c.b16 %v2938_v15, %v2937_v10  ;;  %v5736_v25 = vld [vmem:[%s6218_s7 + $0x2c] sm:$0x1] }
 0x11a   : > { %889 = vst.msk [vmem:[#allocation2 + $0x68] sm:$0xff] %vm243_vm1, %v873_v31  ;;  %v1238_v54 = vadd.f32 %v1222_v49, %v7016_v56  ;;  %v5919_v56 = vld [vmem:[%s8353_s1 + $0x1e] sm:$0x3]  ;;  %v3318_v60 = vsel %vm6233_vm4, %v3313_v21, %v3317_v53  ;;  %v2787_v31 = vshll.u32 %v5644_v12, 16  ;;  %v5645_v21 = vld [vmem:[%s6218_s7 + $0x24] sm:$0xf] }
 0x11b   : > { %5631 = vmatmul.msk.bf16.vlgmr.msra.gmra.mxu0 %vm243_vm1, %v5967_v16  ;;  %5565 = vmatmul.msk.bf16.gmra.mxu3 %vm243_vm1, %v2395_v38  ;;  %v1269_v57 = vld [vmem:[#allocation2 + $0x58] sm:$0xff]  ;;  %v4795_v59 = vsel %vm268_vm0, %v5919_v56, 0  ;;  %v3490_v26 = vunpack.c.l.b16 %v3318_v60  ;;  %v3339_v17 = vshll.u32 %v5736_v25, 16  ;;  %v2792_v56 = vshrl.u32 %v5645_v21, 16 }
 0x11c   : > { %1254 = vst.msk [vmem:[#allocation2 + $0x60] sm:$0xff] %vm243_vm1, %v1238_v54  ;;  %5723 = vmatmul.msk.bf16.vlgmr.msra.gmra.mxu2 %vm243_vm1, %v5975_v36  ;;  %v1288_v42 = vadd.f32 %v6700_v61, %v1269_v57  ;;  %4804 = vmatpush.bf16.msrb.mxu3 %v4795_v59  ;;  %v2770_v61 = vrot.slane %v2768_v55, 4  ;;  %v3336_v54 = vor.u32 %v3335_v30, %v7100_v46  ;;  %v5646_v55 = vld [vmem:[%s6218_s7 + $0x28] sm:$0xf]  ;;  %v2795_v20 = vshll.u32 %v5645_v21, 16 }
 0x11d   : > { %v655_v63 = vpop.f32.mrf.mxu1  ;;  %v3505_v49 = vpack.c.b16 %v3490_v26, %v3489_v51  ;;  %v2789_v0 = vrot.slane %v2787_v31, 5  ;;  %v2801_v32 = vshll.u32 %v5646_v55, 16  ;;  %v2805_v59 = vshrl.u32 %v5646_v55, 16  ;;  %v5739_v25 = vld [vmem:[%s6218_s7 + $0x38] sm:$0x1] }
 0x11e   : > { %v689_v23 = vadd.f32 %v673_v62, %v655_v63  ;;  %v7084_v8 = vpop.f32.mrf.mxu3  ;;  %1304 = vst.msk [vmem:[%s6751_s30 + $0x58] sm:$0xff] %vm243_vm1, %v1288_v42  ;;  %v5976_v62 = vld [vmem:[%s6218_s7 + $0x24] sm:$0xff]  ;;  %v2785_v63 = vrot.slane %v2784_v24, 4  ;;  %v3327_v7 = vrot.slane %v3326_v58, 4  ;;  %v3337_v3 = vrot.slane %v3336_v54, 4 }
 0x11f   : > { %v858_v29 = vld [vmem:[#allocation2 + $0x70] sm:$0xff]  ;;  %v7090_v45 = vpop.f32.mrf.mxu2  ;;  %v7138_v33 = vrot.slane %v2801_v32, 5  ;;  %v2807_v14 = vrot.slane %v2805_v59, 4 }
 0x120   : > { %v874_v47 = vadd.f32 %v858_v29, %v7024_v37  ;;  %705 = vst.msk [vmem:[#allocation2 + $0x78] sm:$0xff] %vm243_vm1, %v689_v23  ;;  %v1589_v35 = vpop.f32.mrf.mxu0  ;;  %v2774_v37 = vor.u32 %v2773_v52, %v2770_v61  ;;  %v1852_v27 = vld [vmem:[#allocation2] sm:$0xff]  ;;  %v2794_v61 = vrot.slane %v2792_v56, 4  ;;  %v2797_v52 = vrot.slane %v2795_v20, 5 }
 0x121   : > { %v1223_v48 = vld [vmem:[#allocation2 + $0x68] sm:$0xff]  ;;  %1628 = vst.msk [vmem:[#allocation2 + $0x8] sm:$0xff] %vm243_vm1, %v1589_v35  ;;  %v2790_v40 = vsel %vm6233_vm4, %v2785_v63, %v2789_v0  ;;  %v5738_v35 = vld [vmem:[%s6218_s7 + $0x34] sm:$0xf]  ;;  %v3332_v30 = vsel %vm6233_vm4, %v3327_v7, %v7100_v46 }
 0x122   : > { %890 = vst.msk [vmem:[#allocation2 + $0x70] sm:$0xff] %vm243_vm1, %v874_v47  ;;  %v1239_v4 = vadd.f32 %v1223_v48, %v7048_v13  ;;  %v7106_v13 = vld [vmem:[%s8354_s2] ss:$0 sm:$0xff]  ;;  %v2775_v53 = vrot.slane %v2774_v37, 4  ;;  %v5737_v47 = vld [vmem:[%s6218_s7 + $0x30] sm:$0xf]  ;;  %v2940_v28 = vunpack.c.l.b16 %v2790_v40 }
 0x123   : > { %v1270_v9 = vld [vmem:[#allocation2 + $0x60] sm:$0xff]  ;;  %v5647_v48 = vld [vmem:[%s6218_s7 + $0x2c] sm:$0x1]  ;;  %v3347_v26 = vshll.u32 %v5737_v47, 16  ;;  %v3353_v12 = vshll.u32 %v5738_v35, 16  ;;  %v3357_v37 = vshrl.u32 %v5738_v35, 16 }
 0x124   : > { %1255 = vst.msk [vmem:[#allocation2 + $0x68] sm:$0xff] %vm243_vm1, %v1239_v4  ;;  %v1289_v16 = vadd.f32 %v7106_v13, %v1270_v9  ;;  %v2780_v6 = vsel %vm6233_vm4, %v2775_v53, %v7095_v19  ;;  %v3344_v19 = vshrl.u32 %v5737_v47, 16  ;;  %v2811_v24 = vshll.u32 %v5647_v48, 16  ;;  %v5969_v0 = vld [vmem:[%s6218_s7 + $0x24] sm:$0xff] }
 0x125   : > { %v1812_v38 = vpop.f32.mrf.mxu1  ;;  %v2939_v51 = vunpack.c.l.b16 %v2780_v6  ;;  %v3359_v46 = vrot.slane %v3357_v37, 4 }
 0x126   : > { %v1868_v36 = vadd.f32 %v1852_v27, %v1812_v38  ;;  %v7111_v43 = vpop.f32.mrf.mxu3  ;;  %1305 = vst.msk [vmem:[%s6751_s30 + $0x60] sm:$0xff] %vm243_vm1, %v1289_v16  ;;  %v2798_v16 = vor.u32 %v2797_v52, %v2794_v61  ;;  %v2808_v38 = vor.u32 %v2807_v14, %v7138_v33  ;;  %v3346_v31 = vrot.slane %v3344_v19, 4 }
 0x127   : > { %v859_v2 = vld [vmem:[#allocation2 + $0x78] sm:$0xff]  ;;  %v7116_v50 = vpop.f32.mrf.mxu2  ;;  %v2954_v54 = vpack.c.b16 %v2940_v28, %v2939_v51 }
 0x128   : > { %v875_v11 = vadd.f32 %v859_v2, %v7054_v41  ;;  %1884 = vst.msk [vmem:[#allocation2] sm:$0xff] %vm243_vm1, %v1868_v36  ;;  %5664 = vmatmul.msk.bf16.vlgmr.msra.gmra.mxu1 %vm243_vm1, %v2953_v34  ;;  %v1592_v57 = vpop.f32.mrf.mxu0  ;;  %v1853_v60 = vld [vmem:[#allocation2 + $0x8] sm:$0xff]  ;;  %v3349_v36 = vrot.slane %v3347_v26, 5  ;;  %v5740_v51 = vld [vmem:[%s6218_s7 + $0x3c] sm:$0xf] }
 0x129   : > { %v1224_v42 = vld [vmem:[#allocation2 + $0x70] sm:$0xff]  ;;  %1629 = vst.msk [vmem:[#allocation2 + $0x10] sm:$0xff] %vm243_vm1, %v1592_v57  ;;  %v2813_v57 = vrot.slane %v2811_v24, 5  ;;  %v5741_v26 = vld [vmem:[%s6218_s7 + $0x40] sm:$0xf]  ;;  %v3368_v24 = vshrl.u32 %v5740_v51, 16 }
 0x12a   : > { %891 = vst.msk [vmem:[#allocation2 + $0x78] sm:$0xff] %vm243_vm1, %v875_v11  ;;  %v1240_v41 = vadd.f32 %v1224_v42, %v7084_v8  ;;  %v3341_v8 = vrot.slane %v3339_v17, 5  ;;  %v2799_v11 = vrot.slane %v2798_v16, 4  ;;  %v3350_v20 = vor.u32 %v3349_v36, %v3346_v31  ;;  %v5650_v28 = vld [vmem:[%s6218_s7 + $0x38] sm:$0x1] }
 0x12b   : > { %5632 = vmatmul.msk.bf16.gmra.mxu0 %vm243_vm1, %v5968_v44  ;;  %5756 = vmatmul.msk.bf16.vlgmr.msra.gmra.mxu3 %vm243_vm1, %v3505_v49  ;;  %v1271_v23 = vld [vmem:[#allocation2 + $0x68] sm:$0xff]  ;;  %v7159_v44 = vrot.slane %v3353_v12, 5  ;;  %v3491_v49 = vunpack.c.l.b16 %v3332_v30  ;;  %v3371_v31 = vshll.u32 %v5740_v51, 16 }
 0x12c   : > { %1256 = vst.msk [vmem:[#allocation2 + $0x70] sm:$0xff] %vm243_vm1, %v1240_v41  ;;  %5724 = vmatmul.msk.bf16.gmra.mxu2 %vm243_vm1, %v5976_v62  ;;  %v1290_v29 = vadd.f32 %v7106_v13, %v1271_v23  ;;  %v3342_v9 = vsel %vm6233_vm4, %v3337_v3, %v3341_v8  ;;  %v3363_v62 = vshll.u32 %v5739_v25, 16  ;;  %v5648_v41 = vld [vmem:[%s6218_s7 + $0x30] sm:$0xf]  ;;  %v5649_v23 = vld [vmem:[%s6218_s7 + $0x34] sm:$0xf]  ;;  %v2804_v8 = vsel %vm6233_vm4, %v2799_v11, %v7138_v33 }
 0x12d   : > { %v1814_v1 = vpop.f32.mrf.mxu1  ;;  %v3492_v53 = vunpack.c.l.b16 %v3342_v9  ;;  %v3360_v42 = vor.u32 %v3359_v46, %v7159_v44  ;;  %v5977_v3 = vld [vmem:[%s6218_s7 + $0x30] sm:$0xff]  ;;  %v2816_v40 = vshrl.u32 %v5648_v41, 16  ;;  %v2819_v14 = vshll.u32 %v5648_v41, 16 }
 0x12e   : > { %v1869_v10 = vadd.f32 %v1853_v60, %v1814_v1  ;;  %v2432_v15 = vpop.f32.mrf.mxu3  ;;  %1306 = vst.msk [vmem:[%s6751_s30 + $0x68] sm:$0xff] %vm243_vm1, %v1290_v29  ;;  %v3365_v52 = vrot.slane %v3363_v62, 5  ;;  %v3351_v29 = vrot.slane %v3350_v20, 4  ;;  %v2825_v47 = vshll.u32 %v5649_v23, 16  ;;  %v5970_v41 = vld [vmem:[%s6218_s7 + $0x30] sm:$0xff] }
 0x12f   : > { %v2218_v22 = vld [vmem:[#allocation2] sm:$0xff]  ;;  %v7145_v4 = vpop.f32.mrf.mxu2  ;;  %v3506_v32 = vpack.c.b16 %v3492_v53, %v3491_v49  ;;  %v3361_v1 = vrot.slane %v3360_v42, 4  ;;  %v2829_v35 = vshrl.u32 %v5649_v23, 16  ;;  %v2941_v19 = vunpack.c.l.b16 %v2804_v8 }
 0x130   : > { %v2234_v27 = vadd.f32 %v2218_v22, %v7090_v45  ;;  %1885 = vst.msk [vmem:[#allocation2 + $0x8] sm:$0xff] %vm243_vm1, %v1869_v10  ;;  %v1594_v5 = vpop.f32.mrf.mxu0  ;;  %v1854_v2 = vld [vmem:[#allocation2 + $0x10] sm:$0xff]  ;;  %v2818_v30 = vrot.slane %v2816_v40, 4  ;;  %v2821_v16 = vrot.slane %v2819_v14, 5  ;;  %v3381_v46 = vshrl.u32 %v5741_v26, 16 }
 0x131   : > { %v1225_v34 = vld [vmem:[#allocation2 + $0x78] sm:$0xff]  ;;  %1630 = vst.msk [vmem:[#allocation2 + $0x18] sm:$0xff] %vm243_vm1, %v1594_v5  ;;  %v3366_v5 = vsel %vm6233_vm4, %v3361_v1, %v3365_v52  ;;  %v2831_v36 = vrot.slane %v2829_v35, 4  ;;  %v3370_v11 = vrot.slane %v3368_v24, 4  ;;  %v5652_v52 = vld [vmem:[%s6218_s7 + $0x40] sm:$0xf] }
 0x132   : > { %2250 = vst.msk [vmem:[#allocation2] sm:$0xff] %vm243_vm1, %v2234_v27  ;;  %v1241_v45 = vadd.f32 %v1225_v34, %v7111_v43  ;;  %v2809_v43 = vrot.slane %v2808_v38, 4  ;;  %v3356_v27 = vsel %vm6233_vm4, %v3351_v29, %v7159_v44  ;;  %v7201_v38 = vrot.slane %v2825_v47, 5  ;;  %v5978_v1 = vld [vmem:[%s6218_s7 + $0x3c] sm:$0xff] }
 0x133   : > { %v1272_v58 = vld [vmem:[#allocation2 + $0x70] sm:$0xff]  ;;  %v3377_v44 = vshll.u32 %v5741_v26, 16 }
 0x134   : > { %1257 = vst.msk [vmem:[#allocation2 + $0x78] sm:$0xff] %vm243_vm1, %v1241_v45  ;;  %v1291_v21 = vadd.f32 %v7106_v13, %v1272_v58  ;;  %v2814_v61 = vsel %vm6233_vm4, %v2809_v43, %v2813_v57  ;;  %v3493_v58 = vunpack.c.l.b16 %v3356_v27  ;;  %v3373_v43 = vrot.slane %v3371_v31, 5 }
 0x135   : > { %v1817_v55 = vpop.f32.mrf.mxu1  ;;  %v2942_v22 = vunpack.c.l.b16 %v2814_v61  ;;  %v2832_v62 = vor.u32 %v2831_v36, %v7201_v38  ;;  %v5651_v61 = vld [vmem:[%s6218_s7 + $0x3c] sm:$0xf] }
 0x136   : > { %v1870_v17 = vadd.f32 %v1854_v2, %v1817_v55  ;;  %v2434_v56 = vpop.f32.mrf.mxu3  ;;  %1307 = vst.msk [vmem:[%s6751_s30 + $0x70] sm:$0xff] %vm243_vm1, %v1291_v21  ;;  %v3494_v55 = vunpack.c.l.b16 %v3366_v5  ;;  %v3374_v8 = vor.u32 %v3373_v43, %v3370_v11  ;;  %v2840_v35 = vshrl.u32 %v5651_v61, 16 }
 0x137   : > { %v2219_v63 = vld [vmem:[#allocation2 + $0x8] sm:$0xff]  ;;  %v7167_v59 = vpop.f32.mrf.mxu2  ;;  %v2955_v53 = vpack.c.b16 %v2942_v22, %v2941_v19  ;;  %v2833_v40 = vrot.slane %v2832_v62, 4 }
 0x138   : > { %v2235_v6 = vadd.f32 %v2219_v63, %v7116_v50  ;;  %1886 = vst.msk [vmem:[#allocation2 + $0x10] sm:$0xff] %vm243_vm1, %v1870_v17  ;;  %5665 = vmatmul.msk.bf16.gmra.mxu1 %vm243_vm1, %v2954_v54  ;;  %v1597_v7 = vpop.f32.mrf.mxu0  ;;  %v1855_v48 = vld [vmem:[#allocation2 + $0x18] sm:$0xff]  ;;  %v2835_v54 = vshll.u32 %v5650_v28, 16  ;;  %v7209_v17 = vrot.slane %v3377_v44, 5  ;;  %v5742_v63 = vld [vmem:[%s6218_s7 + $0x44] sm:$0x1] }
 0x139   : > { %v2472_v60 = vld [vmem:[#allocation2] sm:$0xff]  ;;  %1631 = vst.msk [vmem:[#allocation2 + $0x20] sm:$0xff] %vm243_vm1, %v1597_v7  ;;  %v3387_v47 = vshll.u32 %v5742_v63, 16  ;;  %v3375_v22 = vrot.slane %v3374_v8, 4 }
 0x13a   : > { %2251 = vst.msk [vmem:[#allocation2 + $0x8] sm:$0xff] %vm243_vm1, %v2235_v6  ;;  %v2488_v50 = vadd.f32 %v2472_v60, %v2432_v15  ;;  %v2837_v6 = vrot.slane %v2835_v54, 5 }
 0x13b   : > { %5633 = vmatmul.msk.bf16.gmra.mxu0 %vm243_vm1, %v5969_v0  ;;  %5757 = vmatmul.msk.bf16.gmra.mxu3 %vm243_vm1, %v3506_v32  ;;  %v1273_v33 = vld [vmem:[#allocation2 + $0x78] sm:$0xff]  ;;  %v3389_v27 = vrot.slane %v3387_v47, 5 }
 0x13c   : > { %2504 = vst.msk [vmem:[#allocation2] sm:$0xff] %vm243_vm1, %v2488_v50  ;;  %5725 = vmatmul.msk.bf16.gmra.mxu2 %vm243_vm1, %v5977_v3  ;;  %v1292_v10 = vadd.f32 %v7106_v13, %v1273_v33  ;;  %v3507_v3 = vpack.c.b16 %v3494_v55, %v3493_v58  ;;  %v5653_v58 = vld [vmem:[%s6218_s7 + $0x44] sm:$0x1] }
 0x13d   : > { %v1819_v15 = vpop.f32.mrf.mxu1 }
 0x13e   : > { %v1871_v12 = vadd.f32 %v1855_v48, %v1819_v15  ;;  %v7189_v37 = vpop.f32.mrf.mxu3  ;;  %1308 = vst.msk [vmem:[%s6751_s30 + $0x78] sm:$0xff] %vm243_vm1, %v1292_v10  ;;  %v2843_v10 = vshll.u32 %v5651_v61, 16  ;;  %v2853_v48 = vshrl.u32 %v5652_v52, 16  ;;  %v5745_v61 = vld [vmem:[%s6218_s7 + $0x50] sm:$0x1] }
 0x13f   : > { %v2220_v9 = vld [vmem:[#allocation2 + $0x10] sm:$0xff]  ;;  %v7199_v34 = vpop.f32.mrf.mxu2 }
 0x140   : > { %v2236_v45 = vadd.f32 %v2220_v9, %v7145_v4  ;;  %1887 = vst.msk [vmem:[#allocation2 + $0x18] sm:$0xff] %vm243_vm1, %v1871_v12  ;;  %v1599_v25 = vpop.f32.mrf.mxu0  ;;  %v1856_v21 = vld [vmem:[#allocation2 + $0x20] sm:$0xff]  ;;  %v2822_v4 = vor.u32 %v2821_v16, %v2818_v30  ;;  %v2838_v12 = vsel %vm6233_vm4, %v2833_v40, %v2837_v6  ;;  %v2842_v30 = vrot.slane %v2840_v35, 4  ;;  %v5743_v16 = vld [vmem:[%s6218_s7 + $0x48] sm:$0xf] }
 0x141   : > { %v2473_v2 = vld [vmem:[#allocation2 + $0x8] sm:$0xff]  ;;  %1632 = vst.msk [vmem:[#allocation2 + $0x28] sm:$0xff] %vm243_vm1, %v1599_v25  ;;  %v2845_v9 = vrot.slane %v2843_v10, 5  ;;  %v2855_v25 = vrot.slane %v2853_v48, 4  ;;  %v3392_v36 = vshrl.u32 %v5743_v16, 16  ;;  %v3395_v54 = vshll.u32 %v5743_v16, 16 }
 0x142   : > { %2252 = vst.msk [vmem:[#allocation2 + $0x10] sm:$0xff] %vm243_vm1, %v2236_v45  ;;  %v2489_v49 = vadd.f32 %v2473_v2, %v2434_v56  ;;  %v3383_v56 = vrot.slane %v3381_v46, 4  ;;  %v2823_v60 = vrot.slane %v2822_v4, 4 }
 0x143   : > { %v2520_v57 = vld [vmem:[#allocation2] sm:$0xff]  ;;  %v3394_v62 = vrot.slane %v3392_v36, 4 }
 0x144   : > { %2505 = vst.msk [vmem:[#allocation2 + $0x8] sm:$0xff] %vm243_vm1, %v2489_v49  ;;  %v2536_v20 = vadd.f32 %v7106_v13, %v2520_v57  ;;  %v3384_v14 = vor.u32 %v3383_v56, %v7209_v17  ;;  %v2828_v19 = vsel %vm6233_vm4, %v2823_v60, %v7201_v38  ;;  %v5744_v38 = vld [vmem:[%s6218_s7 + $0x4c] sm:$0xf]  ;;  %v2944_v49 = vunpack.c.l.b16 %v2838_v12 }
 0x145   : > { %v1822_v42 = vpop.f32.mrf.mxu1  ;;  %v2943_v2 = vunpack.c.l.b16 %v2828_v19  ;;  %v3401_v11 = vshll.u32 %v5744_v38, 16  ;;  %v3405_v43 = vshrl.u32 %v5744_v38, 16  ;;  %v3397_v56 = vrot.slane %v3395_v54, 5  ;;  %v5979_v19 = vld [vmem:[%s6218_s7 + $0x48] sm:$0xff]  ;;  %v5747_v54 = vld [vmem:[%s6218_s7 + $0x58] sm:$0xf] }
 0x146   : > { %v1872_v0 = vadd.f32 %v1856_v21, %v1822_v42  ;;  %v7213_v32 = vpop.f32.mrf.mxu3  ;;  %5566 = vst.msk [vmem:[%s6751_s30 + $0x80] sm:$0xff] %vm243_vm1, %v2536_v20  ;;  %v2846_v20 = vor.u32 %v2845_v9, %v2842_v30  ;;  %v2859_v42 = vshll.u32 %v5653_v58, 16  ;;  %v5746_v58 = vld [vmem:[%s6218_s7 + $0x54] sm:$0xf] }
 0x147   : > { %v2221_v7 = vld [vmem:[#allocation2 + $0x18] sm:$0xff]  ;;  %v7218_v23 = vpop.f32.mrf.mxu2  ;;  %v3407_v60 = vrot.slane %v3405_v43, 4  ;;  %v3416_v43 = vshrl.u32 %v5746_v58, 16 }
 0x148   : > { %v2237_v50 = vadd.f32 %v2221_v7, %v7167_v59  ;;  %1888 = vst.msk [vmem:[#allocation2 + $0x20] sm:$0xff] %vm243_vm1, %v1872_v0  ;;  %5666 = vmatmul.msk.bf16.gmra.mxu1 %vm243_vm1, %v2955_v53  ;;  %v1602_v29 = vpop.f32.mrf.mxu0  ;;  %v2849_v59 = vshll.u32 %v5652_v52, 16  ;;  %v1857_v26 = vld [vmem:[#allocation2 + $0x28] sm:$0xff]  ;;  %v3380_v53 = vsel %vm6233_vm4, %v3375_v22, %v7209_v17  ;;  %v2956_v7 = vpack.c.b16 %v2944_v49, %v2943_v2 }
 0x149   : > { %v2474_v33 = vld [vmem:[#allocation2 + $0x10] sm:$0xff]  ;;  %1633 = vst.msk [vmem:[#allocation2 + $0x30] sm:$0xff] %vm243_vm1, %v1602_v29  ;;  %v3495_v0 = vunpack.c.l.b16 %v3380_v53  ;;  %v3398_v52 = vor.u32 %v3397_v56, %v3394_v62 }
 0x14a   : > { %2253 = vst.msk [vmem:[#allocation2 + $0x18] sm:$0xff] %vm243_vm1, %v2237_v50  ;;  %v2490_v15 = vadd.f32 %v2474_v33, %v7189_v37  ;;  %v3385_v37 = vrot.slane %v3384_v14, 4  ;;  %v7244_v45 = vrot.slane %v2849_v59, 5  ;;  %v2861_v14 = vrot.slane %v2859_v42, 5  ;;  %v5971_v33 = vld [vmem:[%s6218_s7 + $0x3c] sm:$0xff] }
 0x14b   : > { %5634 = vmatmul.msk.bf16.gmra.mxu0 %vm243_vm1, %v5970_v41  ;;  %5758 = vmatmul.msk.bf16.gmra.mxu3 %vm243_vm1, %v3507_v3  ;;  %v2521_v51 = vld [vmem:[#allocation2 + $0x8] sm:$0xff]  ;;  %v7263_v3 = vrot.slane %v3401_v11, 5  ;;  %v3429_v42 = vshrl.u32 %v5747_v54, 16 }
 0x14c   : > { %2506 = vst.msk [vmem:[#allocation2 + $0x10] sm:$0xff] %vm243_vm1, %v2490_v15  ;;  %5726 = vmatmul.msk.bf16.gmra.mxu2 %vm243_vm1, %v5978_v1  ;;  %v2537_v5 = vadd.f32 %v7106_v13, %v2521_v51  ;;  %v3390_v4 = vsel %vm6233_vm4, %v3385_v37, %v3389_v27  ;;  %v2847_v1 = vrot.slane %v2846_v20, 4  ;;  %v5654_v15 = vld [vmem:[%s6218_s7 + $0x48] sm:$0xf]  ;;  %v3411_v51 = vshll.u32 %v5745_v61, 16 }
 0x14d   : > { %v1824_v28 = vpop.f32.mrf.mxu1  ;;  %v3496_v41 = vunpack.c.l.b16 %v3390_v4  ;;  %v3408_v22 = vor.u32 %v3407_v60, %v7263_v3  ;;  %v3399_v37 = vrot.slane %v3398_v52, 4  ;;  %v2864_v27 = vshrl.u32 %v5654_v15, 16  ;;  %v5656_v4 = vld [vmem:[%s6218_s7 + $0x50] sm:$0x1]  ;;  %v5748_v52 = vld [vmem:[%s6218_s7 + $0x5c] sm:$0x1] }
 0x14e   : > { %v1873_v24 = vadd.f32 %v1857_v26, %v1824_v28  ;;  %v7242_v31 = vpop.f32.mrf.mxu3  ;;  %5567 = vst.msk [vmem:[%s6751_s30 + $0x88] sm:$0xff] %vm243_vm1, %v2537_v5  ;;  %v5655_v26 = vld [vmem:[%s6218_s7 + $0x4c] sm:$0xf]  ;;  %v2867_v30 = vshll.u32 %v5654_v15, 16 }
 0x14f   : > { %v2222_v44 = vld [vmem:[#allocation2 + $0x20] sm:$0xff]  ;;  %v7248_v46 = vpop.f32.mrf.mxu2  ;;  %v3508_v35 = vpack.c.b16 %v3496_v41, %v3495_v0  ;;  %v2873_v9 = vshll.u32 %v5655_v26, 16  ;;  %v2877_v16 = vshrl.u32 %v5655_v26, 16  ;;  %v3404_v49 = vsel %vm6233_vm4, %v3399_v37, %v7263_v3 }
 0x150   : > { %v2238_v21 = vadd.f32 %v2222_v44, %v7199_v34  ;;  %1889 = vst.msk [vmem:[#allocation2 + $0x28] sm:$0xff] %vm243_vm1, %v1873_v24  ;;  %v1604_v55 = vpop.f32.mrf.mxu0  ;;  %v2856_v34 = vor.u32 %v2855_v25, %v7244_v45  ;;  %v1858_v63 = vld [vmem:[#allocation2 + $0x30] sm:$0xff]  ;;  %v3409_v24 = vrot.slane %v3408_v22, 4  ;;  %v2866_v53 = vrot.slane %v2864_v27, 4 }
 0x151   : > { %v2475_v57 = vld [vmem:[#allocation2 + $0x18] sm:$0xff]  ;;  %1634 = vst.msk [vmem:[#allocation2 + $0x38] sm:$0xff] %vm243_vm1, %v1604_v55  ;;  %v2869_v11 = vrot.slane %v2867_v30, 5  ;;  %v2879_v20 = vrot.slane %v2877_v16, 4 }
 0x152   : > { %2254 = vst.msk [vmem:[#allocation2 + $0x20] sm:$0xff] %vm243_vm1, %v2238_v21  ;;  %v2491_v17 = vadd.f32 %v2475_v57, %v7213_v32  ;;  %v2857_v40 = vrot.slane %v2856_v34, 4  ;;  %v3419_v57 = vshll.u32 %v5746_v58, 16  ;;  %v3425_v34 = vshll.u32 %v5747_v54, 16  ;;  %v5658_v30 = vld [vmem:[%s6218_s7 + $0x58] sm:$0xf] }
 0x153   : > { %v2522_v6 = vld [vmem:[#allocation2 + $0x10] sm:$0xff]  ;;  %v2870_v61 = vor.u32 %v2869_v11, %v2866_v53  ;;  %v5659_v54 = vld [vmem:[%s6218_s7 + $0x5c] sm:$0x1] }
 0x154   : > { %2507 = vst.msk [vmem:[#allocation2 + $0x18] sm:$0xff] %vm243_vm1, %v2491_v17  ;;  %v2538_v8 = vadd.f32 %v7106_v13, %v2522_v6  ;;  %v2862_v28 = vsel %vm6233_vm4, %v2857_v40, %v2861_v14  ;;  %v7306_v17 = vrot.slane %v2873_v9, 5  ;;  %v3418_v6 = vrot.slane %v3416_v43, 4 }
 0x155   : > { %v1827_v32 = vpop.f32.mrf.mxu1  ;;  %v2946_v2 = vunpack.c.l.b16 %v2862_v28  ;;  %v7313_v60 = vrot.slane %v3425_v34, 5  ;;  %v2871_v26 = vrot.slane %v2870_v61, 4  ;;  %v5657_v28 = vld [vmem:[%s6218_s7 + $0x54] sm:$0xf] }
 0x156   : > { %v1874_v50 = vadd.f32 %v1858_v63, %v1827_v32  ;;  %v7267_v29 = vpop.f32.mrf.mxu3  ;;  %5568 = vst.msk [vmem:[%s6751_s30 + $0x90] sm:$0xff] %vm243_vm1, %v2538_v8  ;;  %v3431_v8 = vrot.slane %v3429_v42, 4  ;;  %v2880_v14 = vor.u32 %v2879_v20, %v7306_v17 }
 0x157   : > { %v2223_v47 = vld [vmem:[#allocation2 + $0x28] sm:$0xff]  ;;  %v7272_v10 = vpop.f32.mrf.mxu2 }
 0x158   : > { %v2239_v59 = vadd.f32 %v2223_v47, %v7218_v23  ;;  %1890 = vst.msk [vmem:[#allocation2 + $0x30] sm:$0xff] %vm243_vm1, %v1874_v50  ;;  %5667 = vmatmul.msk.bf16.gmra.mxu1 %vm243_vm1, %v2956_v7  ;;  %v1607_v48 = vpop.f32.mrf.mxu0  ;;  %v2852_v23 = vsel %vm6233_vm4, %v2847_v1, %v7244_v45  ;;  %v1859_v36 = vld [vmem:[#allocation2 + $0x38] sm:$0xff]  ;;  %v3421_v7 = vrot.slane %v3419_v57, 5  ;;  %v3497_v1 = vunpack.c.l.b16 %v3404_v49 }
 0x159   : > { %v2476_v12 = vld [vmem:[#allocation2 + $0x20] sm:$0xff]  ;;  %1635 = vst.msk [vmem:[#allocation2 + $0x40] sm:$0xff] %vm243_vm1, %v1607_v48  ;;  %v2945_v44 = vunpack.c.l.b16 %v2852_v23  ;;  %v3435_v48 = vshll.u32 %v5748_v52, 16  ;;  %v2881_v23 = vrot.slane %v2880_v14, 4  ;;  %v2901_v49 = vshrl.u32 %v5658_v30, 16 }
 0x15a   : > { %2255 = vst.msk [vmem:[#allocation2 + $0x28] sm:$0xff] %vm243_vm1, %v2239_v59  ;;  %v2492_v5 = vadd.f32 %v2476_v12, %v7242_v31  ;;  %v3413_v31 = vrot.slane %v3411_v51, 5  ;;  %v3432_v59 = vor.u32 %v3431_v8, %v7313_v60  ;;  %v5972_v51 = vld [vmem:[%s6218_s7 + $0x48] sm:$0xff] }
 0x15b   : > { %5635 = vmatmul.msk.bf16.gmra.mxu0 %vm243_vm1, %v5971_v33  ;;  %5759 = vmatmul.msk.bf16.gmra.mxu3 %vm243_vm1, %v3508_v35  ;;  %v2523_v38 = vld [vmem:[#allocation2 + $0x18] sm:$0xff]  ;;  %v2957_v33 = vpack.c.b16 %v2946_v2, %v2945_v44  ;;  %v3422_v35 = vor.u32 %v3421_v7, %v3418_v6  ;;  %v3437_v44 = vrot.slane %v3435_v48, 5  ;;  %v2897_v2 = vshll.u32 %v5658_v30, 16 }
 0x15c   : > { %2508 = vst.msk [vmem:[#allocation2 + $0x20] sm:$0xff] %vm243_vm1, %v2492_v5  ;;  %5727 = vmatmul.msk.bf16.gmra.mxu2 %vm243_vm1, %v5979_v19  ;;  %v2539_v45 = vadd.f32 %v7106_v13, %v2523_v38  ;;  %v3414_v41 = vsel %vm6233_vm4, %v3409_v24, %v3413_v31  ;;  %v5980_v38 = vld [vmem:[%s6218_s7 + $0x54] sm:$0xff]  ;;  %v2888_v31 = vshrl.u32 %v5657_v28, 16 }
 0x15d   : > { %v1829_v25 = vpop.f32.mrf.mxu1  ;;  %v3498_v40 = vunpack.c.l.b16 %v3414_v41  ;;  %v3423_v24 = vrot.slane %v3422_v35, 4  ;;  %v5751_v35 = vld [vmem:[%s6218_s7 + $0x68] sm:$0x1] }
 0x15e   : > { %v1875_v21 = vadd.f32 %v1859_v36, %v1829_v25  ;;  %v7299_v55 = vpop.f32.mrf.mxu3  ;;  %5569 = vst.msk [vmem:[%s6751_s30 + $0x98] sm:$0xff] %vm243_vm1, %v2539_v45  ;;  %v2891_v45 = vshll.u32 %v5657_v28, 16  ;;  %v3433_v36 = vrot.slane %v3432_v59, 4  ;;  %v2890_v53 = vrot.slane %v2888_v31, 4 }
 0x15f   : > { %v2224_v62 = vld [vmem:[#allocation2 + $0x30] sm:$0xff]  ;;  %v7304_v56 = vpop.f32.mrf.mxu2  ;;  %v3509_v27 = vpack.c.b16 %v3498_v40, %v3497_v1  ;;  %v3428_v34 = vsel %vm6233_vm4, %v3423_v24, %v7313_v60 }
 0x160   : > { %v2240_v63 = vadd.f32 %v2224_v62, %v7248_v46  ;;  %1891 = vst.msk [vmem:[#allocation2 + $0x38] sm:$0xff] %vm243_vm1, %v1875_v21  ;;  %v1609_v0 = vpop.f32.mrf.mxu0  ;;  %v2883_v46 = vshll.u32 %v5656_v4, 16  ;;  %v1860_v50 = vld [vmem:[#allocation2 + $0x40] sm:$0xff]  ;;  %v2893_v58 = vrot.slane %v2891_v45, 5  ;;  %v7341_v21 = vrot.slane %v2897_v2, 5  ;;  %v5973_v45 = vld [vmem:[%s6218_s7 + $0x54] sm:$0xff] }
 0x161   : > { %v2477_v3 = vld [vmem:[#allocation2 + $0x28] sm:$0xff]  ;;  %1636 = vst.msk [vmem:[#allocation2 + $0x48] sm:$0xff] %vm243_vm1, %v1609_v0  ;;  %v2903_v4 = vrot.slane %v2901_v49, 4  ;;  %v2876_v62 = vsel %vm6233_vm4, %v2871_v26, %v7306_v17  ;;  %v3438_v42 = vsel %vm6233_vm4, %v3433_v36, %v3437_v44  ;;  %v5750_v0 = vld [vmem:[%s6218_s7 + $0x64] sm:$0xf]  ;;  %v3499_v48 = vunpack.c.l.b16 %v3428_v34 }
 0x162   : > { %2256 = vst.msk [vmem:[#allocation2 + $0x30] sm:$0xff] %vm243_vm1, %v2240_v63  ;;  %v2493_v32 = vadd.f32 %v2477_v3, %v7267_v29  ;;  %v2885_v12 = vrot.slane %v2883_v46, 5  ;;  %v5749_v63 = vld [vmem:[%s6218_s7 + $0x60] sm:$0xf]  ;;  %v2894_v7 = vor.u32 %v2893_v58, %v2890_v53  ;;  %v2907_v3 = vshll.u32 %v5659_v54, 16 }
 0x163   : > { %v2524_v47 = vld [vmem:[#allocation2 + $0x20] sm:$0xff]  ;;  %v3440_v8 = vshrl.u32 %v5749_v63, 16  ;;  %v2904_v61 = vor.u32 %v2903_v4, %v7341_v21  ;;  %v3443_v60 = vshll.u32 %v5749_v63, 16  ;;  %v3449_v46 = vshll.u32 %v5750_v0, 16 }
 0x164   : > { %2509 = vst.msk [vmem:[#allocation2 + $0x28] sm:$0xff] %vm243_vm1, %v2493_v32  ;;  %v2540_v15 = vadd.f32 %v7106_v13, %v2524_v47  ;;  %v2886_v20 = vsel %vm6233_vm4, %v2881_v23, %v2885_v12  ;;  %v3453_v52 = vshrl.u32 %v5750_v0, 16  ;;  %v2947_v40 = vunpack.c.l.b16 %v2876_v62  ;;  %v5661_v53 = vld [vmem:[%s6218_s7 + $0x64] sm:$0xf] }
 0x165   : > { %v1832_v29 = vpop.f32.mrf.mxu1  ;;  %v2948_v14 = vunpack.c.l.b16 %v2886_v20  ;;  %v3442_v47 = vrot.slane %v3440_v8, 4  ;;  %v2895_v26 = vrot.slane %v2894_v7, 4  ;;  %v2905_v12 = vrot.slane %v2904_v61, 4  ;;  %v5981_v4 = vld [vmem:[%s6218_s7 + $0x60] sm:$0xff] }
 0x166   : > { %v1876_v19 = vadd.f32 %v1860_v50, %v1832_v29  ;;  %v7322_v22 = vpop.f32.mrf.mxu3  ;;  %5570 = vst.msk [vmem:[%s6751_s30 + $0xa0] sm:$0xff] %vm243_vm1, %v2540_v15  ;;  %v3445_v15 = vrot.slane %v3443_v60, 5  ;;  %v3451_v29 = vrot.slane %v3449_v46, 5  ;;  %v2921_v20 = vshll.u32 %v5661_v53, 16  ;;  %v5780_v46 = vld [vmem:[%s6218_s7 + $0xc] sm:$0xf] }
 0x167   : > { %v2225_v37 = vld [vmem:[#allocation2 + $0x38] sm:$0xff]  ;;  %v7327_v5 = vpop.f32.mrf.mxu2  ;;  %v2958_v28 = vpack.c.b16 %v2948_v14, %v2947_v40  ;;  %v2900_v2 = vsel %vm6233_vm4, %v2895_v26, %v7341_v21  ;;  %v2925_v34 = vshrl.u32 %v5661_v53, 16 }
 0x168   : > { %v2241_v9 = vadd.f32 %v2225_v37, %v7272_v10  ;;  %1892 = vst.msk [vmem:[#allocation2 + $0x40] sm:$0xff] %vm243_vm1, %v1876_v19  ;;  %5668 = vmatmul.msk.bf16.gmra.mxu1 %vm243_vm1, %v2957_v33  ;;  %v1612_v16 = vpop.f32.mrf.mxu0  ;;  %v1861_v57 = vld [vmem:[#allocation2 + $0x48] sm:$0xff]  ;;  %v3500_v19 = vunpack.c.l.b16 %v3438_v42  ;;  %v2909_v37 = vrot.slane %v2907_v3, 5  ;;  %v7396_v42 = vunpack.c.l.b16 %v2900_v2 }
 0x169   : > { %v2478_v25 = vld [vmem:[#allocation2 + $0x30] sm:$0xff]  ;;  %1637 = vst.msk [vmem:[#allocation2 + $0x50] sm:$0xff] %vm243_vm1, %v1612_v16  ;;  %v2923_v3 = vrot.slane %v2921_v20, 5  ;;  %v2927_v8 = vrot.slane %v2925_v34, 4 }
 0x16a   : > { %2257 = vst.msk [vmem:[#allocation2 + $0x38] sm:$0xff] %vm243_vm1, %v2241_v9  ;;  %v2494_v10 = vadd.f32 %v2478_v25, %v7299_v55  ;;  %v3459_v9 = vshll.u32 %v5751_v35, 16  ;;  %v3510_v36 = vpack.c.b16 %v3500_v19, %v3499_v48  ;;  %v2910_v49 = vsel %vm6233_vm4, %v2905_v12, %v2909_v37 }
 0x16b   : > { %5636 = vmatmul.msk.bf16.gmra.mxu0 %vm243_vm1, %v5972_v51  ;;  %5760 = vmatmul.msk.bf16.gmra.mxu3 %vm243_vm1, %v3509_v27  ;;  %v2525_v11 = vld [vmem:[#allocation2 + $0x28] sm:$0xff]  ;;  %v3455_v51 = vrot.slane %v3453_v52, 4  ;;  %v3446_v27 = vor.u32 %v3445_v15, %v3442_v47  ;;  %v7400_v0 = vunpack.c.l.b16 %v2910_v49  ;;  %v2928_v14 = vor.u32 %v2927_v8, %v2923_v3  ;;  %v5781_v47 = vld [vmem:[%s6218_s7 + $0x10] sm:$0xf] }
 0x16c   : > { %2510 = vst.msk [vmem:[#allocation2 + $0x30] sm:$0xff] %vm243_vm1, %v2494_v10  ;;  %5728 = vmatmul.msk.bf16.gmra.mxu2 %vm243_vm1, %v5980_v38  ;;  %v2541_v55 = vadd.f32 %v7106_v13, %v2525_v11  ;;  %v5660_v10 = vld [vmem:[%s6218_s7 + $0x60] sm:$0xf]  ;;  %v3714_v35 = vshll.u32 %v5780_v46, 16  ;;  %v3720_v48 = vshll.u32 %v5781_v47, 16  ;;  %v3724_v19 = vshrl.u32 %v5781_v47, 16 }
 0x16d   : > { %v1834_v43 = vpop.f32.mrf.mxu1  ;;  %v3456_v30 = vor.u32 %v3455_v51, %v3451_v29  ;;  %v3447_v38 = vrot.slane %v3446_v27, 4  ;;  %v2915_v62 = vshll.u32 %v5660_v10, 16  ;;  %v5752_v51 = vld [vmem:[%s6218_s7 + $0x6c] sm:$0xf]  ;;  %v2929_v37 = vrot.slane %v2928_v14, 4 }
 0x16e   : > { %v1877_v41 = vadd.f32 %v1861_v57, %v1834_v43  ;;  %v7358_v6 = vpop.f32.mrf.mxu3  ;;  %5571 = vst.msk [vmem:[%s6751_s30 + $0xa8] sm:$0xff] %vm243_vm1, %v2541_v55  ;;  %v3461_v55 = vrot.slane %v3459_v9, 5  ;;  %v2912_v43 = vshrl.u32 %v5660_v10, 16  ;;  %v5782_v27 = vld [vmem:[%s6218_s7 + $0x14] sm:$0x1]  ;;  %v3716_v9 = vrot.slane %v3714_v35, 5 }
 0x16f   : > { %v2226_v17 = vld [vmem:[#allocation2 + $0x40] sm:$0xff]  ;;  %v7362_v32 = vpop.f32.mrf.mxu2  ;;  %v3457_v11 = vrot.slane %v3456_v30, 4  ;;  %v3452_v21 = vsel %vm6233_vm4, %v3447_v38, %v3451_v29  ;;  %v2917_v7 = vrot.slane %v2915_v62, 5  ;;  %v5982_v35 = vld [vmem:[%s6218_s7 + $0x6c] sm:$0xff] }
 0x170   : > { %v2242_v50 = vadd.f32 %v2226_v17, %v7304_v56  ;;  %1893 = vst.msk [vmem:[#allocation2 + $0x48] sm:$0xff] %vm243_vm1, %v1877_v41  ;;  %v1614_v1 = vpop.f32.mrf.mxu0  ;;  %v1862_v56 = vld [vmem:[#allocation2 + $0x50] sm:$0xff]  ;;  %v2914_v63 = vrot.slane %v2912_v43, 4  ;;  %v5662_v41 = vld [vmem:[%s6218_s7 + $0x68] sm:$0x1]  ;;  %v7407_v61 = vunpack.c.l.b16 %v3452_v21  ;;  %v3467_v43 = vshll.u32 %v5752_v51, 16 }
 0x171   : > { %v2479_v33 = vld [vmem:[#allocation2 + $0x38] sm:$0xff]  ;;  %1638 = vst.msk [vmem:[#allocation2 + $0x58] sm:$0xff] %vm243_vm1, %v1614_v1  ;;  %v2931_v60 = vshll.u32 %v5662_v41, 16  ;;  %v2959_v21 = vpack.c.b16 %v7400_v0, %v7396_v42  ;;  %v5856_v47 = vld [vmem:[%s6218_s7 + $0x20] sm:$0x1] }
 0x172   : > { %2258 = vst.msk [vmem:[#allocation2 + $0x40] sm:$0xff] %vm243_vm1, %v2242_v50  ;;  %v2495_v59 = vadd.f32 %v2479_v33, %v7322_v22  ;;  %v2918_v40 = vor.u32 %v2917_v7, %v2914_v63  ;;  %v3711_v33 = vshrl.u32 %v5780_v46, 16  ;;  %v3469_v63 = vrot.slane %v3467_v43, 5  ;;  %v5855_v42 = vld [vmem:[%s6218_s7 + $0x1c] sm:$0xf]  ;;  %v5974_v46 = vld [vmem:[%s6218_s7 + $0x60] sm:$0xff] }
 0x173   : > { %v2526_v23 = vld [vmem:[#allocation2 + $0x30] sm:$0xff] }
 0x174   : > { %2511 = vst.msk [vmem:[#allocation2 + $0x38] sm:$0xff] %vm243_vm1, %v2495_v59  ;;  %v2542_v22 = vadd.f32 %v7106_v13, %v2526_v23  ;;  %v2933_v59 = vrot.slane %v2931_v60, 5  ;;  %v2919_v12 = vrot.slane %v2918_v40, 4  ;;  %v3713_v23 = vrot.slane %v3711_v33, 4 }
 0x175   : > { %v1837_v16 = vpop.f32.mrf.mxu1 }
 0x176   : > { %v1878_v24 = vadd.f32 %v1862_v56, %v1837_v16  ;;  %v7373_v31 = vpop.f32.mrf.mxu3  ;;  %5572 = vst.msk [vmem:[%s6751_s30 + $0xb0] sm:$0xff] %vm243_vm1, %v2542_v22  ;;  %v3722_v22 = vrot.slane %v3720_v48, 5  ;;  %v3726_v16 = vrot.slane %v3724_v19, 4  ;;  %v3717_v53 = vor.u32 %v3716_v9, %v3713_v23 }
 0x177   : > { %v2227_v25 = vld [vmem:[#allocation2 + $0x48] sm:$0xff]  ;;  %v7378_v44 = vpop.f32.mrf.mxu2  ;;  %v4318_v23 = vshll.u32 %v5856_v47, 16 }
 0x178   : > { %v2243_v58 = vadd.f32 %v2227_v25, %v7327_v5  ;;  %1894 = vst.msk [vmem:[#allocation2 + $0x50] sm:$0xff] %vm243_vm1, %v1878_v24  ;;  %5669 = vmatmul.msk.bf16.gmra.mxu1 %vm243_vm1, %v2958_v28  ;;  %v1617_v54 = vpop.f32.mrf.mxu0  ;;  %v1863_v1 = vld [vmem:[#allocation2 + $0x58] sm:$0xff]  ;;  %v2924_v24 = vsel %vm6233_vm4, %v2919_v12, %v2923_v3  ;;  %v3730_v25 = vshll.u32 %v5782_v27, 16  ;;  %v4312_v12 = vshrl.u32 %v5855_v42, 16 }
 0x179   : > { %v2480_v57 = vld [vmem:[#allocation2 + $0x40] sm:$0xff]  ;;  %1639 = vst.msk [vmem:[#allocation2 + $0x60] sm:$0xff] %vm243_vm1, %v1617_v54  ;;  %v7432_v49 = vunpack.c.l.b16 %v2924_v24 }
 0x17a   : > { %2259 = vst.msk [vmem:[#allocation2 + $0x48] sm:$0xff] %vm243_vm1, %v2243_v58  ;;  %v2496_v5 = vadd.f32 %v2480_v57, %v7358_v6  ;;  %v3462_v6 = vsel %vm6233_vm4, %v3457_v11, %v3461_v55  ;;  %v5754_v58 = vld [vmem:[%s6218_s7 + $0x74] sm:$0x1]  ;;  %v3732_v11 = vrot.slane %v3730_v25, 5  ;;  %v5854_v57 = vld [vmem:[%s6218_s7 + $0x18] sm:$0xf] }
 0x17b   : > { %5637 = vmatmul.msk.bf16.gmra.mxu0 %vm243_vm1, %v5973_v45  ;;  %5761 = vmatmul.msk.bf16.gmra.mxu3 %vm243_vm1, %v3510_v36  ;;  %v2527_v17 = vld [vmem:[#allocation2 + $0x38] sm:$0xff]  ;;  %v2934_v45 = vsel %vm6233_vm4, %v2929_v37, %v2933_v59  ;;  %v5753_v36 = vld [vmem:[%s6218_s7 + $0x70] sm:$0xf]  ;;  %v3483_v41 = vshll.u32 %v5754_v58, 16  ;;  %v4299_v7 = vshrl.u32 %v5854_v57, 16 }
 0x17c   : > { %2512 = vst.msk [vmem:[#allocation2 + $0x40] sm:$0xff] %vm243_vm1, %v2496_v5  ;;  %5729 = vmatmul.msk.bf16.gmra.mxu2 %vm243_vm1, %v5981_v4  ;;  %v2543_v52 = vadd.f32 %v7106_v13, %v2527_v17  ;;  %v7419_v13 = vunpack.c.l.b16 %v3462_v6  ;;  %v7434_v10 = vunpack.c.l.b16 %v2934_v45  ;;  %v3727_v4 = vor.u32 %v3726_v16, %v3722_v22  ;;  %v5814_v16 = vld [vmem:[%s6218_s7 + $0x10] sm:$0xf]  ;;  %v5783_v25 = vld [vmem:[%s6218_s7 + $0x18] sm:$0xf] }
 0x17d   : > { %v1839_v50 = vpop.f32.mrf.mxu1  ;;  %v3473_v62 = vshll.u32 %v5753_v36, 16  ;;  %v3477_v20 = vshrl.u32 %v5753_v36, 16  ;;  %v3485_v59 = vrot.slane %v3483_v41, 5  ;;  %v4301_v48 = vrot.slane %v4299_v7, 4  ;;  %v7490_v7 = vld [vmem:[%s8354_s2] ss:$0 sm:$0xff] }
 0x17e   : > { %v1879_v15 = vadd.f32 %v1863_v1, %v1839_v50  ;;  %v7412_v29 = vpop.f32.mrf.mxu3  ;;  %5573 = vst.msk [vmem:[%s6751_s30 + $0xb8] sm:$0xff] %vm243_vm1, %v2543_v52  ;;  %v3728_v5 = vrot.slane %v3727_v4, 4  ;;  %v3511_v17 = vpack.c.b16 %v7419_v13, %v7407_v61  ;;  %v2960_v50 = vpack.c.b16 %v7434_v10, %v7432_v49 }
 0x17f   : > { %v2228_v56 = vld [vmem:[#allocation2 + $0x50] sm:$0xff]  ;;  %v7417_v26 = vpop.f32.mrf.mxu2  ;;  %v3475_v6 = vrot.slane %v3473_v62, 5  ;;  %v3479_v60 = vrot.slane %v3477_v20, 4  ;;  %v4308_v13 = vshll.u32 %v5855_v42, 16  ;;  %v4070_v45 = vrot.slane %v5814_v16, 5 }
 0x180   : > { %v2244_v28 = vadd.f32 %v2228_v56, %v7362_v32  ;;  %1895 = vst.msk [vmem:[#allocation2 + $0x58] sm:$0xff] %vm243_vm1, %v1879_v15  ;;  %v1619_v30 = vpop.f32.mrf.mxu0  ;;  %v3464_v32 = vshrl.u32 %v5752_v51, 16  ;;  %v1864_v54 = vld [vmem:[#allocation2 + $0x60] sm:$0xff]  ;;  %v3733_v40 = vsel %vm6233_vm4, %v3728_v5, %v3732_v11  ;;  %v4302_v56 = vshll.u32 %v5854_v57, 16  ;;  %v5813_v11 = vld [vmem:[%s6218_s7 + $0xc] sm:$0xe] }
 0x181   : > { %v2481_v38 = vld [vmem:[#allocation2 + $0x48] sm:$0xff]  ;;  %1640 = vst.msk [vmem:[#allocation2 + $0x68] sm:$0xff] %vm243_vm1, %v1619_v30  ;;  %v3480_v15 = vor.u32 %v3479_v60, %v3475_v6  ;;  %v4310_v9 = vrot.slane %v4308_v13, 5  ;;  %v4320_v4 = vrot.slane %v4318_v23, 5  ;;  %v3735_v41 = vshrl.u32 %v5783_v25, 16 }
 0x182   : > { %2260 = vst.msk [vmem:[#allocation2 + $0x50] sm:$0xff] %vm243_vm1, %v2244_v28  ;;  %v2497_v2 = vadd.f32 %v2481_v38, %v7373_v31  ;;  %v3466_v55 = vrot.slane %v3464_v32, 4  ;;  %v3718_v31 = vrot.slane %v3717_v53, 4  ;;  %v4304_v30 = vrot.slane %v4302_v56, 5 }
 0x183   : > { %v3481_v27 = vrot.slane %v3480_v15, 4  ;;  %v2528_v36 = vld [vmem:[#allocation2 + $0x40] sm:$0xff] }
 0x184   : > { %2513 = vst.msk [vmem:[#allocation2 + $0x48] sm:$0xff] %vm243_vm1, %v2497_v2  ;;  %v3723_v1 = vsel %vm6233_vm4, %v3718_v31, %v3722_v22  ;;  %v3470_v14 = vor.u32 %v3469_v63, %v3466_v55  ;;  %v4314_v22 = vrot.slane %v4312_v12, 4  ;;  %v4305_v58 = vor.u32 %v4304_v30, %v4301_v48  ;;  %v5815_v55 = vld [vmem:[%s6218_s7 + $0x14] sm:$0x1] }
 0x185   : > { %v1842_v34 = vpop.f32.mrf.mxu1  ;;  %v7463_v37 = vunpack.c.l.b16 %v3723_v1  ;;  %v3486_v38 = vsel %vm6233_vm4, %v3481_v27, %v3485_v59  ;;  %v4072_v31 = vrot.slane %v4070_v45, 4  ;;  %v4073_v62 = vrot.slane %v5815_v55, 5 }
 0x186   : > { %v1880_v3 = vadd.f32 %v1864_v54, %v1842_v34  ;;  %v7441_v8 = vpop.f32.mrf.mxu3  ;;  %v3471_v51 = vrot.slane %v3470_v14, 4  ;;  %v7479_v53 = vunpack.c.l.b16 %v3486_v38  ;;  %v4315_v54 = vor.u32 %v4314_v22, %v4310_v9 }
 0x187   : > { %v2229_v0 = vld [vmem:[#allocation2 + $0x58] sm:$0xff]  ;;  %v7447_v52 = vpop.f32.mrf.mxu2  ;;  %v4306_v5 = vrot.slane %v4305_v58, 4  ;;  %v7511_v47 = vsel %vm6446_vm7, %v4072_v31, %v4073_v62  ;;  %v5858_v58 = vld [vmem:[%s6218_s7 + $0x28] sm:$0xf] }
 0x188   : > { %v2245_v61 = vadd.f32 %v2229_v0, %v7378_v44  ;;  %1896 = vst.msk [vmem:[#allocation2 + $0x60] sm:$0xff] %vm243_vm1, %v1880_v3  ;;  %5670 = vmatmul.msk.bf16.gmra.mxu1 %vm243_vm1, %v2959_v21  ;;  %v1622_v33 = vpop.f32.mrf.mxu0  ;;  %v3476_v28 = vsel %vm6233_vm4, %v3471_v51, %v3475_v6  ;;  %v1865_v2 = vld [vmem:[#allocation2 + $0x68] sm:$0xff]  ;;  %v5837_v21 = vrot.slane %v5813_v11, 9  ;;  %v4316_v63 = vrot.slane %v4315_v54, 4  ;;  %v5784_v0 = vld [vmem:[%s6218_s7 + $0x1c] sm:$0xf] }
 0x189   : > { %v2482_v19 = vld [vmem:[#allocation2 + $0x50] sm:$0xff]  ;;  %1641 = vst.msk [vmem:[#allocation2 + $0x70] sm:$0xff] %vm243_vm1, %v1622_v33  ;;  %v7476_v24 = vunpack.c.l.b16 %v3476_v28  ;;  %v2544_v3 = vadd.f32 %v7490_v7, %v2528_v36  ;;  %v5888_v33 = vld [vmem:[%s6218_s7 + $0x1c] sm:$0xf]  ;;  %v3744_v13 = vshll.u32 %v5784_v0, 16  ;;  %v3748_v12 = vshrl.u32 %v5784_v0, 16 }
 0x18a   : > { %2261 = vst.msk [vmem:[#allocation2 + $0x58] sm:$0xff] %vm243_vm1, %v2245_v61  ;;  %v2498_v44 = vadd.f32 %v2482_v19, %v7412_v29  ;;  %v7472_v29 = vunpack.c.l.b16 %v3733_v40  ;;  %v7499_v42 = vsel %vm6446_vm7, %v5837_v21, %v4070_v45  ;;  %v4321_v14 = vsel %vm6233_vm4, %v4316_v63, %v4320_v4  ;;  %v5785_v61 = vld [vmem:[%s6218_s7 + $0x20] sm:$0x1]  ;;  %v5857_v45 = vld [vmem:[%s6218_s7 + $0x24] sm:$0xf] }
 0x18b   : > { %5638 = vmatmul.msk.bf16.gmra.mxu0 %vm243_vm1, %v5974_v46  ;;  %5762 = vmatmul.msk.bf16.gmra.mxu3 %vm243_vm1, %v3511_v17  ;;  %v3738_v46 = vshll.u32 %v5783_v25, 16  ;;  %v3512_v40 = vpack.c.b16 %v7479_v53, %v7476_v24  ;;  %v4493_v48 = vunpack.c.l.b16 %v4321_v14  ;;  %v3737_v19 = vrot.slane %v3735_v41, 4  ;;  %5574 = vst.msk [vmem:[%s6751_s30 + $0xc0] sm:$0xff] %vm243_vm1, %v2544_v3  ;;  %v5786_v14 = vld [vmem:[%s6218_s7 + $0x24] sm:$0xf] }
 0x18c   : > { %2514 = vst.msk [vmem:[#allocation2 + $0x50] sm:$0xff] %vm243_vm1, %v2498_v44  ;;  %5730 = vmatmul.msk.bf16.gmra.mxu2 %vm243_vm1, %v5982_v35  ;;  %v3920_v60 = vpack.c.b16 %v7472_v29, %v7463_v37  ;;  %v4126_v51 = vunpack.c.l.b16 %v7499_v42  ;;  %v5887_v44 = vld [vmem:[%s6218_s7 + $0x18] sm:$0xe]  ;;  %v4127_v27 = vunpack.c.l.b16 %v7511_v47  ;;  %v3754_v23 = vshll.u32 %v5785_v61, 16 }
 0x18d   : > { %v1844_v32 = vpop.f32.mrf.mxu1  ;;  %v3740_v56 = vrot.slane %v3738_v46, 5  ;;  %v5911_v28 = vrot.slane %v5887_v44, 9  ;;  %v4690_v30 = vrot.slane %v5888_v33, 5  ;;  %v3746_v16 = vrot.slane %v3744_v13, 5  ;;  %v2529_v44 = vld [vmem:[#allocation2 + $0x48] sm:$0xff] }
 0x18e   : > { %v1881_v43 = vadd.f32 %v1865_v2, %v1844_v32  ;;  %v7483_v57 = vpop.f32.mrf.mxu3  ;;  %v3750_v38 = vrot.slane %v3748_v12, 4  ;;  %v4323_v21 = vshrl.u32 %v5857_v45, 16  ;;  %v4326_v63 = vshll.u32 %v5857_v45, 16 }
 0x18f   : > { %v2230_v20 = vld [vmem:[#allocation2 + $0x60] sm:$0xff]  ;;  %v7485_v34 = vpop.f32.mrf.mxu2  ;;  %v3741_v22 = vor.u32 %v3740_v56, %v3737_v19  ;;  %v4691_v2 = vsel %vm6446_vm7, %v5911_v28, %v4690_v30  ;;  %v4692_v53 = vrot.slane %v4690_v30, 4  ;;  %v4332_v41 = vshll.u32 %v5858_v58, 16 }
 0x190   : > { %v2246_v17 = vadd.f32 %v2230_v20, %v7417_v26  ;;  %1897 = vst.msk [vmem:[#allocation2 + $0x68] sm:$0xff] %vm243_vm1, %v1881_v43  ;;  %v1624_v6 = vpop.f32.mrf.mxu0  ;;  %v4311_v26 = vsel %vm6233_vm4, %v4306_v5, %v4310_v9  ;;  %v1866_v15 = vld [vmem:[#allocation2 + $0x70] sm:$0xff]  ;;  %v3751_v55 = vor.u32 %v3750_v38, %v3746_v16  ;;  %v7532_v43 = vrot.slane %v3754_v23, 5  ;;  %v5859_v5 = vld [vmem:[%s6218_s7 + $0x2c] sm:$0x1] }
 0x191   : > { %v2483_v1 = vld [vmem:[#allocation2 + $0x58] sm:$0xff]  ;;  %1642 = vst.msk [vmem:[#allocation2 + $0x78] sm:$0xff] %vm243_vm1, %v1624_v6  ;;  %v4492_v59 = vunpack.c.l.b16 %v4311_v26  ;;  %v3742_v11 = vrot.slane %v3741_v22, 4  ;;  %v4746_v6 = vunpack.c.l.b16 %v4691_v2  ;;  %v4325_v49 = vrot.slane %v4323_v21, 4  ;;  %v5787_v22 = vld [vmem:[%s6218_s7 + $0x28] sm:$0xf] }
 0x192   : > { %2262 = vst.msk [vmem:[#allocation2 + $0x60] sm:$0xff] %vm243_vm1, %v2246_v17  ;;  %v2499_v35 = vadd.f32 %v2483_v1, %v7441_v8  ;;  %v5889_v8 = vld [vmem:[%s6218_s7 + $0x20] sm:$0x1]  ;;  %v3752_v17 = vrot.slane %v3751_v55, 4  ;;  %v4328_v42 = vrot.slane %v4326_v63, 5  ;;  %v4334_v0 = vrot.slane %v4332_v41, 5 }
 0x193   : > { %v4693_v24 = vrot.slane %v5889_v8, 5  ;;  %v4508_v32 = vpack.c.b16 %v4493_v48, %v4492_v59  ;;  %v4336_v46 = vshrl.u32 %v5858_v58, 16  ;;  %v4342_v1 = vshll.u32 %v5859_v5, 16  ;;  %v5817_v26 = vld [vmem:[%s6218_s7 + $0x1c] sm:$0xf] }
 0x194   : > { %2515 = vst.msk [vmem:[#allocation2 + $0x58] sm:$0xff] %vm243_vm1, %v2499_v35  ;;  %v4077_v47 = vrot.slane %v5817_v26, 5  ;;  %v3759_v61 = vshrl.u32 %v5786_v14, 16  ;;  %v7557_v37 = vpack.c.b16 %v4127_v27, %v4126_v51  ;;  %v3757_v29 = vsel %vm6233_vm4, %v3752_v17, %v7532_v43  ;;  %v5818_v59 = vld [vmem:[%s6218_s7 + $0x20] sm:$0x1]  ;;  %v2530_v51 = vld [vmem:[#allocation2 + $0x50] sm:$0xff] }
 0x195   : > { %v1847_v9 = vpop.f32.mrf.mxu1  ;;  %v4694_v20 = vsel %vm6446_vm7, %v4692_v53, %v4693_v24  ;;  %v4344_v28 = vrot.slane %v4342_v1, 5  ;;  %v7578_v53 = vunpack.c.l.b16 %v3757_v29  ;;  %v3772_v41 = vshrl.u32 %v5787_v22, 16 }
 0x196   : > { %v1882_v25 = vadd.f32 %v1866_v15, %v1847_v9  ;;  %v7525_v36 = vpop.f32.mrf.mxu3  ;;  %v5816_v15 = vld [vmem:[%s6218_s7 + $0x18] sm:$0xe]  ;;  %v4079_v30 = vrot.slane %v4077_v47, 4  ;;  %v4080_v9 = vrot.slane %v5818_v59, 5  ;;  %v3761_v45 = vrot.slane %v3759_v61, 4 }
 0x197   : > { %v2231_v54 = vld [vmem:[#allocation2 + $0x68] sm:$0xff]  ;;  %v7530_v4 = vpop.f32.mrf.mxu2  ;;  %v5838_v12 = vrot.slane %v5816_v15, 9 }
 0x198   : > { %v2247_v31 = vadd.f32 %v2231_v54, %v7447_v52  ;;  %1898 = vst.msk [vmem:[#allocation2 + $0x70] sm:$0xff] %vm243_vm1, %v1882_v25  ;;  %5671 = vmatmul.msk.bf16.gmra.mxu1 %vm243_vm1, %v2960_v50  ;;  %v2663_v62 = vpop.f32.mrf.mxu0  ;;  %v3747_v52 = vsel %vm6233_vm4, %v3742_v11, %v3746_v16  ;;  %v4747_v50 = vunpack.c.l.b16 %v4694_v20  ;;  %v1867_v35 = vld [vmem:[#allocation2 + $0x78] sm:$0xff]  ;;  %v3762_v25 = vshll.u32 %v5786_v14, 16  ;;  %v5788_v54 = vld [vmem:[%s6218_s7 + $0x2c] sm:$0x1] }
 0x199   : > { %v2484_v3 = vld [vmem:[#allocation2 + $0x60] sm:$0xff]  ;;  %2703 = vst.msk [vmem:[#allocation2] sm:$0xff] %vm243_vm1, %v2663_v62  ;;  %v2546_v11 = vadd.f32 %v7490_v7, %v2530_v51  ;;  %v7587_v43 = vsel %vm6446_vm7, %v5838_v12, %v4077_v47  ;;  %v5891_v62 = vld [vmem:[%s6218_s7 + $0x28] sm:$0xf]  ;;  %v4081_v17 = vsel %vm6446_vm7, %v4079_v30, %v4080_v9 }
 0x19a   : > { %2263 = vst.msk [vmem:[#allocation2 + $0x68] sm:$0xff] %vm243_vm1, %v2247_v31  ;;  %v2500_v10 = vadd.f32 %v2484_v3, %v7483_v57  ;;  %v4329_v57 = vor.u32 %v4328_v42, %v4325_v49  ;;  %v7568_v56 = vpack.c.b16 %v4747_v50, %v4746_v6  ;;  %v3764_v21 = vrot.slane %v3762_v25, 5  ;;  %v5890_v3 = vld [vmem:[%s6218_s7 + $0x24] sm:$0xe]  ;;  %v5860_v50 = vld [vmem:[%s6218_s7 + $0x30] sm:$0xf] }
 0x19b   : > { %5805 = vmatmul.msk.bf16.vlgmr.msrb.gmra.mxu0 %vm243_vm1, %v3920_v60  ;;  %5763 = vmatmul.msk.bf16.gmra.mxu3 %vm243_vm1, %v3512_v40  ;;  %v7562_v60 = vunpack.c.l.b16 %v3747_v52  ;;  %v4338_v40 = vrot.slane %v4336_v46, 4  ;;  %v3768_v31 = vshll.u32 %v5787_v22, 16  ;;  %v3778_v46 = vshll.u32 %v5788_v54, 16  ;;  %5576 = vst.msk [vmem:[%s6751_s30 + $0xd0] sm:$0xff] %vm243_vm1, %v2546_v11  ;;  %v7638_v54 = vld [vmem:[%s6218_s7 + $0x28] sm:$0xf] }
 0x19c   : > { %2516 = vst.msk [vmem:[#allocation2 + $0x60] sm:$0xff] %vm243_vm1, %v2500_v10  ;;  %5879 = vmatmul.msk.bf16.vlgmr.msrb.gmra.mxu2 %vm243_vm1, %v4508_v32  ;;  %v4330_v13 = vrot.slane %v4329_v57, 4  ;;  %v2531_v32 = vld [vmem:[#allocation2 + $0x58] sm:$0xff]  ;;  %v3765_v6 = vor.u32 %v3764_v21, %v3761_v45  ;;  %v5892_v10 = vld [vmem:[%s6218_s7 + $0x2c] sm:$0x1]  ;;  %v5912_v1 = vrot.slane %v5890_v3, 9  ;;  %v4128_v61 = vunpack.c.l.b16 %v7587_v43 }
 0x19d   : > { %v1849_v33 = vpop.f32.mrf.mxu1  ;;  %v4339_v8 = vor.u32 %v4338_v40, %v4334_v0  ;;  %v2547_v52 = vadd.f32 %v7490_v7, %v2531_v32  ;;  %v3770_v49 = vrot.slane %v3768_v31, 5  ;;  %v4697_v26 = vrot.slane %v5891_v62, 5  ;;  %v5790_v62 = vld [vmem:[%s6218_s7 + $0x34] sm:$0xf] }
 0x19e   : > { %v1883_v48 = vadd.f32 %v1867_v35, %v1849_v33  ;;  %v7566_v19 = vpop.f32.mrf.mxu3  ;;  %v4335_v24 = vsel %vm6233_vm4, %v4330_v13, %v4334_v0  ;;  %v3774_v0 = vrot.slane %v3772_v41, 4  ;;  %v3921_v47 = vpack.c.b16 %v7578_v53, %v7562_v60  ;;  %v5861_v35 = vld [vmem:[%s6218_s7 + $0x34] sm:$0xf] }
 0x19f   : > { %v2232_v27 = vld [vmem:[#allocation2 + $0x70] sm:$0xff]  ;;  %v7570_v23 = vpop.f32.mrf.mxu2  ;;  %v4340_v58 = vrot.slane %v4339_v8, 4  ;;  %v4494_v63 = vunpack.c.l.b16 %v4335_v24  ;;  %v3766_v33 = vrot.slane %v3765_v6, 4  ;;  %v4699_v59 = vrot.slane %v4697_v26, 4  ;;  %5577 = vst.msk [vmem:[%s6751_s30 + $0xd8] sm:$0xff] %vm243_vm1, %v2547_v52 }
 0x1a0   : > { %v2248_v16 = vadd.f32 %v2232_v27, %v7485_v34  ;;  %1899 = vst.msk [vmem:[#allocation2 + $0x78] sm:$0xff] %vm243_vm1, %v1883_v48  ;;  %v2665_v38 = vpop.f32.mrf.mxu0  ;;  %v2545_v34 = vadd.f32 %v7490_v7, %v2529_v44  ;;  %v3037_v20 = vld [vmem:[#allocation2] sm:$0xff]  ;;  %v3775_v15 = vor.u32 %v3774_v0, %v3770_v49  ;;  %v4700_v48 = vrot.slane %v5892_v10, 5  ;;  %v5862_v27 = vld [vmem:[%s6218_s7 + $0x38] sm:$0x1] }
 0x1a1   : > { %v2485_v2 = vld [vmem:[#allocation2 + $0x68] sm:$0xff]  ;;  %2704 = vst.msk [vmem:[#allocation2 + $0x8] sm:$0xff] %vm243_vm1, %v2665_v38  ;;  %v4345_v5 = vsel %vm6233_vm4, %v4340_v58, %v4344_v28  ;;  %v4347_v13 = vshrl.u32 %v5860_v50, 16  ;;  %v4129_v51 = vunpack.c.l.b16 %v4081_v17  ;;  %v4350_v8 = vshll.u32 %v5860_v50, 16  ;;  %v5819_v52 = vld [vmem:[%s6218_s7 + $0x24] sm:$0xe] }
 0x1a2   : > { %2264 = vst.msk [vmem:[#allocation2 + $0x70] sm:$0xff] %vm243_vm1, %v2248_v16  ;;  %v2501_v55 = vadd.f32 %v2485_v2, %v7525_v36  ;;  %v4495_v36 = vunpack.c.l.b16 %v4345_v5  ;;  %v3771_v9 = vsel %vm6233_vm4, %v3766_v33, %v3770_v49  ;;  %v3780_v22 = vrot.slane %v3778_v46, 5  ;;  %v5821_v50 = vld [vmem:[%s6218_s7 + $0x2c] sm:$0x1] }
 0x1a3   : > { %5575 = vst.msk [vmem:[%s6751_s30 + $0xc8] sm:$0xff] %vm243_vm1, %v2545_v34  ;;  %v2532_v28 = vld [vmem:[#allocation2 + $0x60] sm:$0xff]  ;;  %v4349_v16 = vrot.slane %v4347_v13, 4  ;;  %v3776_v38 = vrot.slane %v3775_v15, 4  ;;  %v4352_v24 = vrot.slane %v4350_v8, 5  ;;  %v4356_v45 = vshll.u32 %v5861_v35, 16 }
 0x1a4   : > { %2517 = vst.msk [vmem:[#allocation2 + $0x68] sm:$0xff] %vm243_vm1, %v2501_v55  ;;  %v4509_v44 = vpack.c.b16 %v4495_v36, %v4494_v63  ;;  %v7632_v25 = vsel %vm6446_vm7, %v4699_v59, %v4700_v48  ;;  %v4360_v32 = vshrl.u32 %v5861_v35, 16  ;;  %v4366_v2 = vshll.u32 %v5862_v27, 16  ;;  %v5791_v15 = vld [vmem:[%s6218_s7 + $0x38] sm:$0x1] }
 0x1a5   : > { %v2997_v42 = vpop.f32.mrf.mxu1  ;;  %v2548_v53 = vadd.f32 %v7490_v7, %v2532_v28  ;;  %v4358_v58 = vrot.slane %v4356_v45, 5  ;;  %v7641_v55 = vpack.c.b16 %v4129_v51, %v4128_v61  ;;  %v7643_v43 = vunpack.c.l.b16 %v3771_v9 }
 0x1a6   : > { %v3053_v14 = vadd.f32 %v3037_v20, %v2997_v42  ;;  %v7601_v57 = vpop.f32.mrf.mxu3  ;;  %v4362_v31 = vrot.slane %v4360_v32, 4  ;;  %v3781_v63 = vsel %vm6233_vm4, %v3776_v38, %v3780_v22  ;;  %v4749_v41 = vunpack.c.l.b16 %v7632_v25  ;;  %v5863_v25 = vld [vmem:[%s6218_s7 + $0x3c] sm:$0xf] }
 0x1a7   : > { %v2233_v29 = vld [vmem:[#allocation2 + $0x78] sm:$0xff]  ;;  %v7609_v40 = vpop.f32.mrf.mxu2  ;;  %5578 = vst.msk [vmem:[%s6751_s30 + $0xe0] sm:$0xff] %vm243_vm1, %v2548_v53  ;;  %v4368_v10 = vrot.slane %v4366_v2, 5  ;;  %v4084_v42 = vrot.slane %v7638_v54, 5  ;;  %v3909_v33 = vunpack.c.l.b16 %v3781_v63  ;;  %v4087_v48 = vrot.slane %v5821_v50, 5 }
 0x1a8   : > { %v2249_v12 = vadd.f32 %v2233_v29, %v7530_v4  ;;  %3069 = vst.msk [vmem:[#allocation2] sm:$0xff] %vm243_vm1, %v3053_v14  ;;  %5846 = vmatmul.msk.bf16.vlgmr.msrb.gmra.mxu1 %vm243_vm1, %v7557_v37  ;;  %v2668_v60 = vpop.f32.mrf.mxu0  ;;  %v7623_v4 = vsel %vm6446_vm7, %v5912_v1, %v4697_v26  ;;  %v3038_v11 = vld [vmem:[#allocation2 + $0x8] sm:$0xff]  ;;  %v4363_v49 = vor.u32 %v4362_v31, %v4358_v58  ;;  %v5839_v29 = vrot.slane %v5819_v52, 9 }
 0x1a9   : > { %v2486_v30 = vld [vmem:[#allocation2 + $0x70] sm:$0xff]  ;;  %2705 = vst.msk [vmem:[#allocation2 + $0x10] sm:$0xff] %vm243_vm1, %v2668_v60  ;;  %v4748_v21 = vunpack.c.l.b16 %v7623_v4  ;;  %v3796_v28 = vshrl.u32 %v5790_v62, 16  ;;  %v3802_v4 = vshll.u32 %v5791_v15, 16  ;;  %v3922_v53 = vpack.c.b16 %v3909_v33, %v7643_v43  ;;  %v5792_v33 = vld [vmem:[%s6218_s7 + $0x3c] sm:$0xf] }
 0x1aa   : > { %2265 = vst.msk [vmem:[#allocation2 + $0x78] sm:$0xff] %vm243_vm1, %v2249_v12  ;;  %v2502_v37 = vadd.f32 %v2486_v30, %v7566_v19  ;;  %v4353_v19 = vor.u32 %v4352_v24, %v4349_v16  ;;  %v4364_v35 = vrot.slane %v4363_v49, 4  ;;  %v5894_v60 = vld [vmem:[%s6218_s7 + $0x34] sm:$0xf]  ;;  %v5893_v30 = vld [vmem:[%s6218_s7 + $0x30] sm:$0xe] }
 0x1ab   : > { %5806 = vmatmul.msk.bf16.gmra.mxu0 %vm243_vm1, %v3921_v47  ;;  %5920 = vmatmul.msk.bf16.vlgmr.msrb.gmra.mxu3 %vm243_vm1, %v7568_v56  ;;  %v5789_v56 = vld [vmem:[%s6218_s7 + $0x30] sm:$0xf]  ;;  %v2533_v36 = vld [vmem:[#allocation2 + $0x68] sm:$0xff]  ;;  %v3792_v47 = vshll.u32 %v5790_v62, 16  ;;  %v5895_v16 = vld [vmem:[%s6218_s7 + $0x38] sm:$0x1] }
 0x1ac   : > { %2518 = vst.msk [vmem:[#allocation2 + $0x70] sm:$0xff] %vm243_vm1, %v2502_v37  ;;  %5880 = vmatmul.msk.bf16.gmra.mxu2 %vm243_vm1, %v4509_v44  ;;  %v4354_v3 = vrot.slane %v4353_v19, 4  ;;  %v3783_v0 = vshrl.u32 %v5789_v56, 16  ;;  %v3786_v14 = vshll.u32 %v5789_v56, 16  ;;  %v2549_v59 = vadd.f32 %v7490_v7, %v2533_v36 }
 0x1ad   : > { %v2999_v34 = vpop.f32.mrf.mxu1  ;;  %v4369_v51 = vsel %vm6233_vm4, %v4364_v35, %v4368_v10  ;;  %v7671_v8 = vrot.slane %v3792_v47, 5  ;;  %v3798_v38 = vrot.slane %v3796_v28, 4  ;;  %v5913_v24 = vrot.slane %v5893_v30, 9  ;;  %v5793_v28 = vld [vmem:[%s6218_s7 + $0x40] sm:$0xf] }
 0x1ae   : > { %v3054_v20 = vadd.f32 %v3038_v11, %v2999_v34  ;;  %v7647_v5 = vpop.f32.mrf.mxu3  ;;  %v4359_v26 = vsel %vm6233_vm4, %v4354_v3, %v4358_v58  ;;  %v3785_v13 = vrot.slane %v3783_v0, 4  ;;  %v3788_v12 = vrot.slane %v3786_v14, 5  ;;  %5579 = vst.msk [vmem:[%s6751_s30 + $0xe8] sm:$0xff] %vm243_vm1, %v2549_v59  ;;  %v5865_v3 = vld [vmem:[%s6218_s7 + $0x44] sm:$0x1] }
 0x1af   : > { %v3223_v17 = vld [vmem:[#allocation2] sm:$0xff]  ;;  %v7655_v6 = vpop.f32.mrf.mxu2  ;;  %v4496_v27 = vunpack.c.l.b16 %v4359_v26  ;;  %v4497_v9 = vunpack.c.l.b16 %v4369_v51  ;;  %v4704_v45 = vrot.slane %v5894_v60, 5  ;;  %v4763_v19 = vpack.c.b16 %v4749_v41, %v4748_v21 }
 0x1b0   : > { %v3239_v46 = vadd.f32 %v3223_v17, %v7570_v23  ;;  %3070 = vst.msk [vmem:[#allocation2 + $0x8] sm:$0xff] %vm243_vm1, %v3054_v20  ;;  %v2670_v1 = vpop.f32.mrf.mxu0  ;;  %v3039_v44 = vld [vmem:[#allocation2 + $0x10] sm:$0xff]  ;;  %v3789_v22 = vor.u32 %v3788_v12, %v3785_v13  ;;  %v7686_v34 = vsel %vm6446_vm7, %v5839_v29, %v4084_v42  ;;  %v3799_v11 = vor.u32 %v3798_v38, %v7671_v8  ;;  %v5864_v20 = vld [vmem:[%s6218_s7 + $0x40] sm:$0xf] }
 0x1b1   : > { %v2487_v61 = vld [vmem:[#allocation2 + $0x78] sm:$0xff]  ;;  %2706 = vst.msk [vmem:[#allocation2 + $0x18] sm:$0xff] %vm243_vm1, %v2670_v1  ;;  %v4706_v31 = vrot.slane %v4704_v45, 4  ;;  %v4707_v62 = vrot.slane %v5895_v16, 5  ;;  %v4510_v21 = vpack.c.b16 %v4497_v9, %v4496_v27  ;;  %v4371_v52 = vshrl.u32 %v5863_v25, 16 }
 0x1b2   : > { %3255 = vst.msk [vmem:[#allocation2] sm:$0xff] %vm243_vm1, %v3239_v46  ;;  %v2503_v23 = vadd.f32 %v2487_v61, %v7601_v57  ;;  %v4086_v57 = vrot.slane %v4084_v42, 4  ;;  %v3790_v58 = vrot.slane %v3789_v22, 4  ;;  %v3800_v17 = vrot.slane %v3799_v11, 4 }
 0x1b3   : > { %v3804_v49 = vrot.slane %v3802_v4, 5  ;;  %v4374_v10 = vshll.u32 %v5863_v25, 16  ;;  %v4373_v42 = vrot.slane %v4371_v52, 4  ;;  %v4380_v0 = vshll.u32 %v5864_v20, 16  ;;  %v2534_v35 = vld [vmem:[#allocation2 + $0x70] sm:$0xff] }
 0x1b4   : > { %2519 = vst.msk [vmem:[#allocation2 + $0x78] sm:$0xff] %vm243_vm1, %v2503_v23  ;;  %v4088_v41 = vsel %vm6446_vm7, %v4086_v57, %v4087_v48  ;;  %v3795_v50 = vsel %vm6233_vm4, %v3790_v58, %v7671_v8  ;;  %v4708_v46 = vsel %vm6446_vm7, %v4706_v31, %v4707_v62  ;;  %v4384_v26 = vshrl.u32 %v5864_v20, 16  ;;  %v7723_v8 = vld [vmem:[%s6218_s7 + $0x34] sm:$0xf]  ;;  %v5794_v31 = vld [vmem:[%s6218_s7 + $0x44] sm:$0x1] }
 0x1b5   : > { %v3002_v37 = vpop.f32.mrf.mxu1  ;;  %v4376_v1 = vrot.slane %v4374_v10, 5  ;;  %v4390_v14 = vshll.u32 %v5865_v3, 16  ;;  %v4131_v47 = vunpack.c.l.b16 %v4088_v41  ;;  %v4382_v61 = vrot.slane %v4380_v0, 5  ;;  %v5897_v20 = vld [vmem:[%s6218_s7 + $0x40] sm:$0xf] }
 0x1b6   : > { %v3055_v32 = vadd.f32 %v3039_v44, %v3002_v37  ;;  %v7679_v2 = vpop.f32.mrf.mxu3  ;;  %v3805_v59 = vsel %vm6233_vm4, %v3800_v17, %v3804_v49  ;;  %v4386_v13 = vrot.slane %v4384_v26, 4  ;;  %v7720_v44 = vunpack.c.l.b16 %v3795_v50  ;;  %v5896_v49 = vld [vmem:[%s6218_s7 + $0x3c] sm:$0xe] }
 0x1b7   : > { %v3224_v54 = vld [vmem:[#allocation2 + $0x8] sm:$0xff]  ;;  %v7682_v56 = vpop.f32.mrf.mxu2  ;;  %v4377_v48 = vor.u32 %v4376_v1, %v4373_v42  ;;  %v4751_v51 = vunpack.c.l.b16 %v4708_v46  ;;  %v4392_v27 = vrot.slane %v4390_v14, 5  ;;  %v3807_v4 = vshrl.u32 %v5792_v33, 16 }
 0x1b8   : > { %v3240_v63 = vadd.f32 %v3224_v54, %v7609_v40  ;;  %3071 = vst.msk [vmem:[#allocation2 + $0x10] sm:$0xff] %vm243_vm1, %v3055_v32  ;;  %5847 = vmatmul.msk.bf16.gmra.mxu1 %vm243_vm1, %v7641_v55  ;;  %v2673_v43 = vpop.f32.mrf.mxu0  ;;  %v7700_v40 = vsel %vm6446_vm7, %v5913_v24, %v4704_v45  ;;  %v3040_v15 = vld [vmem:[#allocation2 + $0x18] sm:$0xff]  ;;  %v4387_v22 = vor.u32 %v4386_v13, %v4382_v61  ;;  %v7731_v24 = vunpack.c.l.b16 %v3805_v59  ;;  %v5822_v45 = vld [vmem:[%s6218_s7 + $0x30] sm:$0xe] }
 0x1b9   : > { %v3589_v36 = vld [vmem:[#allocation2] sm:$0xff]  ;;  %2707 = vst.msk [vmem:[#allocation2 + $0x20] sm:$0xff] %vm243_vm1, %v2673_v43  ;;  %v4750_v23 = vunpack.c.l.b16 %v7700_v40  ;;  %v4378_v57 = vrot.slane %v4377_v48, 4  ;;  %v2550_v16 = vadd.f32 %v7490_v7, %v2534_v35  ;;  %v3810_v25 = vshll.u32 %v5792_v33, 16  ;;  %v5824_v54 = vld [vmem:[%s6218_s7 + $0x38] sm:$0x1] }
 0x1ba   : > { %3256 = vst.msk [vmem:[#allocation2 + $0x8] sm:$0xff] %vm243_vm1, %v3240_v63  ;;  %v3605_v55 = vadd.f32 %v3589_v36, %v7647_v5  ;;  %v4130_v5 = vunpack.c.l.b16 %v7686_v34  ;;  %v3816_v32 = vshll.u32 %v5793_v28, 16  ;;  %v4388_v58 = vrot.slane %v4387_v22, 4  ;;  %v5898_v40 = vld [vmem:[%s6218_s7 + $0x44] sm:$0x1] }
 0x1bb   : > { %5807 = vmatmul.msk.bf16.gmra.mxu0 %vm243_vm1, %v3922_v53  ;;  %5921 = vmatmul.msk.bf16.gmra.mxu3 %vm243_vm1, %v4763_v19  ;;  %v4383_v19 = vsel %vm6233_vm4, %v4378_v57, %v4382_v61  ;;  %v3809_v62 = vrot.slane %v3807_v4, 4  ;;  %v3820_v3 = vshrl.u32 %v5793_v28, 16  ;;  %5580 = vst.msk [vmem:[%s6751_s30 + $0xf0] sm:$0xff] %vm243_vm1, %v2550_v16  ;;  %v4764_v52 = vpack.c.b16 %v4751_v51, %v4750_v23  ;;  %v2535_v10 = vld [vmem:[#allocation2 + $0x78] sm:$0xff] }
 0x1bc   : > { %3621 = vst.msk [vmem:[#allocation2] sm:$0xff] %vm243_vm1, %v3605_v55  ;;  %5881 = vmatmul.msk.bf16.gmra.mxu2 %vm243_vm1, %v4510_v21  ;;  %v4144_v11 = vpack.c.b16 %v4131_v47, %v4130_v5  ;;  %v4393_v43 = vsel %vm6233_vm4, %v4388_v58, %v4392_v27  ;;  %v3812_v21 = vrot.slane %v3810_v25, 5  ;;  %v7745_v41 = vrot.slane %v3816_v32, 5  ;;  %v5867_v25 = vld [vmem:[%s6218_s7 + $0x4c] sm:$0xf] }
 0x1bd   : > { %v3004_v29 = vpop.f32.mrf.mxu1  ;;  %v4498_v36 = vunpack.c.l.b16 %v4383_v19  ;;  %v4499_v17 = vunpack.c.l.b16 %v4393_v43  ;;  %v5840_v50 = vrot.slane %v5822_v45, 9  ;;  %v3822_v0 = vrot.slane %v3820_v3, 4  ;;  %v5866_v45 = vld [vmem:[%s6218_s7 + $0x48] sm:$0xf]  ;;  %v5868_v19 = vld [vmem:[%s6218_s7 + $0x50] sm:$0x1] }
 0x1be   : > { %v3056_v12 = vadd.f32 %v3040_v15, %v3004_v29  ;;  %v7718_v60 = vpop.f32.mrf.mxu3  ;;  %v3813_v42 = vor.u32 %v3812_v21, %v3809_v62  ;;  %v4711_v46 = vrot.slane %v5897_v20, 5  ;;  %v4094_v5 = vrot.slane %v5824_v54, 5 }
 0x1bf   : > { %v3225_v30 = vld [vmem:[#allocation2 + $0x10] sm:$0xff]  ;;  %v7726_v9 = vpop.f32.mrf.mxu2  ;;  %v3826_v47 = vshll.u32 %v5794_v31, 16  ;;  %v3823_v35 = vor.u32 %v3822_v0, %v7745_v41  ;;  %v5914_v29 = vrot.slane %v5896_v49, 9  ;;  %v4714_v15 = vrot.slane %v5898_v40, 5 }
 0x1c0   : > { %v3241_v37 = vadd.f32 %v3225_v30, %v7655_v6  ;;  %3072 = vst.msk [vmem:[#allocation2 + $0x18] sm:$0xff] %vm243_vm1, %v3056_v12  ;;  %v2675_v38 = vpop.f32.mrf.mxu0  ;;  %v4091_v6 = vrot.slane %v7723_v8, 5  ;;  %v3041_v63 = vld [vmem:[#allocation2 + $0x20] sm:$0xff]  ;;  %v2551_v59 = vadd.f32 %v7490_v7, %v2535_v10  ;;  %v4511_v12 = vpack.c.b16 %v4499_v17, %v4498_v36 }
 0x1c1   : > { %v3590_v53 = vld [vmem:[#allocation2 + $0x8] sm:$0xff]  ;;  %2708 = vst.msk [vmem:[#allocation2 + $0x28] sm:$0xff] %vm243_vm1, %v2675_v38  ;;  %v4713_v51 = vrot.slane %v4711_v46, 4  ;;  %v3824_v28 = vrot.slane %v3823_v35, 4  ;;  %v3828_v30 = vrot.slane %v3826_v47, 5  ;;  %v4712_v4 = vsel %vm6446_vm7, %v5914_v29, %v4711_v46 }
 0x1c2   : > { %3257 = vst.msk [vmem:[#allocation2 + $0x10] sm:$0xff] %vm243_vm1, %v3241_v37  ;;  %v3606_v34 = vadd.f32 %v3590_v53, %v7679_v2  ;;  %v3923_v2 = vpack.c.b16 %v7731_v24, %v7720_v44  ;;  %v4093_v14 = vrot.slane %v4091_v6, 4  ;;  %v3814_v44 = vrot.slane %v3813_v42, 4  ;;  %v5827_v35 = vld [vmem:[%s6218_s7 + $0x44] sm:$0x1] }
 0x1c3   : > { %v3637_v23 = vld [vmem:[#allocation2] sm:$0xff]  ;;  %v7766_v8 = vsel %vm6446_vm7, %v5840_v50, %v4091_v6  ;;  %5581 = vst.msk [vmem:[%s6751_s30 + $0xf8] sm:$0xff] %vm243_vm1, %v2551_v59  ;;  %v4715_v24 = vsel %vm6446_vm7, %v4713_v51, %v4714_v15  ;;  %v4395_v58 = vshrl.u32 %v5866_v45, 16  ;;  %v4398_v54 = vshll.u32 %v5866_v45, 16 }
 0x1c4   : > { %3622 = vst.msk [vmem:[#allocation2 + $0x8] sm:$0xff] %vm243_vm1, %v3606_v34  ;;  %v3653_v57 = vadd.f32 %v7490_v7, %v3637_v23  ;;  %v4095_v22 = vsel %vm6446_vm7, %v4093_v14, %v4094_v5  ;;  %v4132_v37 = vunpack.c.l.b16 %v7766_v8  ;;  %v3819_v38 = vsel %vm6233_vm4, %v3814_v44, %v7745_v41  ;;  %v5825_v14 = vld [vmem:[%s6218_s7 + $0x3c] sm:$0xe]  ;;  %v5826_v5 = vld [vmem:[%s6218_s7 + $0x40] sm:$0xf] }
 0x1c5   : > { %v3007_v55 = vpop.f32.mrf.mxu1  ;;  %v4404_v6 = vshll.u32 %v5867_v25, 16  ;;  %v4408_v34 = vshrl.u32 %v5867_v25, 16  ;;  %v4133_v62 = vunpack.c.l.b16 %v4095_v22  ;;  %v3829_v20 = vsel %vm6233_vm4, %v3824_v28, %v3828_v30  ;;  %v5797_v22 = vld [vmem:[%s6218_s7 + $0x50] sm:$0x1] }
 0x1c6   : > { %v3057_v1 = vadd.f32 %v3041_v63, %v3007_v55  ;;  %v7754_v26 = vpop.f32.mrf.mxu3  ;;  %v4414_v63 = vshll.u32 %v5868_v19, 16  ;;  %5764 = vst.msk [vmem:[%s6751_s30 + $0x100] sm:$0xff] %vm243_vm1, %v3653_v57  ;;  %v4397_v41 = vrot.slane %v4395_v58, 4  ;;  %v4400_v3 = vrot.slane %v4398_v54, 5  ;;  %v5900_v54 = vld [vmem:[%s6218_s7 + $0x4c] sm:$0xf] }
 0x1c7   : > { %v3226_v61 = vld [vmem:[#allocation2 + $0x18] sm:$0xff]  ;;  %v7756_v33 = vpop.f32.mrf.mxu2  ;;  %v7803_v49 = vunpack.c.l.b16 %v3819_v38  ;;  %v4752_v40 = vunpack.c.l.b16 %v4712_v4  ;;  %v4753_v10 = vunpack.c.l.b16 %v4715_v24  ;;  %v3913_v50 = vunpack.c.l.b16 %v3829_v20  ;;  %v5899_v4 = vld [vmem:[%s6218_s7 + $0x48] sm:$0xe] }
 0x1c8   : > { %v3242_v48 = vadd.f32 %v3226_v61, %v7682_v56  ;;  %3073 = vst.msk [vmem:[#allocation2 + $0x20] sm:$0xff] %vm243_vm1, %v3057_v1  ;;  %5848 = vmatmul.msk.bf16.gmra.mxu1 %vm243_vm1, %v4144_v11  ;;  %v2678_v13 = vpop.f32.mrf.mxu0  ;;  %v3042_v16 = vld [vmem:[#allocation2 + $0x28] sm:$0xff]  ;;  %v4401_v42 = vor.u32 %v4400_v3, %v4397_v41  ;;  %v4416_v46 = vrot.slane %v4414_v63, 5  ;;  %v5841_v29 = vrot.slane %v5825_v14, 9 }
 0x1c9   : > { %v3591_v27 = vld [vmem:[#allocation2 + $0x10] sm:$0xff]  ;;  %2709 = vst.msk [vmem:[#allocation2 + $0x30] sm:$0xff] %vm243_vm1, %v2678_v13  ;;  %v4098_v15 = vrot.slane %v5826_v5, 5  ;;  %v4145_v59 = vpack.c.b16 %v4133_v62, %v4132_v37  ;;  %v4765_v23 = vpack.c.b16 %v4753_v10, %v4752_v40  ;;  %v5796_v13 = vld [vmem:[%s6218_s7 + $0x4c] sm:$0xf]  ;;  %v3924_v44 = vpack.c.b16 %v3913_v50, %v7803_v49 }
 0x1ca   : > { %3258 = vst.msk [vmem:[#allocation2 + $0x18] sm:$0xff] %vm243_vm1, %v3242_v48  ;;  %v3607_v56 = vadd.f32 %v3591_v27, %v7718_v60  ;;  %v4402_v47 = vrot.slane %v4401_v42, 4  ;;  %v5795_v48 = vld [vmem:[%s6218_s7 + $0x48] sm:$0xf]  ;;  %v4101_v27 = vrot.slane %v5827_v35, 5  ;;  %v3840_v45 = vshll.u32 %v5796_v13, 16 }
 0x1cb   : > { %5808 = vmatmul.msk.bf16.gmra.mxu0 %vm243_vm1, %v3923_v2  ;;  %5922 = vmatmul.msk.bf16.gmra.mxu3 %vm243_vm1, %v4764_v52  ;;  %v3638_v60 = vld [vmem:[#allocation2 + $0x8] sm:$0xff]  ;;  %v4406_v2 = vrot.slane %v4404_v6, 5  ;;  %v4410_v52 = vrot.slane %v4408_v34, 4  ;;  %v7823_v57 = vsel %vm6446_vm7, %v5841_v29, %v4098_v15  ;;  %v4100_v37 = vrot.slane %v4098_v15, 4  ;;  %v5901_v6 = vld [vmem:[%s6218_s7 + $0x50] sm:$0x1] }
 0x1cc   : > { %3623 = vst.msk [vmem:[#allocation2 + $0x10] sm:$0xff] %vm243_vm1, %v3607_v56  ;;  %5882 = vmatmul.msk.bf16.gmra.mxu2 %vm243_vm1, %v4511_v12  ;;  %v3654_v32 = vadd.f32 %v7490_v7, %v3638_v60  ;;  %v3831_v38 = vshrl.u32 %v5795_v48, 16  ;;  %v3834_v24 = vshll.u32 %v5795_v48, 16  ;;  %v3844_v58 = vshrl.u32 %v5796_v13, 16  ;;  %v5869_v10 = vld [vmem:[%s6218_s7 + $0x54] sm:$0xf] }
 0x1cd   : > { %v3009_v53 = vpop.f32.mrf.mxu1  ;;  %v4411_v0 = vor.u32 %v4410_v52, %v4406_v2  ;;  %v3842_v20 = vrot.slane %v3840_v45, 5  ;;  %v3850_v63 = vshll.u32 %v5797_v22, 16  ;;  %v5915_v3 = vrot.slane %v5899_v4, 9  ;;  %v5871_v13 = vld [vmem:[%s6218_s7 + $0x5c] sm:$0x1] }
 0x1ce   : > { %v3058_v11 = vadd.f32 %v3042_v16, %v3009_v53  ;;  %v7791_v31 = vpop.f32.mrf.mxu3  ;;  %5765 = vst.msk [vmem:[%s6751_s30 + $0x108] sm:$0xff] %vm243_vm1, %v3654_v32  ;;  %v3836_v62 = vrot.slane %v3834_v24, 5  ;;  %v3846_v41 = vrot.slane %v3844_v58, 4  ;;  %v4419_v5 = vshrl.u32 %v5869_v10, 16  ;;  %v5828_v24 = vld [vmem:[%s6218_s7 + $0x48] sm:$0xe] }
 0x1cf   : > { %v3227_v43 = vld [vmem:[#allocation2 + $0x20] sm:$0xff]  ;;  %v7797_v21 = vpop.f32.mrf.mxu2  ;;  %v4412_v61 = vrot.slane %v4411_v0, 4  ;;  %v3852_v40 = vrot.slane %v3850_v63, 5  ;;  %v4422_v15 = vshll.u32 %v5869_v10, 16  ;;  %v5829_v45 = vld [vmem:[%s6218_s7 + $0x4c] sm:$0xf] }
 0x1d0   : > { %v3243_v36 = vadd.f32 %v3227_v43, %v7726_v9  ;;  %3074 = vst.msk [vmem:[#allocation2 + $0x28] sm:$0xff] %vm243_vm1, %v3058_v11  ;;  %v2680_v17 = vpop.f32.mrf.mxu0  ;;  %v3043_v1 = vld [vmem:[#allocation2 + $0x30] sm:$0xff]  ;;  %v3833_v11 = vrot.slane %v3831_v38, 4  ;;  %v4134_v43 = vunpack.c.l.b16 %v7823_v57  ;;  %v4438_v38 = vshll.u32 %v5871_v13, 16  ;;  %v5903_v13 = vld [vmem:[%s6218_s7 + $0x58] sm:$0xf] }
 0x1d1   : > { %v3592_v55 = vld [vmem:[#allocation2 + $0x18] sm:$0xff]  ;;  %2710 = vst.msk [vmem:[#allocation2 + $0x38] sm:$0xff] %vm243_vm1, %v2680_v17  ;;  %v4417_v51 = vsel %vm6233_vm4, %v4412_v61, %v4416_v46  ;;  %v4721_v17 = vrot.slane %v5901_v6, 5  ;;  %v4424_v57 = vrot.slane %v4422_v15, 5  ;;  %v5830_v58 = vld [vmem:[%s6218_s7 + $0x50] sm:$0x1] }
 0x1d2   : > { %3259 = vst.msk [vmem:[#allocation2 + $0x20] sm:$0xff] %vm243_vm1, %v3243_v36  ;;  %v3608_v9 = vadd.f32 %v3592_v55, %v7754_v26  ;;  %v4407_v26 = vsel %vm6233_vm4, %v4402_v47, %v4406_v2  ;;  %v4501_v30 = vunpack.c.l.b16 %v4417_v51  ;;  %v4102_v2 = vsel %vm6446_vm7, %v4100_v37, %v4101_v27  ;;  %v5870_v55 = vld [vmem:[%s6218_s7 + $0x58] sm:$0xf] }
 0x1d3   : > { %v4500_v28 = vunpack.c.l.b16 %v4407_v26  ;;  %v3639_v25 = vld [vmem:[#allocation2 + $0x10] sm:$0xff]  ;;  %v3837_v52 = vor.u32 %v3836_v62, %v3833_v11  ;;  %v4718_v36 = vrot.slane %v5900_v54, 5  ;;  %v4135_v35 = vunpack.c.l.b16 %v4102_v2 }
 0x1d4   : > { %3624 = vst.msk [vmem:[#allocation2 + $0x18] sm:$0xff] %vm243_vm1, %v3608_v9  ;;  %v3655_v50 = vadd.f32 %v7490_v7, %v3639_v25  ;;  %v4432_v4 = vshrl.u32 %v5870_v55, 16  ;;  %v5842_v54 = vrot.slane %v5828_v24, 9  ;;  %v4105_v11 = vrot.slane %v5829_v45, 5 }
 0x1d5   : > { %v3012_v12 = vpop.f32.mrf.mxu1  ;;  %v4512_v19 = vpack.c.b16 %v4501_v30, %v4500_v28  ;;  %v3838_v9 = vrot.slane %v3837_v52, 4  ;;  %v4720_v14 = vrot.slane %v4718_v36, 4  ;;  %v4108_v62 = vrot.slane %v5830_v58, 5 }
 0x1d6   : > { %v3059_v8 = vadd.f32 %v3043_v1, %v3012_v12  ;;  %v7819_v56 = vpop.f32.mrf.mxu3  ;;  %v4719_v1 = vsel %vm6446_vm7, %v5915_v3, %v4718_v36  ;;  %5766 = vst.msk [vmem:[%s6751_s30 + $0x110] sm:$0xff] %vm243_vm1, %v3655_v50  ;;  %v4421_v12 = vrot.slane %v4419_v5, 4  ;;  %v4440_v3 = vrot.slane %v4438_v38, 5 }
 0x1d7   : > { %v3228_v60 = vld [vmem:[#allocation2 + $0x28] sm:$0xff]  ;;  %v7827_v16 = vpop.f32.mrf.mxu2  ;;  %v4722_v48 = vsel %vm6446_vm7, %v4720_v14, %v4721_v17  ;;  %v7885_v17 = vsel %vm6446_vm7, %v5842_v54, %v4105_v11 }
 0x1d8   : > { %v3244_v32 = vadd.f32 %v3228_v60, %v7756_v33  ;;  %3075 = vst.msk [vmem:[#allocation2 + $0x30] sm:$0xff] %vm243_vm1, %v3059_v8  ;;  %5849 = vmatmul.msk.bf16.gmra.mxu1 %vm243_vm1, %v4145_v59  ;;  %v2683_v53 = vpop.f32.mrf.mxu0  ;;  %v3044_v46 = vld [vmem:[#allocation2 + $0x38] sm:$0xff]  ;;  %v4754_v8 = vunpack.c.l.b16 %v4719_v1  ;;  %v4755_v28 = vunpack.c.l.b16 %v4722_v48  ;;  %v4146_v60 = vpack.c.b16 %v4135_v35, %v4134_v43 }
 0x1d9   : > { %v3593_v34 = vld [vmem:[#allocation2 + $0x20] sm:$0xff]  ;;  %2711 = vst.msk [vmem:[#allocation2 + $0x40] sm:$0xff] %vm243_vm1, %v2683_v53  ;;  %v4425_v53 = vor.u32 %v4424_v57, %v4421_v12 }
 0x1da   : > { %3260 = vst.msk [vmem:[#allocation2 + $0x28] sm:$0xff] %vm243_vm1, %v3244_v32  ;;  %v3609_v33 = vadd.f32 %v3593_v34, %v7791_v31  ;;  %v3847_v31 = vor.u32 %v3846_v41, %v3842_v20  ;;  %v4766_v34 = vpack.c.b16 %v4755_v28, %v4754_v8 }
 0x1db   : > { %5809 = vmatmul.msk.bf16.gmra.mxu0 %vm243_vm1, %v3924_v44  ;;  %5923 = vmatmul.msk.bf16.gmra.mxu3 %vm243_vm1, %v4765_v23  ;;  %v3640_v49 = vld [vmem:[#allocation2 + $0x18] sm:$0xff]  ;;  %v3843_v23 = vsel %vm6233_vm4, %v3838_v9, %v3842_v20  ;;  %v4428_v44 = vshll.u32 %v5870_v55, 16  ;;  %v7878_v20 = vld [vmem:[%s8354_s2] ss:$0 sm:$0xff]  ;;  %v4426_v43 = vrot.slane %v4425_v53, 4 }
 0x1dc   : > { %3625 = vst.msk [vmem:[#allocation2 + $0x20] sm:$0xff] %vm243_vm1, %v3609_v33  ;;  %5883 = vmatmul.msk.bf16.gmra.mxu2 %vm243_vm1, %v4512_v19  ;;  %v3656_v42 = vadd.f32 %v7490_v7, %v3640_v49  ;;  %v3848_v29 = vrot.slane %v3847_v31, 4  ;;  %v3914_v37 = vunpack.c.l.b16 %v3843_v23  ;;  %v4434_v19 = vrot.slane %v4432_v4, 4  ;;  %v5799_v31 = vld [vmem:[%s6218_s7 + $0x58] sm:$0xf] }
 0x1dd   : > { %v3014_v0 = vpop.f32.mrf.mxu1  ;;  %v4430_v22 = vrot.slane %v4428_v44, 5  ;;  %v4107_v49 = vrot.slane %v4105_v11, 4  ;;  %v3864_v23 = vshll.u32 %v5799_v31, 16  ;;  %v3868_v48 = vshrl.u32 %v5799_v31, 16 }
 0x1de   : > { %v3060_v47 = vadd.f32 %v3044_v46, %v3014_v0  ;;  %v7850_v61 = vpop.f32.mrf.mxu3  ;;  %5767 = vst.msk [vmem:[%s6751_s30 + $0x118] sm:$0xff] %vm243_vm1, %v3656_v42  ;;  %v3853_v27 = vsel %vm6233_vm4, %v3848_v29, %v3852_v40  ;;  %v5800_v46 = vld [vmem:[%s6218_s7 + $0x5c] sm:$0x1]  ;;  %v5902_v29 = vld [vmem:[%s6218_s7 + $0x54] sm:$0xe] }
 0x1df   : > { %v3229_v59 = vld [vmem:[#allocation2 + $0x30] sm:$0xff]  ;;  %v7854_v7 = vpop.f32.mrf.mxu2  ;;  %v3915_v32 = vunpack.c.l.b16 %v3853_v27  ;;  %v4435_v41 = vor.u32 %v4434_v19, %v4430_v22  ;;  %v4431_v42 = vsel %vm6233_vm4, %v4426_v43, %v4430_v22  ;;  %v5904_v27 = vld [vmem:[%s6218_s7 + $0x5c] sm:$0x1]  ;;  %v3866_v28 = vrot.slane %v3864_v23, 5 }
 0x1e0   : > { %v3245_v26 = vadd.f32 %v3229_v59, %v7797_v21  ;;  %3076 = vst.msk [vmem:[#allocation2 + $0x38] sm:$0xff] %vm243_vm1, %v3060_v47  ;;  %v2685_v51 = vpop.f32.mrf.mxu0  ;;  %v3045_v25 = vld [vmem:[#allocation2 + $0x40] sm:$0xff]  ;;  %v4502_v5 = vunpack.c.l.b16 %v4431_v42  ;;  %v7900_v47 = vsel %vm6446_vm7, %v4107_v49, %v4108_v62  ;;  %v5916_v57 = vrot.slane %v5902_v29, 9  ;;  %v5874_v62 = vld [vmem:[%s6218_s7 + $0x68] sm:$0x1] }
 0x1e1   : > { %v3594_v30 = vld [vmem:[#allocation2 + $0x28] sm:$0xff]  ;;  %2712 = vst.msk [vmem:[#allocation2 + $0x48] sm:$0xff] %vm243_vm1, %v2685_v51  ;;  %v3925_v55 = vpack.c.b16 %v3915_v32, %v3914_v37  ;;  %v4436_v0 = vrot.slane %v4435_v41, 4  ;;  %v3874_v51 = vshll.u32 %v5800_v46, 16  ;;  %v4137_v8 = vunpack.c.l.b16 %v7900_v47  ;;  %v5872_v37 = vld [vmem:[%s6218_s7 + $0x60] sm:$0xf] }
 0x1e2   : > { %3261 = vst.msk [vmem:[#allocation2 + $0x30] sm:$0xff] %vm243_vm1, %v3245_v26  ;;  %v3610_v21 = vadd.f32 %v3594_v30, %v7819_v56  ;;  %v5798_v56 = vld [vmem:[%s6218_s7 + $0x54] sm:$0xf]  ;;  %v3870_v30 = vrot.slane %v3868_v48, 4  ;;  %v5873_v32 = vld [vmem:[%s6218_s7 + $0x64] sm:$0xf] }
 0x1e3   : > { %v3641_v6 = vld [vmem:[#allocation2 + $0x20] sm:$0xff]  ;;  %v3855_v2 = vshrl.u32 %v5798_v56, 16  ;;  %v3858_v40 = vshll.u32 %v5798_v56, 16  ;;  %v4441_v59 = vsel %vm6233_vm4, %v4436_v0, %v4440_v3  ;;  %v4443_v53 = vshrl.u32 %v5872_v37, 16 }
 0x1e4   : > { %3626 = vst.msk [vmem:[#allocation2 + $0x28] sm:$0xff] %vm243_vm1, %v3610_v21  ;;  %v3657_v63 = vadd.f32 %v7878_v20, %v3641_v6  ;;  %v4503_v44 = vunpack.c.l.b16 %v4441_v59  ;;  %v3876_v21 = vrot.slane %v3874_v51, 5  ;;  %v3871_v45 = vor.u32 %v3870_v30, %v3866_v28  ;;  %v5833_v59 = vld [vmem:[%s6218_s7 + $0x5c] sm:$0x1] }
 0x1e5   : > { %v3017_v33 = vpop.f32.mrf.mxu1  ;;  %v3857_v9 = vrot.slane %v3855_v2, 4  ;;  %v3860_v35 = vrot.slane %v3858_v40, 5  ;;  %v4445_v3 = vrot.slane %v4443_v53, 4  ;;  %v4446_v31 = vshll.u32 %v5872_v37, 16 }
 0x1e6   : > { %v3061_v52 = vadd.f32 %v3045_v25, %v3017_v33  ;;  %v7881_v36 = vpop.f32.mrf.mxu3  ;;  %5768 = vst.msk [vmem:[%s6751_s30 + $0x120] sm:$0xff] %vm243_vm1, %v3657_v63  ;;  %v4513_v4 = vpack.c.b16 %v4503_v44, %v4502_v5  ;;  %v4728_v25 = vrot.slane %v5904_v27, 5  ;;  %v3872_v33 = vrot.slane %v3871_v45, 4  ;;  %v5831_v5 = vld [vmem:[%s6218_s7 + $0x54] sm:$0xe] }
 0x1e7   : > { %v3230_v10 = vld [vmem:[#allocation2 + $0x38] sm:$0xff]  ;;  %v7888_v50 = vpop.f32.mrf.mxu2  ;;  %v3861_v26 = vor.u32 %v3860_v35, %v3857_v9  ;;  %v4452_v40 = vshll.u32 %v5873_v32, 16  ;;  %v4456_v0 = vshrl.u32 %v5873_v32, 16 }
 0x1e8   : > { %v3246_v1 = vadd.f32 %v3230_v10, %v7827_v16  ;;  %3077 = vst.msk [vmem:[#allocation2 + $0x40] sm:$0xff] %vm243_vm1, %v3061_v52  ;;  %5850 = vmatmul.msk.bf16.gmra.mxu1 %vm243_vm1, %v4146_v60  ;;  %v2688_v14 = vpop.f32.mrf.mxu0  ;;  %v4136_v16 = vunpack.c.l.b16 %v7885_v17  ;;  %v4725_v60 = vrot.slane %v5903_v13, 5  ;;  %v3046_v24 = vld [vmem:[#allocation2 + $0x48] sm:$0xff]  ;;  %v5802_v17 = vld [vmem:[%s6218_s7 + $0x64] sm:$0xf] }
 0x1e9   : > { %v3595_v15 = vld [vmem:[#allocation2 + $0x30] sm:$0xff]  ;;  %2713 = vst.msk [vmem:[#allocation2 + $0x50] sm:$0xff] %vm243_vm1, %v2688_v14  ;;  %v4454_v14 = vrot.slane %v4452_v40, 5  ;;  %v4458_v29 = vrot.slane %v4456_v0, 4 }
 0x1ea   : > { %3262 = vst.msk [vmem:[#allocation2 + $0x38] sm:$0xff] %vm243_vm1, %v3246_v1  ;;  %v3611_v12 = vadd.f32 %v3595_v15, %v7850_v61  ;;  %v3862_v61 = vrot.slane %v3861_v26, 4  ;;  %v4727_v11 = vrot.slane %v4725_v60, 4  ;;  %v4448_v1 = vrot.slane %v4446_v31, 5  ;;  %v5832_v15 = vld [vmem:[%s6218_s7 + $0x58] sm:$0xf] }
 0x1eb   : > { %5810 = vmatmul.msk.bf16.gmra.mxu0 %vm243_vm1, %v3925_v55  ;;  %5924 = vmatmul.msk.bf16.gmra.mxu3 %vm243_vm1, %v4766_v34  ;;  %v3642_v22 = vld [vmem:[#allocation2 + $0x28] sm:$0xff]  ;;  %v4726_v34 = vsel %vm6446_vm7, %v5916_v57, %v4725_v60  ;;  %v3877_v55 = vsel %vm6233_vm4, %v3872_v33, %v3876_v21  ;;  %v4147_v35 = vpack.c.b16 %v4137_v8, %v4136_v16 }
 0x1ec   : > { %3627 = vst.msk [vmem:[#allocation2 + $0x30] sm:$0xff] %vm243_vm1, %v3611_v12  ;;  %v3658_v19 = vadd.f32 %v7878_v20, %v3642_v22  ;;  %5884 = vmatmul.msk.bf16.gmra.mxu2 %vm243_vm1, %v4513_v4  ;;  %v3867_v6 = vsel %vm6233_vm4, %v3862_v61, %v3866_v28  ;;  %v4756_v41 = vunpack.c.l.b16 %v4726_v34  ;;  %v4729_v49 = vsel %vm6446_vm7, %v4727_v11, %v4728_v25  ;;  %v5803_v4 = vld [vmem:[%s6218_s7 + $0x68] sm:$0x1] }
 0x1ed   : > { %v3019_v38 = vpop.f32.mrf.mxu1  ;;  %v7928_v43 = vunpack.c.l.b16 %v3867_v6  ;;  %v4757_v42 = vunpack.c.l.b16 %v4729_v49  ;;  %v3917_v9 = vunpack.c.l.b16 %v3877_v55  ;;  %v4449_v48 = vor.u32 %v4448_v1, %v4445_v3  ;;  %v5906_v6 = vld [vmem:[%s6218_s7 + $0x64] sm:$0xf]  ;;  %v5907_v33 = vld [vmem:[%s6218_s7 + $0x68] sm:$0x1] }
 0x1ee   : > { %v3062_v58 = vadd.f32 %v3046_v24, %v3019_v38  ;;  %v7918_v54 = vpop.f32.mrf.mxu3  ;;  %5769 = vst.msk [vmem:[%s6751_s30 + $0x128] sm:$0xff] %vm243_vm1, %v3658_v19  ;;  %v4112_v12 = vrot.slane %v5832_v15, 5  ;;  %v4459_v27 = vor.u32 %v4458_v29, %v4454_v14  ;;  %v5843_v28 = vrot.slane %v5831_v5, 9 }
 0x1ef   : > { %v3231_v56 = vld [vmem:[#allocation2 + $0x40] sm:$0xff]  ;;  %v7926_v63 = vpop.f32.mrf.mxu2  ;;  %v4767_v23 = vpack.c.b16 %v4757_v42, %v4756_v41  ;;  %v3926_v51 = vpack.c.b16 %v3917_v9, %v7928_v43  ;;  %v4450_v57 = vrot.slane %v4449_v48, 4  ;;  %v4115_v22 = vrot.slane %v5833_v59, 5  ;;  %v5876_v48 = vld [vmem:[%s6218_s7 + $0x70] sm:$0xf] }
 0x1f0   : > { %v3247_v2 = vadd.f32 %v3231_v56, %v7854_v7  ;;  %3078 = vst.msk [vmem:[#allocation2 + $0x48] sm:$0xff] %vm243_vm1, %v3062_v58  ;;  %v2690_v52 = vpop.f32.mrf.mxu0  ;;  %v4462_v7 = vshll.u32 %v5874_v62, 16  ;;  %v3047_v47 = vld [vmem:[#allocation2 + $0x50] sm:$0xff]  ;;  %v4460_v37 = vrot.slane %v4459_v27, 4  ;;  %v4114_v38 = vrot.slane %v4112_v12, 4 }
 0x1f1   : > { %v3596_v10 = vld [vmem:[#allocation2 + $0x38] sm:$0xff]  ;;  %2714 = vst.msk [vmem:[#allocation2 + $0x58] sm:$0xff] %vm243_vm1, %v2690_v52  ;;  %v4455_v53 = vsel %vm6233_vm4, %v4450_v57, %v4454_v14  ;;  %v3888_v19 = vshll.u32 %v5802_v17, 16  ;;  %v5905_v58 = vld [vmem:[%s6218_s7 + $0x60] sm:$0xe]  ;;  %v3898_v31 = vshll.u32 %v5803_v4, 16 }
 0x1f2   : > { %3263 = vst.msk [vmem:[#allocation2 + $0x40] sm:$0xff] %vm243_vm1, %v3247_v2  ;;  %v3612_v46 = vadd.f32 %v3596_v10, %v7881_v36  ;;  %v4464_v13 = vrot.slane %v4462_v7, 5  ;;  %v5801_v36 = vld [vmem:[%s6218_s7 + $0x60] sm:$0xf]  ;;  %v4504_v62 = vunpack.c.l.b16 %v4455_v53  ;;  %v3892_v2 = vshrl.u32 %v5802_v17, 16 }
 0x1f3   : > { %v3643_v44 = vld [vmem:[#allocation2 + $0x30] sm:$0xff]  ;;  %v3879_v30 = vshrl.u32 %v5801_v36, 16  ;;  %v3882_v45 = vshll.u32 %v5801_v36, 16  ;;  %v3890_v3 = vrot.slane %v3888_v19, 5  ;;  %v4116_v52 = vsel %vm6446_vm7, %v4114_v38, %v4115_v22  ;;  %v5875_v7 = vld [vmem:[%s6218_s7 + $0x6c] sm:$0xf] }
 0x1f4   : > { %3628 = vst.msk [vmem:[#allocation2 + $0x38] sm:$0xff] %vm243_vm1, %v3612_v46  ;;  %v3659_v61 = vadd.f32 %v7878_v20, %v3643_v44  ;;  %v4465_v11 = vsel %vm6233_vm4, %v4460_v37, %v4464_v13  ;;  %v5917_v40 = vrot.slane %v5905_v58, 9  ;;  %v3894_v55 = vrot.slane %v3892_v2, 4 }
 0x1f5   : > { %v3022_v26 = vpop.f32.mrf.mxu1  ;;  %v3881_v24 = vrot.slane %v3879_v30, 4  ;;  %v3884_v56 = vrot.slane %v3882_v45, 5  ;;  %v4505_v41 = vunpack.c.l.b16 %v4465_v11  ;;  %v4732_v42 = vrot.slane %v5906_v6, 5  ;;  %v5835_v6 = vld [vmem:[%s6218_s7 + $0x64] sm:$0xf] }
 0x1f6   : > { %v3063_v16 = vadd.f32 %v3047_v47, %v3022_v26  ;;  %v7950_v8 = vpop.f32.mrf.mxu3  ;;  %5770 = vst.msk [vmem:[%s6751_s30 + $0x130] sm:$0xff] %vm243_vm1, %v3659_v61  ;;  %v4735_v0 = vrot.slane %v5907_v33, 5  ;;  %v3900_v5 = vrot.slane %v3898_v31, 5  ;;  %v3895_v15 = vor.u32 %v3894_v55, %v3890_v3  ;;  %v5877_v26 = vld [vmem:[%s6218_s7 + $0x74] sm:$0x1] }
 0x1f7   : > { %v3232_v21 = vld [vmem:[#allocation2 + $0x48] sm:$0xff]  ;;  %v7954_v60 = vpop.f32.mrf.mxu2  ;;  %v3885_v49 = vor.u32 %v3884_v56, %v3881_v24  ;;  %v4733_v59 = vsel %vm6446_vm7, %v5917_v40, %v4732_v42  ;;  %v4139_v36 = vunpack.c.l.b16 %v4116_v52  ;;  %v4470_v27 = vshll.u32 %v5875_v7, 16 }
 0x1f8   : > { %v3248_v25 = vadd.f32 %v3232_v21, %v7888_v50  ;;  %3079 = vst.msk [vmem:[#allocation2 + $0x50] sm:$0xff] %vm243_vm1, %v3063_v16  ;;  %5851 = vmatmul.msk.bf16.gmra.mxu1 %vm243_vm1, %v4147_v35  ;;  %v2693_v32 = vpop.f32.mrf.mxu0  ;;  %v7968_v50 = vsel %vm6446_vm7, %v5843_v28, %v4112_v12  ;;  %v3048_v9 = vld [vmem:[#allocation2 + $0x58] sm:$0xff]  ;;  %v3896_v30 = vrot.slane %v3895_v15, 4  ;;  %v4758_v57 = vunpack.c.l.b16 %v4733_v59  ;;  %v5836_v31 = vld [vmem:[%s6218_s7 + $0x68] sm:$0x1] }
 0x1f9   : > { %v3597_v34 = vld [vmem:[#allocation2 + $0x40] sm:$0xff]  ;;  %2715 = vst.msk [vmem:[#allocation2 + $0x60] sm:$0xff] %vm243_vm1, %v2693_v32  ;;  %v4138_v1 = vunpack.c.l.b16 %v7968_v50  ;;  %v3886_v14 = vrot.slane %v3885_v49, 4  ;;  %v4472_v21 = vrot.slane %v4470_v27, 5  ;;  %v4476_v37 = vshll.u32 %v5876_v48, 16 }
 0x1fa   : > { %3264 = vst.msk [vmem:[#allocation2 + $0x48] sm:$0xff] %vm243_vm1, %v3248_v25  ;;  %v3613_v43 = vadd.f32 %v3597_v34, %v7918_v54  ;;  %v4514_v54 = vpack.c.b16 %v4505_v41, %v4504_v62  ;;  %v3901_v38 = vsel %vm6233_vm4, %v3896_v30, %v3900_v5  ;;  %v4480_v24 = vshrl.u32 %v5876_v48, 16  ;;  %v5834_v50 = vld [vmem:[%s6218_s7 + $0x60] sm:$0xe]  ;;  %v5910_v59 = vld [vmem:[%s6218_s7 + $0x74] sm:$0x1] }
 0x1fb   : > { %5811 = vmatmul.msk.bf16.gmra.mxu0 %vm243_vm1, %v3926_v51  ;;  %5925 = vmatmul.msk.bf16.gmra.mxu3 %vm243_vm1, %v4767_v23  ;;  %v3644_v10 = vld [vmem:[#allocation2 + $0x38] sm:$0xff]  ;;  %v4734_v23 = vrot.slane %v4732_v42, 4  ;;  %v3891_v44 = vsel %vm6233_vm4, %v3886_v14, %v3890_v3  ;;  %v4467_v51 = vshrl.u32 %v5875_v7, 16  ;;  %v4486_v45 = vshll.u32 %v5877_v26, 16 }
 0x1fc   : > { %3629 = vst.msk [vmem:[#allocation2 + $0x40] sm:$0xff] %vm243_vm1, %v3613_v43  ;;  %v3660_v47 = vadd.f32 %v7878_v20, %v3644_v10  ;;  %5885 = vmatmul.msk.bf16.gmra.mxu2 %vm243_vm1, %v4514_v54  ;;  %v3918_v4 = vunpack.c.l.b16 %v3891_v44  ;;  %v3919_v32 = vunpack.c.l.b16 %v3901_v38  ;;  %v4478_v58 = vrot.slane %v4476_v37, 5  ;;  %v5909_v43 = vld [vmem:[%s6218_s7 + $0x70] sm:$0xf] }
 0x1fd   : > { %v3024_v46 = vpop.f32.mrf.mxu1  ;;  %v4736_v16 = vsel %vm6446_vm7, %v4734_v23, %v4735_v0  ;;  %v4469_v61 = vrot.slane %v4467_v51, 4  ;;  %v4148_v11 = vpack.c.b16 %v4139_v36, %v4138_v1  ;;  %v4482_v62 = vrot.slane %v4480_v24, 4  ;;  %v5908_v1 = vld [vmem:[%s6218_s7 + $0x6c] sm:$0xe] }
 0x1fe   : > { %v3064_v35 = vadd.f32 %v3048_v9, %v3024_v46  ;;  %v7983_v29 = vpop.f32.mrf.mxu3  ;;  %5771 = vst.msk [vmem:[%s6751_s30 + $0x138] sm:$0xff] %vm243_vm1, %v3660_v47  ;;  %v4759_v53 = vunpack.c.l.b16 %v4736_v16  ;;  %v4119_v33 = vrot.slane %v5835_v6, 5  ;;  %v4488_v49 = vrot.slane %v4486_v45, 5 }
 0x1ff   : > { %v3233_v13 = vld [vmem:[#allocation2 + $0x50] sm:$0xff]  ;;  %v7989_v12 = vpop.f32.mrf.mxu2  ;;  %v4473_v19 = vor.u32 %v4472_v21, %v4469_v61  ;;  %v4483_v52 = vor.u32 %v4482_v62, %v4478_v58  ;;  %v3927_v10 = vpack.c.b16 %v3919_v32, %v3918_v4  ;;  %v5844_v0 = vrot.slane %v5834_v50, 9 }
 0x200   : > { %v3249_v28 = vadd.f32 %v3233_v13, %v7926_v63  ;;  %3080 = vst.msk [vmem:[#allocation2 + $0x58] sm:$0xff] %vm243_vm1, %v3064_v35  ;;  %v2695_v17 = vpop.f32.mrf.mxu0  ;;  %v3049_v25 = vld [vmem:[#allocation2 + $0x60] sm:$0xff]  ;;  %v4768_v54 = vpack.c.b16 %v4759_v53, %v4758_v57  ;;  %v4739_v14 = vrot.slane %v5909_v43, 5  ;;  %v4121_v35 = vrot.slane %v4119_v33, 4 }
 0x201   : > { %v3598_v22 = vld [vmem:[#allocation2 + $0x48] sm:$0xff]  ;;  %2716 = vst.msk [vmem:[#allocation2 + $0x68] sm:$0xff] %vm243_vm1, %v2695_v17  ;;  %v4474_v56 = vrot.slane %v4473_v19, 4  ;;  %v4484_v9 = vrot.slane %v4483_v52, 4  ;;  %v4122_v15 = vrot.slane %v5836_v31, 5  ;;  %v4120_v13 = vsel %vm6446_vm7, %v5844_v0, %v4119_v33 }
 0x202   : > { %3265 = vst.msk [vmem:[#allocation2 + $0x50] sm:$0xff] %vm243_vm1, %v3249_v28  ;;  %v3614_v63 = vadd.f32 %v3598_v22, %v7950_v8  ;;  %v5918_v44 = vrot.slane %v5908_v1, 9  ;;  %v4741_v26 = vrot.slane %v4739_v14, 4  ;;  %v4742_v51 = vrot.slane %v5910_v59, 5 }
 0x203   : > { %v3645_v34 = vld [vmem:[#allocation2 + $0x40] sm:$0xff]  ;;  %v4479_v42 = vsel %vm6233_vm4, %v4474_v56, %v4478_v58  ;;  %v4123_v17 = vsel %vm6446_vm7, %v4121_v35, %v4122_v15  ;;  %v4140_v4 = vunpack.c.l.b16 %v4120_v13 }
 0x204   : > { %3630 = vst.msk [vmem:[#allocation2 + $0x48] sm:$0xff] %vm243_vm1, %v3614_v63  ;;  %v3661_v41 = vadd.f32 %v7878_v20, %v3645_v34  ;;  %v4506_v47 = vunpack.c.l.b16 %v4479_v42  ;;  %v4141_v37 = vunpack.c.l.b16 %v4123_v17  ;;  %v4740_v63 = vsel %vm6446_vm7, %v5918_v44, %v4739_v14 }
 0x205   : > { %v3027_v8 = vpop.f32.mrf.mxu1  ;;  %v4743_v38 = vsel %vm6446_vm7, %v4741_v26, %v4742_v51  ;;  %v4760_v32 = vunpack.c.l.b16 %v4740_v63 }
 0x206   : > { %v3065_v3 = vadd.f32 %v3049_v25, %v3027_v8  ;;  %v3576_v2 = vpop.f32.mrf.mxu3  ;;  %5772 = vst.msk [vmem:[%s6751_s30 + $0x140] sm:$0xff] %vm243_vm1, %v3661_v41  ;;  %v4149_v19 = vpack.c.b16 %v4141_v37, %v4140_v4 }
 0x207   : > { %v3234_v40 = vld [vmem:[#allocation2 + $0x58] sm:$0xff]  ;;  %v8011_v55 = vpop.f32.mrf.mxu2 }
 0x208   : > { %v3250_v7 = vadd.f32 %v3234_v40, %v7954_v60  ;;  %3081 = vst.msk [vmem:[#allocation2 + $0x60] sm:$0xff] %vm243_vm1, %v3065_v3  ;;  %5852 = vmatmul.msk.bf16.gmra.mxu1 %vm243_vm1, %v4148_v11  ;;  %v2698_v46 = vpop.f32.mrf.mxu0  ;;  %v4489_v60 = vsel %vm6233_vm4, %v4484_v9, %v4488_v49  ;;  %v3050_v39 = vld [vmem:[#allocation2 + $0x68] sm:$0xff] }
 0x209   : > { %v3599_v5 = vld [vmem:[#allocation2 + $0x50] sm:$0xff]  ;;  %2717 = vst.msk [vmem:[#allocation2 + $0x70] sm:$0xff] %vm243_vm1, %v2698_v46  ;;  %v4507_v48 = vunpack.c.l.b16 %v4489_v60 }
 0x20a   : > { %3266 = vst.msk [vmem:[#allocation2 + $0x58] sm:$0xff] %vm243_vm1, %v3250_v7  ;;  %v3615_v23 = vadd.f32 %v3599_v5, %v7983_v29 }
 0x20b   : > { %5812 = vmatmul.msk.bf16.gmra.mxu0 %vm243_vm1, %v3927_v10  ;;  %5926 = vmatmul.msk.bf16.gmra.mxu3 %vm243_vm1, %v4768_v54  ;;  %v3646_v36 = vld [vmem:[#allocation2 + $0x48] sm:$0xff]  ;;  %v4515_v28 = vpack.c.b16 %v4507_v48, %v4506_v47 }
 0x20c   : > { %3631 = vst.msk [vmem:[#allocation2 + $0x50] sm:$0xff] %vm243_vm1, %v3615_v23  ;;  %v3662_v29 = vadd.f32 %v7878_v20, %v3646_v36 }
 0x20d   : > { %v3029_v27 = vpop.f32.mrf.mxu1  ;;  %5886 = vmatmul.msk.bf16.gmra.mxu2 %vm243_vm1, %v4515_v28 }
 0x20e   : > { %v3066_v30 = vadd.f32 %v3050_v39, %v3029_v27  ;;  %v3579_v16 = vpop.f32.mrf.mxu3  ;;  %5773 = vst.msk [vmem:[%s6751_s30 + $0x148] sm:$0xff] %vm243_vm1, %v3662_v29 }
 0x20f   : > { %v3235_v57 = vld [vmem:[#allocation2 + $0x60] sm:$0xff]  ;;  %v3218_v22 = vpop.f32.mrf.mxu2 }
 0x210   : > { %v3251_v61 = vadd.f32 %v3235_v57, %v7989_v12  ;;  %3082 = vst.msk [vmem:[#allocation2 + $0x68] sm:$0xff] %vm243_vm1, %v3066_v30  ;;  %v2700_v21 = vpop.f32.mrf.mxu0  ;;  %v3051_v25 = vld [vmem:[#allocation2 + $0x70] sm:$0xff]  ;;  %v4761_v12 = vunpack.c.l.b16 %v4743_v38 }
 0x211   : > { %v3600_v24 = vld [vmem:[#allocation2 + $0x58] sm:$0xff]  ;;  %2718 = vst.msk [vmem:[#allocation2 + $0x78] sm:$0xff] %vm243_vm1, %v2700_v21 }
 0x212   : > { %3267 = vst.msk [vmem:[#allocation2 + $0x60] sm:$0xff] %vm243_vm1, %v3251_v61  ;;  %v3616_v45 = vadd.f32 %v3600_v24, %v3576_v2  ;;  %v4769_v62 = vpack.c.b16 %v4761_v12, %v4760_v32 }
 0x213   : > { %v3647_v53 = vld [vmem:[#allocation2 + $0x50] sm:$0xff] }
 0x214   : > { %3632 = vst.msk [vmem:[#allocation2 + $0x58] sm:$0xff] %vm243_vm1, %v3616_v45  ;;  %v3663_v58 = vadd.f32 %v7878_v20, %v3647_v53 }
 0x215   : > { %v3032_v6 = vpop.f32.mrf.mxu1 }
 0x216   : > { %v3067_v34 = vadd.f32 %v3051_v25, %v3032_v6  ;;  %v3581_v18 = vpop.f32.mrf.mxu3  ;;  %5774 = vst.msk [vmem:[%s6751_s30 + $0x150] sm:$0xff] %vm243_vm1, %v3663_v58 }
 0x217   : > { %v3236_v11 = vld [vmem:[#allocation2 + $0x68] sm:$0xff]  ;;  %v3220_v50 = vpop.f32.mrf.mxu2 }
 0x218   : > { %v3252_v8 = vadd.f32 %v3236_v11, %v8011_v55  ;;  %3083 = vst.msk [vmem:[#allocation2 + $0x70] sm:$0xff] %vm243_vm1, %v3067_v34  ;;  %5853 = vmatmul.msk.bf16.gmra.mxu1 %vm243_vm1, %v4149_v19  ;;  %v3964_v56 = vpop.f32.mrf.mxu0  ;;  %v3052_v52 = vld [vmem:[#allocation2 + $0x78] sm:$0xff] }
 0x219   : > { %v3601_v33 = vld [vmem:[#allocation2 + $0x60] sm:$0xff]  ;;  %4004 = vst.msk [vmem:[#allocation2] sm:$0xff] %vm243_vm1, %v3964_v56 }
 0x21a   : > { %3268 = vst.msk [vmem:[#allocation2 + $0x68] sm:$0xff] %vm243_vm1, %v3252_v8  ;;  %v3617_v43 = vadd.f32 %v3601_v33, %v3579_v16 }
 0x21b   : > { %5927 = vmatmul.msk.bf16.gmra.mxu3 %vm243_vm1, %v4769_v62  ;;  %v3648_v41 = vld [vmem:[#allocation2 + $0x58] sm:$0xff] }
 0x21c   : > { %3633 = vst.msk [vmem:[#allocation2 + $0x60] sm:$0xff] %vm243_vm1, %v3617_v43  ;;  %v3664_v3 = vadd.f32 %v7878_v20, %v3648_v41 }
 0x21d   : > { %v3034_v2 = vpop.f32.mrf.mxu1 }
 0x21e   : > { %v3068_v49 = vadd.f32 %v3052_v52, %v3034_v2  ;;  %v3584_v31 = vpop.f32.mrf.mxu3  ;;  %5775 = vst.msk [vmem:[%s6751_s30 + $0x158] sm:$0xff] %vm243_vm1, %v3664_v3 }
 0x21f   : > { %v3237_v40 = vld [vmem:[#allocation2 + $0x70] sm:$0xff]  ;;  %v4552_v10 = vpop.f32.mrf.mxu2 }
 0x220   : > { %v3253_v54 = vadd.f32 %v3237_v40, %v3218_v22  ;;  %3084 = vst.msk [vmem:[#allocation2 + $0x78] sm:$0xff] %vm243_vm1, %v3068_v49  ;;  %v3966_v55 = vpop.f32.mrf.mxu0  ;;  %v4226_v7 = vld [vmem:[#allocation2] sm:$0xff] }
 0x221   : > { %v3602_v42 = vld [vmem:[#allocation2 + $0x68] sm:$0xff]  ;;  %4005 = vst.msk [vmem:[#allocation2 + $0x8] sm:$0xff] %vm243_vm1, %v3966_v55 }
 0x222   : > { %3269 = vst.msk [vmem:[#allocation2 + $0x70] sm:$0xff] %vm243_vm1, %v3253_v54  ;;  %v3618_v0 = vadd.f32 %v3602_v42, %v3581_v18 }
 0x223   : > { %v3649_v46 = vld [vmem:[#allocation2 + $0x60] sm:$0xff] }
 0x224   : > { %3634 = vst.msk [vmem:[#allocation2 + $0x68] sm:$0xff] %vm243_vm1, %v3618_v0  ;;  %v3665_v9 = vadd.f32 %v7878_v20, %v3649_v46 }
 0x225   : > { %v4186_v1 = vpop.f32.mrf.mxu1 }
 0x226   : > { %v4242_v14 = vadd.f32 %v4226_v7, %v4186_v1  ;;  %v3586_v5 = vpop.f32.mrf.mxu3  ;;  %5776 = vst.msk [vmem:[%s6751_s30 + $0x160] sm:$0xff] %vm243_vm1, %v3665_v9 }
 0x227   : > { %v3238_v47 = vld [vmem:[#allocation2 + $0x78] sm:$0xff]  ;;  %v4554_v35 = vpop.f32.mrf.mxu2 }
 0x228   : > { %v3254_v15 = vadd.f32 %v3238_v47, %v3220_v50  ;;  %4258 = vst.msk [vmem:[#allocation2] sm:$0xff] %vm243_vm1, %v4242_v14  ;;  %v3969_v59 = vpop.f32.mrf.mxu0  ;;  %v4227_v44 = vld [vmem:[#allocation2 + $0x8] sm:$0xff] }
 0x229   : > { %v3603_v23 = vld [vmem:[#allocation2 + $0x70] sm:$0xff]  ;;  %4006 = vst.msk [vmem:[#allocation2 + $0x10] sm:$0xff] %vm243_vm1, %v3969_v59 }
 0x22a   : > { %3270 = vst.msk [vmem:[#allocation2 + $0x78] sm:$0xff] %vm243_vm1, %v3254_v15  ;;  %v3619_v60 = vadd.f32 %v3603_v23, %v3584_v31 }
 0x22b   : > { %v3650_v48 = vld [vmem:[#allocation2 + $0x68] sm:$0xff] }
 0x22c   : > { %3635 = vst.msk [vmem:[#allocation2 + $0x70] sm:$0xff] %vm243_vm1, %v3619_v60  ;;  %v3666_v13 = vadd.f32 %v7878_v20, %v3650_v48 }
 0x22d   : > { %v4188_v36 = vpop.f32.mrf.mxu1 }
 0x22e   : > { %v4243_v26 = vadd.f32 %v4227_v44, %v4188_v36  ;;  %v4806_v51 = vpop.f32.mrf.mxu3  ;;  %5777 = vst.msk [vmem:[%s6751_s30 + $0x168] sm:$0xff] %vm243_vm1, %v3666_v13 }
 0x22f   : > { %v4592_v29 = vld [vmem:[#allocation2] sm:$0xff]  ;;  %v4557_v27 = vpop.f32.mrf.mxu2 }
 0x230   : > { %v4608_v39 = vadd.f32 %v4592_v29, %v4552_v10  ;;  %4259 = vst.msk [vmem:[#allocation2 + $0x8] sm:$0xff] %vm243_vm1, %v4243_v26  ;;  %v3971_v28 = vpop.f32.mrf.mxu0  ;;  %v4228_v16 = vld [vmem:[#allocation2 + $0x10] sm:$0xff] }
 0x231   : > { %v3604_v17 = vld [vmem:[#allocation2 + $0x78] sm:$0xff]  ;;  %4007 = vst.msk [vmem:[#allocation2 + $0x18] sm:$0xff] %vm243_vm1, %v3971_v28 }
 0x232   : > { %4624 = vst.msk [vmem:[#allocation2] sm:$0xff] %vm243_vm1, %v4608_v39  ;;  %v3620_v30 = vadd.f32 %v3604_v17, %v3586_v5 }
 0x233   : > { %v3651_v57 = vld [vmem:[#allocation2 + $0x70] sm:$0xff] }
 0x234   : > { %3636 = vst.msk [vmem:[#allocation2 + $0x78] sm:$0xff] %vm243_vm1, %v3620_v30  ;;  %v3667_v22 = vadd.f32 %v7878_v20, %v3651_v57 }
 0x235   : > { %v4191_v4 = vpop.f32.mrf.mxu1 }
 0x236   : > { %v4244_v61 = vadd.f32 %v4228_v16, %v4191_v4  ;;  %v4808_v21 = vpop.f32.mrf.mxu3  ;;  %5778 = vst.msk [vmem:[%s6751_s30 + $0x170] sm:$0xff] %vm243_vm1, %v3667_v22 }
 0x237   : > { %v4593_v37 = vld [vmem:[#allocation2 + $0x8] sm:$0xff]  ;;  %v4559_v63 = vpop.f32.mrf.mxu2 }
 0x238   : > { %v4609_v38 = vadd.f32 %v4593_v37, %v4554_v35  ;;  %4260 = vst.msk [vmem:[#allocation2 + $0x10] sm:$0xff] %vm243_vm1, %v4244_v61  ;;  %v3974_v24 = vpop.f32.mrf.mxu0  ;;  %v4229_v19 = vld [vmem:[#allocation2 + $0x18] sm:$0xff] }
 0x239   : > { %v4846_v45 = vld [vmem:[#allocation2] sm:$0xff]  ;;  %4008 = vst.msk [vmem:[#allocation2 + $0x20] sm:$0xff] %vm243_vm1, %v3974_v24 }
 0x23a   : > { %4625 = vst.msk [vmem:[#allocation2 + $0x8] sm:$0xff] %vm243_vm1, %v4609_v38  ;;  %v4862_v25 = vadd.f32 %v4846_v45, %v4806_v51 }
 0x23b   : > { %v3652_v32 = vld [vmem:[#allocation2 + $0x78] sm:$0xff] }
 0x23c   : > { %4878 = vst.msk [vmem:[#allocation2] sm:$0xff] %vm243_vm1, %v4862_v25  ;;  %v3668_v12 = vadd.f32 %v7878_v20, %v3652_v32 }
 0x23d   : > { %v4193_v53 = vpop.f32.mrf.mxu1 }
 0x23e   : > { %v4245_v58 = vadd.f32 %v4229_v19, %v4193_v53  ;;  %v4811_v6 = vpop.f32.mrf.mxu3  ;;  %5779 = vst.msk [vmem:[%s6751_s30 + $0x178] sm:$0xff] %vm243_vm1, %v3668_v12 }
 0x23f   : > { %v4594_v34 = vld [vmem:[#allocation2 + $0x10] sm:$0xff]  ;;  %v4562_v18 = vpop.f32.mrf.mxu2 }
 0x240   : > { %v4610_v11 = vadd.f32 %v4594_v34, %v4557_v27  ;;  %4261 = vst.msk [vmem:[#allocation2 + $0x18] sm:$0xff] %vm243_vm1, %v4245_v58  ;;  %v3976_v62 = vpop.f32.mrf.mxu0  ;;  %v4230_v33 = vld [vmem:[#allocation2 + $0x20] sm:$0xff] }
 0x241   : > { %v4847_v50 = vld [vmem:[#allocation2 + $0x8] sm:$0xff]  ;;  %4009 = vst.msk [vmem:[#allocation2 + $0x28] sm:$0xff] %vm243_vm1, %v3976_v62 }
 0x242   : > { %4626 = vst.msk [vmem:[#allocation2 + $0x10] sm:$0xff] %vm243_vm1, %v4610_v11  ;;  %v4863_v8 = vadd.f32 %v4847_v50, %v4808_v21 }
 0x243   : > { %v4894_v56 = vld [vmem:[#allocation2] sm:$0xff] }
 0x244   : > { %v4910_v43 = vadd.f32 %v7878_v20, %v4894_v56  ;;  %4879 = vst.msk [vmem:[#allocation2 + $0x8] sm:$0xff] %vm243_vm1, %v4863_v8 }
 0x245   : > { %v4196_v41 = vpop.f32.mrf.mxu1 }
 0x246   : > { %5928 = vst.msk [vmem:[%s6751_s30 + $0x180] sm:$0xff] %vm243_vm1, %v4910_v43  ;;  %v4246_v3 = vadd.f32 %v4230_v33, %v4196_v41  ;;  %v4813_v2 = vpop.f32.mrf.mxu3 }
 0x247   : > { %v4595_v52 = vld [vmem:[#allocation2 + $0x18] sm:$0xff]  ;;  %v4564_v49 = vpop.f32.mrf.mxu2 }
 0x248   : > { %v4611_v31 = vadd.f32 %v4595_v52, %v4559_v63  ;;  %4262 = vst.msk [vmem:[#allocation2 + $0x20] sm:$0xff] %vm243_vm1, %v4246_v3  ;;  %v3979_v40 = vpop.f32.mrf.mxu0  ;;  %v4231_v7 = vld [vmem:[#allocation2 + $0x28] sm:$0xff] }
 0x249   : > { %v4848_v10 = vld [vmem:[#allocation2 + $0x10] sm:$0xff]  ;;  %4010 = vst.msk [vmem:[#allocation2 + $0x30] sm:$0xff] %vm243_vm1, %v3979_v40 }
 0x24a   : > { %4627 = vst.msk [vmem:[#allocation2 + $0x18] sm:$0xff] %vm243_vm1, %v4611_v31  ;;  %v4864_v54 = vadd.f32 %v4848_v10, %v4811_v6 }
 0x24b   : > { %v4895_v55 = vld [vmem:[#allocation2 + $0x8] sm:$0xff] }
 0x24c   : > { %v4911_v42 = vadd.f32 %v7878_v20, %v4895_v55  ;;  %4880 = vst.msk [vmem:[#allocation2 + $0x10] sm:$0xff] %vm243_vm1, %v4864_v54 }
 0x24d   : > { %v4198_v0 = vpop.f32.mrf.mxu1 }
 0x24e   : > { %5929 = vst.msk [vmem:[%s6751_s30 + $0x188] sm:$0xff] %vm243_vm1, %v4911_v42  ;;  %v4247_v46 = vadd.f32 %v4231_v7, %v4198_v0  ;;  %v4816_v9 = vpop.f32.mrf.mxu3 }
 0x24f   : > { %v4596_v1 = vld [vmem:[#allocation2 + $0x20] sm:$0xff]  ;;  %v4567_v14 = vpop.f32.mrf.mxu2 }
 0x250   : > { %v4612_v5 = vadd.f32 %v4596_v1, %v4562_v18  ;;  %4263 = vst.msk [vmem:[#allocation2 + $0x28] sm:$0xff] %vm243_vm1, %v4247_v46  ;;  %v3981_v47 = vpop.f32.mrf.mxu0  ;;  %v4232_v23 = vld [vmem:[#allocation2 + $0x30] sm:$0xff] }
 0x251   : > { %v4849_v35 = vld [vmem:[#allocation2 + $0x18] sm:$0xff]  ;;  %4011 = vst.msk [vmem:[#allocation2 + $0x38] sm:$0xff] %vm243_vm1, %v3981_v47 }
 0x252   : > { %4628 = vst.msk [vmem:[#allocation2 + $0x20] sm:$0xff] %vm243_vm1, %v4612_v5  ;;  %v4865_v15 = vadd.f32 %v4849_v35, %v4813_v2 }
 0x253   : > { %v4896_v59 = vld [vmem:[#allocation2 + $0x10] sm:$0xff] }
 0x254   : > { %v4912_v60 = vadd.f32 %v7878_v20, %v4896_v59  ;;  %4881 = vst.msk [vmem:[#allocation2 + $0x18] sm:$0xff] %vm243_vm1, %v4865_v15 }
 0x255   : > { %v4201_v48 = vpop.f32.mrf.mxu1 }
 0x256   : > { %5930 = vst.msk [vmem:[%s6751_s30 + $0x190] sm:$0xff] %vm243_vm1, %v4912_v60  ;;  %v4248_v13 = vadd.f32 %v4232_v23, %v4201_v48  ;;  %v4818_v36 = vpop.f32.mrf.mxu3 }
 0x257   : > { %v4597_v44 = vld [vmem:[#allocation2 + $0x28] sm:$0xff]  ;;  %v4569_v26 = vpop.f32.mrf.mxu2 }
 0x258   : > { %v4613_v51 = vadd.f32 %v4597_v44, %v4564_v49  ;;  %4264 = vst.msk [vmem:[#allocation2 + $0x30] sm:$0xff] %vm243_vm1, %v4248_v13  ;;  %v3984_v29 = vpop.f32.mrf.mxu0  ;;  %v4233_v16 = vld [vmem:[#allocation2 + $0x38] sm:$0xff] }
 0x259   : > { %v4850_v27 = vld [vmem:[#allocation2 + $0x20] sm:$0xff]  ;;  %4012 = vst.msk [vmem:[#allocation2 + $0x40] sm:$0xff] %vm243_vm1, %v3984_v29 }
 0x25a   : > { %4629 = vst.msk [vmem:[#allocation2 + $0x28] sm:$0xff] %vm243_vm1, %v4613_v51  ;;  %v4866_v39 = vadd.f32 %v4850_v27, %v4816_v9  ;;  %v8150_v29 = vld [vmem:[%s8354_s2] ss:$0 sm:$0xff] }
 0x25b   : > { %v4897_v28 = vld [vmem:[#allocation2 + $0x18] sm:$0xff] }
 0x25c   : > { %v4913_v17 = vadd.f32 %v7878_v20, %v4897_v28  ;;  %4882 = vst.msk [vmem:[#allocation2 + $0x20] sm:$0xff] %vm243_vm1, %v4866_v39 }
 0x25d   : > { %v4203_v30 = vpop.f32.mrf.mxu1 }
 0x25e   : > { %5931 = vst.msk [vmem:[%s6751_s30 + $0x198] sm:$0xff] %vm243_vm1, %v4913_v17  ;;  %v4249_v57 = vadd.f32 %v4233_v16, %v4203_v30  ;;  %v4821_v22 = vpop.f32.mrf.mxu3 }
 0x25f   : > { %v4598_v4 = vld [vmem:[#allocation2 + $0x30] sm:$0xff]  ;;  %v4572_v37 = vpop.f32.mrf.mxu2 }
 0x260   : > { %v4614_v61 = vadd.f32 %v4598_v4, %v4567_v14  ;;  %4265 = vst.msk [vmem:[#allocation2 + $0x38] sm:$0xff] %vm243_vm1, %v4249_v57  ;;  %v3986_v21 = vpop.f32.mrf.mxu0  ;;  %v4234_v45 = vld [vmem:[#allocation2 + $0x40] sm:$0xff] }
 0x261   : > { %v4851_v63 = vld [vmem:[#allocation2 + $0x28] sm:$0xff]  ;;  %4013 = vst.msk [vmem:[#allocation2 + $0x48] sm:$0xff] %vm243_vm1, %v3986_v21 }
 0x262   : > { %4630 = vst.msk [vmem:[#allocation2 + $0x30] sm:$0xff] %vm243_vm1, %v4614_v61  ;;  %v4867_v38 = vadd.f32 %v4851_v63, %v4818_v36 }
 0x263   : > { %v4898_v24 = vld [vmem:[#allocation2 + $0x20] sm:$0xff] }
 0x264   : > { %v4914_v25 = vadd.f32 %v7878_v20, %v4898_v24  ;;  %4883 = vst.msk [vmem:[#allocation2 + $0x28] sm:$0xff] %vm243_vm1, %v4867_v38 }
 0x265   : > { %v4206_v32 = vpop.f32.mrf.mxu1 }
 0x266   : > { %5932 = vst.msk [vmem:[%s6751_s30 + $0x1a0] sm:$0xff] %vm243_vm1, %v4914_v25  ;;  %v4250_v12 = vadd.f32 %v4234_v45, %v4206_v32  ;;  %v4823_v53 = vpop.f32.mrf.mxu3 }
 0x267   : > { %v4599_v19 = vld [vmem:[#allocation2 + $0x38] sm:$0xff]  ;;  %v4574_v11 = vpop.f32.mrf.mxu2 }
 0x268   : > { %v4615_v58 = vadd.f32 %v4599_v19, %v4569_v26  ;;  %4266 = vst.msk [vmem:[#allocation2 + $0x40] sm:$0xff] %vm243_vm1, %v4250_v12  ;;  %v3989_v6 = vpop.f32.mrf.mxu0  ;;  %v4235_v56 = vld [vmem:[#allocation2 + $0x48] sm:$0xff] }
 0x269   : > { %v4852_v34 = vld [vmem:[#allocation2 + $0x30] sm:$0xff]  ;;  %4014 = vst.msk [vmem:[#allocation2 + $0x50] sm:$0xff] %vm243_vm1, %v3989_v6 }
 0x26a   : > { %4631 = vst.msk [vmem:[#allocation2 + $0x38] sm:$0xff] %vm243_vm1, %v4615_v58  ;;  %v4868_v18 = vadd.f32 %v4852_v34, %v4821_v22 }
 0x26b   : > { %v4899_v62 = vld [vmem:[#allocation2 + $0x28] sm:$0xff] }
 0x26c   : > { %v4915_v50 = vadd.f32 %v7878_v20, %v4899_v62  ;;  %4884 = vst.msk [vmem:[#allocation2 + $0x30] sm:$0xff] %vm243_vm1, %v4868_v18 }
 0x26d   : > { %v4208_v8 = vpop.f32.mrf.mxu1 }
 0x26e   : > { %5933 = vst.msk [vmem:[%s6751_s30 + $0x1a8] sm:$0xff] %vm243_vm1, %v4915_v50  ;;  %v4251_v33 = vadd.f32 %v4235_v56, %v4208_v8  ;;  %v4826_v43 = vpop.f32.mrf.mxu3 }
 0x26f   : > { %v4600_v41 = vld [vmem:[#allocation2 + $0x40] sm:$0xff]  ;;  %v4577_v54 = vpop.f32.mrf.mxu2 }
 0x270   : > { %v4616_v3 = vadd.f32 %v4600_v41, %v4572_v37  ;;  %4267 = vst.msk [vmem:[#allocation2 + $0x48] sm:$0xff] %vm243_vm1, %v4251_v33  ;;  %v3991_v2 = vpop.f32.mrf.mxu0  ;;  %v4236_v40 = vld [vmem:[#allocation2 + $0x50] sm:$0xff] }
 0x271   : > { %v4853_v52 = vld [vmem:[#allocation2 + $0x38] sm:$0xff]  ;;  %4015 = vst.msk [vmem:[#allocation2 + $0x58] sm:$0xff] %vm243_vm1, %v3991_v2 }
 0x272   : > { %4632 = vst.msk [vmem:[#allocation2 + $0x40] sm:$0xff] %vm243_vm1, %v4616_v3  ;;  %v4869_v49 = vadd.f32 %v4853_v52, %v4823_v53 }
 0x273   : > { %v4900_v31 = vld [vmem:[#allocation2 + $0x30] sm:$0xff] }
 0x274   : > { %v4916_v10 = vadd.f32 %v7878_v20, %v4900_v31  ;;  %4885 = vst.msk [vmem:[#allocation2 + $0x38] sm:$0xff] %vm243_vm1, %v4869_v49 }
 0x275   : > { %v4211_v55 = vpop.f32.mrf.mxu1 }
 0x276   : > { %5934 = vst.msk [vmem:[%s6751_s30 + $0x1b0] sm:$0xff] %vm243_vm1, %v4916_v10  ;;  %v4252_v42 = vadd.f32 %v4236_v40, %v4211_v55  ;;  %v4828_v0 = vpop.f32.mrf.mxu3 }
 0x277   : > { %v4601_v7 = vld [vmem:[#allocation2 + $0x48] sm:$0xff]  ;;  %v4579_v23 = vpop.f32.mrf.mxu2 }
 0x278   : > { %v4617_v46 = vadd.f32 %v4601_v7, %v4574_v11  ;;  %4268 = vst.msk [vmem:[#allocation2 + $0x50] sm:$0xff] %vm243_vm1, %v4252_v42  ;;  %v3994_v9 = vpop.f32.mrf.mxu0  ;;  %v4237_v15 = vld [vmem:[#allocation2 + $0x58] sm:$0xff] }
 0x279   : > { %v4854_v1 = vld [vmem:[#allocation2 + $0x40] sm:$0xff]  ;;  %4016 = vst.msk [vmem:[#allocation2 + $0x60] sm:$0xff] %vm243_vm1, %v3994_v9 }
 0x27a   : > { %4633 = vst.msk [vmem:[#allocation2 + $0x48] sm:$0xff] %vm243_vm1, %v4617_v46  ;;  %v4870_v14 = vadd.f32 %v4854_v1, %v4826_v43 }
 0x27b   : > { %v4901_v5 = vld [vmem:[#allocation2 + $0x38] sm:$0xff] }
 0x27c   : > { %v4917_v47 = vadd.f32 %v7878_v20, %v4901_v5  ;;  %4886 = vst.msk [vmem:[#allocation2 + $0x40] sm:$0xff] %vm243_vm1, %v4870_v14 }
 0x27d   : > { %v4213_v35 = vpop.f32.mrf.mxu1 }
 0x27e   : > { %5935 = vst.msk [vmem:[%s6751_s30 + $0x1b8] sm:$0xff] %vm243_vm1, %v4917_v47  ;;  %v4253_v59 = vadd.f32 %v4237_v15, %v4213_v35  ;;  %v4831_v48 = vpop.f32.mrf.mxu3 }
 0x27f   : > { %v4602_v60 = vld [vmem:[#allocation2 + $0x50] sm:$0xff]  ;;  %v4582_v16 = vpop.f32.mrf.mxu2 }
 0x280   : > { %v4618_v13 = vadd.f32 %v4602_v60, %v4577_v54  ;;  %4269 = vst.msk [vmem:[#allocation2 + $0x58] sm:$0xff] %vm243_vm1, %v4253_v59  ;;  %v3996_v36 = vpop.f32.mrf.mxu0  ;;  %v4238_v51 = vld [vmem:[#allocation2 + $0x60] sm:$0xff] }
 0x281   : > { %v4855_v44 = vld [vmem:[#allocation2 + $0x48] sm:$0xff]  ;;  %4017 = vst.msk [vmem:[#allocation2 + $0x68] sm:$0xff] %vm243_vm1, %v3996_v36 }
 0x282   : > { %4634 = vst.msk [vmem:[#allocation2 + $0x50] sm:$0xff] %vm243_vm1, %v4618_v13  ;;  %v4871_v20 = vadd.f32 %v4855_v44, %v4828_v0  ;;  %v5109_v44 = vld [vmem:[%s6751_s30] sm:$0xff] (%p6167_p5) }
 0x283   : > { %v4902_v26 = vld [vmem:[#allocation2 + $0x40] sm:$0xff]  ;;  %5110 = vst [vmem:[%s8203_s10] sm:$0xff] (%p6167_p5), %v5109_v44 }
 0x284   : > { %v4918_v27 = vadd.f32 %v8150_v29, %v4902_v26  ;;  %4887 = vst.msk [vmem:[#allocation2 + $0x48] sm:$0xff] %vm243_vm1, %v4871_v20  ;;  %v5111_v20 = vld [vmem:[%s6751_s30 + $0x8] sm:$0xff] (%p6167_p5)  ;;  %v5113_v26 = vld [vmem:[%s6751_s30 + $0x10] sm:$0xff] (%p6167_p5) }
 0x285   : > { %v4216_v39 = vpop.f32.mrf.mxu1  ;;  %5112 = vst [vmem:[%s8203_s10 + $0x8] sm:$0xff] (%p6167_p5), %v5111_v20 }
 0x286   : > { %5936 = vst.msk [vmem:[%s6751_s30 + $0x1c0] sm:$0xff] %vm243_vm1, %v4918_v27  ;;  %v4254_v28 = vadd.f32 %v4238_v51, %v4216_v39  ;;  %v4833_v4 = vpop.f32.mrf.mxu3  ;;  %v5115_v51 = vld [vmem:[%s6751_s30 + $0x18] sm:$0xff] (%p6167_p5)  ;;  %v5119_v27 = vld [vmem:[%s6751_s30 + $0x28] sm:$0xff] (%p6167_p5)  ;;  %v5121_v39 = vld [vmem:[%s6751_s30 + $0x30] sm:$0xff] (%p6167_p5) }
 0x287   : > { %v4603_v17 = vld [vmem:[#allocation2 + $0x58] sm:$0xff]  ;;  %v4584_v19 = vpop.f32.mrf.mxu2  ;;  %5114 = vst [vmem:[%s8203_s10 + $0x10] sm:$0xff] (%p6167_p5), %v5113_v26 }
 0x288   : > { %v4619_v30 = vadd.f32 %v4603_v17, %v4579_v23  ;;  %4270 = vst.msk [vmem:[#allocation2 + $0x60] sm:$0xff] %vm243_vm1, %v4254_v28  ;;  %v3999_v57 = vpop.f32.mrf.mxu0  ;;  %v4239_v38 = vld [vmem:[#allocation2 + $0x68] sm:$0xff]  ;;  %v5123_v28 = vld [vmem:[%s6751_s30 + $0x38] sm:$0xff] (%p6167_p5)  ;;  %v5125_v17 = vld [vmem:[%s6751_s30 + $0x40] sm:$0xff] (%p6167_p5) }
 0x289   : > { %v4856_v22 = vld [vmem:[#allocation2 + $0x50] sm:$0xff]  ;;  %4018 = vst.msk [vmem:[#allocation2 + $0x70] sm:$0xff] %vm243_vm1, %v3999_v57  ;;  %v5131_v57 = vld [vmem:[%s6751_s30 + $0x58] sm:$0xff] (%p6167_p5) }
 0x28a   : > { %4635 = vst.msk [vmem:[#allocation2 + $0x58] sm:$0xff] %vm243_vm1, %v4619_v30  ;;  %v4872_v61 = vadd.f32 %v4856_v22, %v4831_v48  ;;  %v5127_v30 = vld [vmem:[%s6751_s30 + $0x48] sm:$0xff] (%p6167_p5)  ;;  %v5133_v22 = vld [vmem:[%s6751_s30 + $0x60] sm:$0xff] (%p6167_p5) }
 0x28b   : > { %v4903_v21 = vld [vmem:[#allocation2 + $0x48] sm:$0xff]  ;;  %5116 = vst [vmem:[%s8203_s10 + $0x18] sm:$0xff] (%p6167_p5), %v5115_v51 }
 0x28c   : > { %v4919_v37 = vadd.f32 %v8150_v29, %v4903_v21  ;;  %4888 = vst.msk [vmem:[#allocation2 + $0x50] sm:$0xff] %vm243_vm1, %v4872_v61  ;;  %v5137_v61 = vld [vmem:[%s6751_s30 + $0x70] sm:$0xff] (%p6167_p5)  ;;  %v5139_v21 = vld [vmem:[%s6751_s30 + $0x78] sm:$0xff] (%p6167_p5) }
 0x28d   : > { %v4218_v63 = vpop.f32.mrf.mxu1  ;;  %5120 = vst [vmem:[%s8203_s10 + $0x28] sm:$0xff] (%p6167_p5), %v5119_v27 }
 0x28e   : > { %5937 = vst.msk [vmem:[%s6751_s30 + $0x1c8] sm:$0xff] %vm243_vm1, %v4919_v37  ;;  %v4255_v24 = vadd.f32 %v4239_v38, %v4218_v63  ;;  %v4836_v6 = vpop.f32.mrf.mxu3  ;;  %v5141_v37 = vld [vmem:[%s6751_s30 + $0x80] sm:$0xff] (%p6167_p5)  ;;  %v5143_v63 = vld [vmem:[%s6751_s30 + $0x88] sm:$0xff] (%p6167_p5)  ;;  %v5145_v38 = vld [vmem:[%s6751_s30 + $0x90] sm:$0xff] (%p6167_p5) }
 0x28f   : > { %v4604_v45 = vld [vmem:[#allocation2 + $0x60] sm:$0xff]  ;;  %5122 = vst [vmem:[%s8203_s10 + $0x30] sm:$0xff] (%p6167_p5), %v5121_v39 }
 0x290   : > { %v4620_v25 = vadd.f32 %v4604_v45, %v4582_v16  ;;  %4271 = vst.msk [vmem:[#allocation2 + $0x68] sm:$0xff] %vm243_vm1, %v4255_v24  ;;  %v4001_v32 = vpop.f32.mrf.mxu0  ;;  %v4240_v34 = vld [vmem:[#allocation2 + $0x70] sm:$0xff]  ;;  %v4587_v3 = vpop.f32.mrf.mxu2  ;;  %v5147_v24 = vld [vmem:[%s6751_s30 + $0x98] sm:$0xff] (%p6167_p5)  ;;  %v5149_v45 = vld [vmem:[%s6751_s30 + $0xa0] sm:$0xff] (%p6167_p5) }
 0x291   : > { %v4857_v12 = vld [vmem:[#allocation2 + $0x58] sm:$0xff]  ;;  %4019 = vst.msk [vmem:[#allocation2 + $0x78] sm:$0xff] %vm243_vm1, %v4001_v32  ;;  %v5129_v16 = vld [vmem:[%s6751_s30 + $0x50] sm:$0xff] (%p6167_p5) }
 0x292   : > { %4636 = vst.msk [vmem:[#allocation2 + $0x60] sm:$0xff] %vm243_vm1, %v4620_v25  ;;  %v4873_v53 = vadd.f32 %v4857_v12, %v4833_v4  ;;  %v5135_v4 = vld [vmem:[%s6751_s30 + $0x68] sm:$0xff] (%p6167_p5)  ;;  %v5153_v32 = vld [vmem:[%s6751_s30 + $0xb0] sm:$0xff] (%p6167_p5)  ;;  %v5155_v12 = vld [vmem:[%s6751_s30 + $0xb8] sm:$0xff] (%p6167_p5) }
 0x293   : > { %v4904_v58 = vld [vmem:[#allocation2 + $0x50] sm:$0xff]  ;;  %5124 = vst [vmem:[%s8203_s10 + $0x38] sm:$0xff] (%p6167_p5), %v5123_v28  ;;  %v5151_v25 = vld [vmem:[%s6751_s30 + $0xa8] sm:$0xff] (%p6167_p5) }
 0x294   : > { %v4920_v18 = vadd.f32 %v8150_v29, %v4904_v58  ;;  %4889 = vst.msk [vmem:[#allocation2 + $0x58] sm:$0xff] %vm243_vm1, %v4873_v53  ;;  %v5157_v53 = vld [vmem:[%s6751_s30 + $0xc0] sm:$0xff] (%p6167_p5)  ;;  %v5161_v58 = vld [vmem:[%s6751_s30 + $0xd0] sm:$0xff] (%p6167_p5) }
 0x295   : > { %v4221_v11 = vpop.f32.mrf.mxu1  ;;  %5126 = vst [vmem:[%s8203_s10 + $0x40] sm:$0xff] (%p6167_p5), %v5125_v17 }
 0x296   : > { %5938 = vst.msk [vmem:[%s6751_s30 + $0x1d0] sm:$0xff] %vm243_vm1, %v4920_v18  ;;  %v4256_v62 = vadd.f32 %v4240_v34, %v4221_v11  ;;  %v4838_v2 = vpop.f32.mrf.mxu3  ;;  %v5165_v34 = vld [vmem:[%s6751_s30 + $0xe0] sm:$0xff] (%p6167_p5)  ;;  %v5167_v18 = vld [vmem:[%s6751_s30 + $0xe8] sm:$0xff] (%p6167_p5)  ;;  %v5169_v11 = vld [vmem:[%s6751_s30 + $0xf0] sm:$0xff] (%p6167_p5) }
 0x297   : > { %v4605_v50 = vld [vmem:[#allocation2 + $0x68] sm:$0xff]  ;;  %5128 = vst [vmem:[%s8203_s10 + $0x48] sm:$0xff] (%p6167_p5), %v5127_v30 }
 0x298   : > { %v4621_v8 = vadd.f32 %v4605_v50, %v4584_v19  ;;  %4272 = vst.msk [vmem:[#allocation2 + $0x70] sm:$0xff] %vm243_vm1, %v4256_v62  ;;  %v4241_v49 = vld [vmem:[#allocation2 + $0x78] sm:$0xff]  ;;  %v4589_v7 = vpop.f32.mrf.mxu2  ;;  %v5159_v19 = vld [vmem:[%s6751_s30 + $0xc8] sm:$0xff] (%p6167_p5)  ;;  %v5173_v50 = vld [vmem:[%s6751_s30 + $0x100] sm:$0xff] (%p6167_p5) }
 0x299   : > { %v4858_v56 = vld [vmem:[#allocation2 + $0x60] sm:$0xff]  ;;  %5130 = vst [vmem:[%s8203_s10 + $0x50] sm:$0xff] (%p6167_p5), %v5129_v16  ;;  %v5171_v62 = vld [vmem:[%s6751_s30 + $0xf8] sm:$0xff] (%p6167_p5) }
 0x29a   : > { %4637 = vst.msk [vmem:[#allocation2 + $0x68] sm:$0xff] %vm243_vm1, %v4621_v8  ;;  %v4874_v33 = vadd.f32 %v4858_v56, %v4836_v6  ;;  %v5163_v6 = vld [vmem:[%s6751_s30 + $0xd8] sm:$0xff] (%p6167_p5)  ;;  %v5175_v8 = vld [vmem:[%s6751_s30 + $0x108] sm:$0xff] (%p6167_p5)  ;;  %v5177_v56 = vld [vmem:[%s6751_s30 + $0x110] sm:$0xff] (%p6167_p5) }
 0x29b   : > { %v4905_v43 = vld [vmem:[#allocation2 + $0x58] sm:$0xff]  ;;  %5132 = vst [vmem:[%s8203_s10 + $0x58] sm:$0xff] (%p6167_p5), %v5131_v57 }
 0x29c   : > { %v4921_v41 = vadd.f32 %v8150_v29, %v4905_v43  ;;  %4890 = vst.msk [vmem:[#allocation2 + $0x60] sm:$0xff] %vm243_vm1, %v4874_v33  ;;  %v5179_v33 = vld [vmem:[%s6751_s30 + $0x118] sm:$0xff] (%p6167_p5)  ;;  %v5181_v43 = vld [vmem:[%s6751_s30 + $0x120] sm:$0xff] (%p6167_p5) }
 0x29d   : > { %v4223_v52 = vpop.f32.mrf.mxu1  ;;  %5134 = vst [vmem:[%s8203_s10 + $0x60] sm:$0xff] (%p6167_p5), %v5133_v22 }
 0x29e   : > { %5939 = vst.msk [vmem:[%s6751_s30 + $0x1d8] sm:$0xff] %vm243_vm1, %v4921_v41  ;;  %v4257_v31 = vadd.f32 %v4241_v49, %v4223_v52  ;;  %v4841_v9 = vpop.f32.mrf.mxu3  ;;  %v5183_v41 = vld [vmem:[%s6751_s30 + $0x128] sm:$0xff] (%p6167_p5)  ;;  %v5189_v52 = vld [vmem:[%s6751_s30 + $0x140] sm:$0xff] (%p6167_p5) }
 0x29f   : > { %v4606_v40 = vld [vmem:[#allocation2 + $0x70] sm:$0xff]  ;;  %5136 = vst [vmem:[%s8203_s10 + $0x68] sm:$0xff] (%p6167_p5), %v5135_v4  ;;  %v5191_v49 = vld [vmem:[%s6751_s30 + $0x148] sm:$0xff] (%p6167_p5) }
 0x2a0   : > { %v4622_v10 = vadd.f32 %v4606_v40, %v4587_v3  ;;  %4273 = vst.msk [vmem:[#allocation2 + $0x78] sm:$0xff] %vm243_vm1, %v4257_v31  ;;  %v5185_v3 = vld [vmem:[%s6751_s30 + $0x130] sm:$0xff] (%p6167_p5)  ;;  %v5195_v40 = vld [vmem:[%s6751_s30 + $0x158] sm:$0xff] (%p6167_p5) }
 0x2a1   : > { %v4859_v54 = vld [vmem:[#allocation2 + $0x68] sm:$0xff]  ;;  %5138 = vst [vmem:[%s8203_s10 + $0x70] sm:$0xff] (%p6167_p5), %v5137_v61  ;;  %v5193_v31 = vld [vmem:[%s6751_s30 + $0x150] sm:$0xff] (%p6167_p5) }
 0x2a2   : > { %4638 = vst.msk [vmem:[#allocation2 + $0x70] sm:$0xff] %vm243_vm1, %v4622_v10  ;;  %v4875_v55 = vadd.f32 %v4859_v54, %v4838_v2  ;;  %v5187_v2 = vld [vmem:[%s6751_s30 + $0x138] sm:$0xff] (%p6167_p5)  ;;  %v5197_v10 = vld [vmem:[%s6751_s30 + $0x160] sm:$0xff] (%p6167_p5)  ;;  %v5199_v54 = vld [vmem:[%s6751_s30 + $0x168] sm:$0xff] (%p6167_p5) }
 0x2a3   : > { %v4906_v42 = vld [vmem:[#allocation2 + $0x60] sm:$0xff]  ;;  %5140 = vst [vmem:[%s8203_s10 + $0x78] sm:$0xff] (%p6167_p5), %v5139_v21 }
 0x2a4   : > { %v4922_v0 = vadd.f32 %v8150_v29, %v4906_v42  ;;  %4891 = vst.msk [vmem:[#allocation2 + $0x68] sm:$0xff] %vm243_vm1, %v4875_v55  ;;  %v5201_v55 = vld [vmem:[%s6751_s30 + $0x170] sm:$0xff] (%p6167_p5)  ;;  %v5203_v42 = vld [vmem:[%s6751_s30 + $0x178] sm:$0xff] (%p6167_p5) }
 0x2a5   : > { %5142 = vst [vmem:[%s8203_s10 + $0x100] sm:$0xff] (%p6167_p5), %v5141_v37 }
 0x2a6   : > { %5940 = vst.msk [vmem:[%s6751_s30 + $0x1e0] sm:$0xff] %vm243_vm1, %v4922_v0  ;;  %v4843_v15 = vpop.f32.mrf.mxu3  ;;  %v5205_v0 = vld [vmem:[%s6751_s30 + $0x180] sm:$0xff] (%p6167_p5) }
 0x2a7   : > { %v4607_v46 = vld [vmem:[#allocation2 + $0x78] sm:$0xff]  ;;  %5144 = vst [vmem:[%s8203_s10 + $0x108] sm:$0xff] (%p6167_p5), %v5143_v63 }
 0x2a8   : > { %v4623_v1 = vadd.f32 %v4607_v46, %v4589_v7  ;;  %5146 = vst [vmem:[%s8203_s10 + $0x110] sm:$0xff] (%p6167_p5), %v5145_v38  ;;  %v5207_v7 = vld [vmem:[%s6751_s30 + $0x188] sm:$0xff] (%p6167_p5)  ;;  %v5209_v46 = vld [vmem:[%s6751_s30 + $0x190] sm:$0xff] (%p6167_p5) }
 0x2a9   : > { %v4860_v14 = vld [vmem:[#allocation2 + $0x70] sm:$0xff]  ;;  %5148 = vst [vmem:[%s8203_s10 + $0x118] sm:$0xff] (%p6167_p5), %v5147_v24 }
 0x2aa   : > { %4639 = vst.msk [vmem:[#allocation2 + $0x78] sm:$0xff] %vm243_vm1, %v4623_v1  ;;  %v4876_v5 = vadd.f32 %v4860_v14, %v4841_v9  ;;  %v5211_v9 = vld [vmem:[%s6751_s30 + $0x198] sm:$0xff] (%p6167_p5)  ;;  %v5213_v1 = vld [vmem:[%s6751_s30 + $0x1a0] sm:$0xff] (%p6167_p5)  ;;  %v5215_v14 = vld [vmem:[%s6751_s30 + $0x1a8] sm:$0xff] (%p6167_p5) }
 0x2ab   : > { %v4907_v47 = vld [vmem:[#allocation2 + $0x68] sm:$0xff]  ;;  %5150 = vst [vmem:[%s8203_s10 + $0x120] sm:$0xff] (%p6167_p5), %v5149_v45 }
 0x2ac   : > { %v4923_v35 = vadd.f32 %v8150_v29, %v4907_v47  ;;  %4892 = vst.msk [vmem:[#allocation2 + $0x70] sm:$0xff] %vm243_vm1, %v4876_v5  ;;  %v5217_v5 = vld [vmem:[%s6751_s30 + $0x1b0] sm:$0xff] (%p6167_p5)  ;;  %v5219_v47 = vld [vmem:[%s6751_s30 + $0x1b8] sm:$0xff] (%p6167_p5) }
 0x2ad   : > { %5152 = vst [vmem:[%s8203_s10 + $0x128] sm:$0xff] (%p6167_p5), %v5151_v25 }
 0x2ae   : > { %5941 = vst.msk [vmem:[%s6751_s30 + $0x1e8] sm:$0xff] %vm243_vm1, %v4923_v35  ;;  %v5221_v35 = vld [vmem:[%s6751_s30 + $0x1c0] sm:$0xff] (%p6167_p5) }
 0x2af   : > { %5154 = vst [vmem:[%s8203_s10 + $0x130] sm:$0xff] (%p6167_p5), %v5153_v32 }
 0x2b0   : > { %5156 = vst [vmem:[%s8203_s10 + $0x138] sm:$0xff] (%p6167_p5), %v5155_v12 }
 0x2b1   : > { %v4861_v59 = vld [vmem:[#allocation2 + $0x78] sm:$0xff]  ;;  %5158 = vst [vmem:[%s8203_s10 + $0x140] sm:$0xff] (%p6167_p5), %v5157_v53 }
 0x2b2   : > { %v4877_v23 = vadd.f32 %v4861_v59, %v4843_v15  ;;  %5160 = vst [vmem:[%s8203_s10 + $0x148] sm:$0xff] (%p6167_p5), %v5159_v19  ;;  %v5223_v15 = vld [vmem:[%s6751_s30 + $0x1c8] sm:$0xff] (%p6167_p5)  ;;  %v5225_v59 = vld [vmem:[%s6751_s30 + $0x1d0] sm:$0xff] (%p6167_p5) }
 0x2b3   : > { %v4908_v60 = vld [vmem:[#allocation2 + $0x70] sm:$0xff]  ;;  %5162 = vst [vmem:[%s8203_s10 + $0x150] sm:$0xff] (%p6167_p5), %v5161_v58 }
 0x2b4   : > { %v4924_v48 = vadd.f32 %v8150_v29, %v4908_v60  ;;  %4893 = vst.msk [vmem:[#allocation2 + $0x78] sm:$0xff] %vm243_vm1, %v4877_v23  ;;  %v5227_v23 = vld [vmem:[%s6751_s30 + $0x1d8] sm:$0xff] (%p6167_p5)  ;;  %v5229_v60 = vld [vmem:[%s6751_s30 + $0x1e0] sm:$0xff] (%p6167_p5) }
 0x2b5   : > { %5164 = vst [vmem:[%s8203_s10 + $0x158] sm:$0xff] (%p6167_p5), %v5163_v6 }
 0x2b6   : > { %5942 = vst.msk [vmem:[%s6751_s30 + $0x1f0] sm:$0xff] %vm243_vm1, %v4924_v48  ;;  %v5231_v48 = vld [vmem:[%s6751_s30 + $0x1e8] sm:$0xff] (%p6167_p5) }
 0x2b7   : > { %5166 = vst [vmem:[%s8203_s10 + $0x160] sm:$0xff] (%p6167_p5), %v5165_v34 }
 0x2b8   : > { %5168 = vst [vmem:[%s8203_s10 + $0x168] sm:$0xff] (%p6167_p5), %v5167_v18 }
 0x2b9   : > { %5170 = vst [vmem:[%s8203_s10 + $0x170] sm:$0xff] (%p6167_p5), %v5169_v11 }
 0x2ba   : > { %4949 = sbr.rel (!%p6167_p5) target bundleno = 733 (0x2dd), region = 36  ;;  %5172 = vst [vmem:[%s8203_s10 + $0x178] sm:$0xff] (%p6167_p5), %v5171_v62 }
 0x2bb   : > { %v4909_v13 = vld [vmem:[#allocation2 + $0x78] sm:$0xff]  ;;  %5174 = vst [vmem:[%s8203_s10 + $0x200] sm:$0xff] (%p6167_p5), %v5173_v50 }
 0x2bc   : > { %v4925_v36 = vadd.f32 %v8150_v29, %v4909_v13  ;;  %v5117_v29 = vld [vmem:[%s6751_s30 + $0x20] sm:$0xff] (%p6167_p5)  ;;  %5176 = vst [vmem:[%s8203_s10 + $0x208] sm:$0xff] (%p6167_p5), %v5175_v8 }
 0x2bd   : > { %5118 = vst [vmem:[%s8203_s10 + $0x20] sm:$0xff] (%p6167_p5), %v5117_v29  ;;  %v5233_v13 = vld [vmem:[%s6751_s30 + $0x1f0] sm:$0xff] (%p6167_p5) }
 0x2be   : > { %5943 = vst.msk [vmem:[%s6751_s30 + $0x1f8] sm:$0xff] %vm243_vm1, %v4925_v36 }
 0x2bf   : > { %5178 = vst [vmem:[%s8203_s10 + $0x210] sm:$0xff] %v5177_v56 }
 0x2c0   : > { %5180 = vst [vmem:[%s8203_s10 + $0x218] sm:$0xff] %v5179_v33 }
 0x2c1   : > { %5182 = vst [vmem:[%s8203_s10 + $0x220] sm:$0xff] %v5181_v43 }
 0x2c2   : > { %5184 = vst [vmem:[%s8203_s10 + $0x228] sm:$0xff] %v5183_v41 }
 0x2c3   : > { %5186 = vst [vmem:[%s8203_s10 + $0x230] sm:$0xff] %v5185_v3 }
 0x2c4   : > { %5188 = vst [vmem:[%s8203_s10 + $0x238] sm:$0xff] %v5187_v2 }
 0x2c5   : > { %5190 = vst [vmem:[%s8203_s10 + $0x240] sm:$0xff] %v5189_v52  ;;  %v5235_v36 = vld [vmem:[%s6751_s30 + $0x1f8] sm:$0xff] }
 0x2c6   : > { %5192 = vst [vmem:[%s8203_s10 + $0x248] sm:$0xff] %v5191_v49 }
 0x2c7   : > { %5194 = vst [vmem:[%s8203_s10 + $0x250] sm:$0xff] %v5193_v31 }
 0x2c8   : > { %5196 = vst [vmem:[%s8203_s10 + $0x258] sm:$0xff] %v5195_v40 }
 0x2c9   : > { %5198 = vst [vmem:[%s8203_s10 + $0x260] sm:$0xff] %v5197_v10 }
 0x2ca   : > { %5200 = vst [vmem:[%s8203_s10 + $0x268] sm:$0xff] %v5199_v54 }
 0x2cb   : > { %5202 = vst [vmem:[%s8203_s10 + $0x270] sm:$0xff] %v5201_v55 }
 0x2cc   : > { %5204 = vst [vmem:[%s8203_s10 + $0x278] sm:$0xff] %v5203_v42 }
 0x2cd   : > { %5206 = vst [vmem:[%s8203_s10 + $0x300] sm:$0xff] %v5205_v0 }
 0x2ce   : > { %5208 = vst [vmem:[%s8203_s10 + $0x308] sm:$0xff] %v5207_v7 }
 0x2cf   : > { %5210 = vst [vmem:[%s8203_s10 + $0x310] sm:$0xff] %v5209_v46 }
 0x2d0   : > { %5212 = vst [vmem:[%s8203_s10 + $0x318] sm:$0xff] %v5211_v9 }
 0x2d1   : > { %5214 = vst [vmem:[%s8203_s10 + $0x320] sm:$0xff] %v5213_v1 }
 0x2d2   : > { %5216 = vst [vmem:[%s8203_s10 + $0x328] sm:$0xff] %v5215_v14 }
 0x2d3   : > { %5218 = vst [vmem:[%s8203_s10 + $0x330] sm:$0xff] %v5217_v5 }
 0x2d4   : > { %5220 = vst [vmem:[%s8203_s10 + $0x338] sm:$0xff] %v5219_v47 }
 0x2d5   : > { %5222 = vst [vmem:[%s8203_s10 + $0x340] sm:$0xff] %v5221_v35 }
 0x2d6   : > { %5224 = vst [vmem:[%s8203_s10 + $0x348] sm:$0xff] %v5223_v15 }
 0x2d7   : > { %5226 = vst [vmem:[%s8203_s10 + $0x350] sm:$0xff] %v5225_v59 }
 0x2d8   : > { %5228 = vst [vmem:[%s8203_s10 + $0x358] sm:$0xff] %v5227_v23 }
 0x2d9   : > { %5230 = vst [vmem:[%s8203_s10 + $0x360] sm:$0xff] %v5229_v60 }
 0x2da   : > { %5232 = vst [vmem:[%s8203_s10 + $0x368] sm:$0xff] %v5231_v48 }
 0x2db   : > { %5234 = vst [vmem:[%s8203_s10 + $0x370] sm:$0xff] %v5233_v13 }
 0x2dc   : > { %5236 = vst [vmem:[%s8203_s10 + $0x378] sm:$0xff] %v5235_v36 }
 0x2dd PF: > { %s13_s18 = sadd.s32 1, %s6099_s18   ;;  %s8361_s12 = smov %s6079_s13 }
 0x2de   : > { %p10_p10 = scmp.ge.s32.totalorder %s13_s18, 6   ;;  %s8362_s13 = smov %s6178_s27 }
 0x2df   : > { %s8363_s14 = smov %s6091_s16  ;;  %s8364_s15 = smov %s6095_s17 }
 0x2e0   : > { %s8365_s16 = smov %s8368_s19  ;;  %s8366_s17 = smov %s8372_s20 }
 0x2e1   :  { %12 = sbr.rel (!%p10_p10) target bundleno = 4 (0x4), region = 121 }

</bundles_post_ra>
